<compile_context>
chip_gen: v5e
topology: v5e:2x2
jax: 0.10.0
libtpu: 0.0.40
codegen_flags: <defaults>
</compile_context>

<pallas_src>
import functools

import jax
import jax.numpy as jnp
from jax import lax
from jax.experimental import pallas as pl
from jax.experimental.pallas import tpu as pltpu


_LANES = 128
_SUB_BF16 = 16          # bf16 sublane packing tile


def _round_up(x, m):
    return (x + m - 1) // m * m


def _cpad16(c):
    return _round_up(c, _SUB_BF16)


def _bytes(shape, dtype):
    n = 1
    for d in shape:
        n *= int(d)
    return n * jnp.dtype(dtype).itemsize


def _cparams(block_bytes):
    # Per-block footprint -> scoped VMEM limit, clamped to [32 MiB, 100 MiB].
    limit = int(min(100 * 2 ** 20, max(32 * 2 ** 20, block_bytes)))
    return pltpu.CompilerParams(dimension_semantics=("parallel",),
                                vmem_limit_bytes=limit)


# ----------------------------- padded flat layout -----------------------------

def _pad_layout(H, W):
    """Flat padded layout: [lead zeros | top pad row | H*W interior | bottom pad row | tail zeros].

    `interior` (= lead + W) is a multiple of 128 so every interior load/store is lane
    aligned; lead >= 1 and tail >= W + 1 cover all 3x3 tap reads outside the image.
    """
    lead = (-W) % _LANES
    if lead == 0:
        lead = _LANES
    interior = lead + W
    npad = _round_up(lead + (H + 2) * W + 1, _LANES)
    return interior, npad


def _pad_flat_nchw(x, H, W, interior, npad, dtype):
    """(B, C, H, W) -> (B, C, npad) in the _pad_layout layout (pads fuse with the producer)."""
    B, C = x.shape[0], x.shape[1]
    lead = interior - W
    xp = jnp.pad(x, ((0, 0), (0, 0), (1, 1), (0, 0)))
    xf = xp.reshape(B, C, (H + 2) * W)
    tail = npad - lead - (H + 2) * W
    return jnp.pad(xf, ((0, 0), (0, 0), (lead, tail))).astype(dtype)


def _edge_masks(H, W, dtype):
    col = jnp.arange(H * W, dtype=jnp.int32) % W
    ml = (col != 0).astype(dtype).reshape(1, H * W)        # kills kw==0 taps at w==0
    mr = (col != W - 1).astype(dtype).reshape(1, H * W)    # kills kw==2 taps at w==W-1
    return ml, mr


# ----------------------------- in-kernel helpers -----------------------------

def _fill_taps(scr_ref, read, base, c, cpad, W, N, interior, ml, mr):
    """Write the 9 tap-shifted slices of one padded source into the im2col scratch.

    Rows [base + t*cpad, base + t*cpad + c) hold tap t (kh, kw) = divmod(t, 3); rows up
    to cpad stay zero (their packed weight columns are zero).  Every store starts at a
    16-row-aligned sublane offset, so bf16 stores are tile aligned.  Left/right edge
    columns that would read across the row wrap are masked to zero (bf16 masks).
    """
    for t in range(9):
        kh, kw = divmod(t, 3)
        off = interior - (W + 1) + kh * W + kw
        sl = read(off, off + N)
        if kw == 0:
            sl = sl * ml
        elif kw == 2:
            sl = sl * mr
        r0 = base + t * cpad
        scr_ref[r0:r0 + c, :] = sl


def _gn_hswish(acc, A, gamma, beta, eps):
    """GroupNorm (per-sample, full-spatial, centered variance) + hardswish, in f32.

    acc: (C, N) f32 conv output.  A: (C, C) group-averaging matrix.  gamma/beta: (C, 1).
    """
    n_inv = 1.0 / acc.shape[1]
    mu_c = jnp.sum(acc, axis=1, keepdims=True) * n_inv
    mu_g = jnp.dot(A, mu_c, preferred_element_type=jnp.float32)
    d = acc - mu_g
    var_c = jnp.sum(d * d, axis=1, keepdims=True) * n_inv
    var_g = jnp.dot(A, var_c, preferred_element_type=jnp.float32)
    inv = lax.rsqrt(var_g + eps)
    yn = d * inv * gamma + beta
    # hardswish: x * relu6(x + 3) / 6
    return yn * jnp.clip(yn + 3.0, 0.0, 6.0) * (1.0 / 6.0)


def _store_padded(ref, val, interior, N):
    """Write `val` as the interior of a pre-padded output row and zero both halos."""
    npad = ref.shape[-1]
    rows = val.shape[0]
    ref[:, 0:interior] = jnp.zeros((rows, interior), ref.dtype)
    ref[:, interior:interior + N] = val
    ref[:, interior + N:npad] = jnp.zeros((rows, npad - interior - N), ref.dtype)


# ----------------------------- Pallas kernels -----------------------------

def _shortcut_att_kernel(xp_ref, fp_ref, wsc_ref, watt_ref, gam_ref, bet_ref,
                         A_ref, ml_ref, mr_ref, o_ref, scr_ref,
                         *, H, W, interior, eps, zero_scratch):
    """f_att = sigmoid(att_1x1(x)) * hardswish(GN(conv3x3(f))), emitted pre-padded bf16."""
    N = H * W
    skip_ch = fp_ref.shape[1]
    cpad = scr_ref.shape[0] // 9
    if zero_scratch:
        # Pad rows of the im2col scratch must be zero (0 * garbage could be NaN).  Done
        # every step (not pl.when(step==0)) so it stays correct under megacore splitting.
        scr_ref[...] = jnp.zeros(scr_ref.shape, scr_ref.dtype)
    ml = ml_ref[...]
    mr = mr_ref[...]
    _fill_taps(scr_ref, lambda lo, hi: fp_ref[0, :, lo:hi], 0, skip_ch, cpad,
               W, N, interior, ml, mr)
    acc = jnp.dot(wsc_ref[...], scr_ref[...], preferred_element_type=jnp.float32)
    f_sc = _gn_hswish(acc, A_ref[...], gam_ref[...], bet_ref[...], eps)
    x_int = xp_ref[0, :, interior:interior + N]                      # lane-aligned
    att = jax.nn.sigmoid(jnp.dot(watt_ref[...], x_int, preferred_element_type=jnp.float32))
    _store_padded(o_ref.at[0], (att * f_sc).astype(o_ref.dtype), interior, N)


def _main_conv_kernel(xp_ref, fap_ref, sp_ref, w_ref, gam_ref, bet_ref, A_ref,
                      ml_ref, mr_ref, a_ref, bp_ref, scr_ref,
                      *, H, W, interior, gc, eps, zero_scratch):
    """y = hswish(GN(conv3x3([x, f_att, s]))); emits a = y[:gc] (f32) and padded b = y[gc:] (bf16)."""
    N = H * W
    in_ch = xp_ref.shape[1]
    src_ch = sp_ref.shape[1]
    cpx = _cpad16(in_ch)
    cps = _cpad16(src_ch)
    if zero_scratch:
        scr_ref[...] = jnp.zeros(scr_ref.shape, scr_ref.dtype)
    ml = ml_ref[...]
    mr = mr_ref[...]
    _fill_taps(scr_ref, lambda lo, hi: xp_ref[0, :, lo:hi], 0, in_ch, cpx,
               W, N, interior, ml, mr)
    _fill_taps(scr_ref, lambda lo, hi: fap_ref[0, :, lo:hi], 9 * cpx, in_ch, cpx,
               W, N, interior, ml, mr)
    _fill_taps(scr_ref, lambda lo, hi: sp_ref[0, :, lo:hi], 18 * cpx, src_ch, cps,
               W, N, interior, ml, mr)
    acc = jnp.dot(w_ref[...], scr_ref[...], preferred_element_type=jnp.float32)
    y = _gn_hswish(acc, A_ref[...], gam_ref[...], bet_ref[...], eps)
    a_ref[0] = y[:gc].astype(a_ref.dtype)
    _store_padded(bp_ref.at[0], y[gc:].astype(bp_ref.dtype), interior, N)


def _gru_kernel(a_ref, bp_ref, hp_ref, wih_ref, bih_ref, whh_ref, bhh_ref,
                ml_ref, mr_ref, out_ref, r_ref, scr_ref, rhp_ref,
                *, H, W, interior, gc, zero_scratch):
    """Fused ConvGRU: ih conv + sigmoid, r*h, hh conv + tanh, gate; also assembles [a, b_new]."""
    N = H * W
    gcp = _cpad16(gc)
    if zero_scratch:
        scr_ref[...] = jnp.zeros(scr_ref.shape, scr_ref.dtype)
    ml = ml_ref[...]
    mr = mr_ref[...]
    # ih conv input = [b, h]
    _fill_taps(scr_ref, lambda lo, hi: bp_ref[0, :, lo:hi], 0, gc, gcp, W, N, interior, ml, mr)
    _fill_taps(scr_ref, lambda lo, hi: hp_ref[0, :, lo:hi], 9 * gcp, gc, gcp, W, N, interior, ml, mr)
    ih = jax.nn.sigmoid(
        jnp.dot(wih_ref[...], scr_ref[...], preferred_element_type=jnp.float32) + bih_ref[...])
    r = ih[:gc]
    z = ih[gc:]
    h_int = hp_ref[0, :, interior:interior + N].astype(jnp.float32)
    # r*h goes into a zero-haloed VMEM scratch so the hh conv taps can be read; the b-tap
    # half of the im2col scratch is reused and only the h rows are overwritten with r*h.
    _store_padded(rhp_ref, (r * h_int).astype(rhp_ref.dtype), interior, N)
    _fill_taps(scr_ref, lambda lo, hi: rhp_ref[:, lo:hi], 9 * gcp, gc, gcp, W, N, interior, ml, mr)
    c = jnp.tanh(
        jnp.dot(whh_ref[...], scr_ref[...], preferred_element_type=jnp.float32) + bhh_ref[...])
    b_new = (1.0 - z) * h_int + z * c
    out_ref[0, 0:gc, :] = a_ref[0]
    out_ref[0, gc:2 * gc, :] = b_new.astype(out_ref.dtype)
    r_ref[0] = b_new.astype(r_ref.dtype)


# ----------------------------- pallas_call wrappers -----------------------------

def _batch_spec(shape):
    rest = tuple(int(d) for d in shape[1:])
    nz = len(rest)
    return pl.BlockSpec((1,) + rest, lambda b: (b,) + (0,) * nz)


def _bcast_spec(shape):
    full = tuple(int(d) for d in shape)
    nd = len(full)
    return pl.BlockSpec(full, lambda b: (0,) * nd)


def shortcut_att_conv(xp, fp, w_sc, w_att, gamma, beta, A, ml, mr, *, H, W, interior, eps=1e-5):
    B, _, npad = xp.shape
    in_ch = w_sc.shape[0]
    skip_ch = fp.shape[1]
    N = H * W
    kpad = w_sc.shape[1]
    blk = 2 * (_bytes((in_ch, npad), jnp.bfloat16) + _bytes((skip_ch, npad), jnp.bfloat16)
               + _bytes((in_ch, npad), jnp.bfloat16)
               + _bytes(w_sc.shape, w_sc.dtype) + _bytes(w_att.shape, w_att.dtype)
               + _bytes(A.shape, A.dtype) + 2 * _bytes(ml.shape, ml.dtype)
               + 2 * _bytes(gamma.shape, gamma.dtype)) + _bytes((kpad, N), jnp.bfloat16)
    kern = functools.partial(_shortcut_att_kernel, H=H, W=W, interior=interior, eps=eps,
                             zero_scratch=(skip_ch % _SUB_BF16 != 0))
    return pl.pallas_call(
        kern,
        out_shape=jax.ShapeDtypeStruct((B, in_ch, npad), jnp.bfloat16),
        grid=(B,),
        in_specs=[_batch_spec(xp.shape), _batch_spec(fp.shape),
                  _bcast_spec(w_sc.shape), _bcast_spec(w_att.shape),
                  _bcast_spec(gamma.shape), _bcast_spec(beta.shape),
                  _bcast_spec(A.shape), _bcast_spec(ml.shape), _bcast_spec(mr.shape)],
        out_specs=_batch_spec((B, in_ch, npad)),
        scratch_shapes=[pltpu.VMEM((kpad, N), jnp.bfloat16)],
        compiler_params=_cparams(blk),
    )(xp, fp, w_sc, w_att, gamma, beta, A, ml, mr)


def main_conv(xp, fattp, sp, w, gamma, beta, A, ml, mr, *, H, W, interior, gc, eps=1e-5):
    B, in_ch, npad = xp.shape
    src_ch = sp.shape[1]
    N = H * W
    kpad = w.shape[1]
    blk = 2 * (3 * _bytes((in_ch, npad), jnp.bfloat16)
               + _bytes(w.shape, w.dtype)
               + _bytes((gc, N), jnp.float32) + _bytes((gc, npad), jnp.bfloat16)
               + _bytes(A.shape, A.dtype) + 2 * _bytes(ml.shape, ml.dtype)
               + 2 * _bytes(gamma.shape, gamma.dtype)) + _bytes((kpad, N), jnp.bfloat16)
    kern = functools.partial(_main_conv_kernel, H=H, W=W, interior=interior, gc=gc, eps=eps,
                             zero_scratch=(in_ch % _SUB_BF16 != 0 or src_ch % _SUB_BF16 != 0))
    return pl.pallas_call(
        kern,
        out_shape=(jax.ShapeDtypeStruct((B, gc, N), jnp.float32),       # a = y[:gc]
                   jax.ShapeDtypeStruct((B, gc, npad), jnp.bfloat16)),  # b = y[gc:], pre-padded
        grid=(B,),
        in_specs=[_batch_spec(xp.shape), _batch_spec(fattp.shape), _batch_spec(sp.shape),
                  _bcast_spec(w.shape), _bcast_spec(gamma.shape), _bcast_spec(beta.shape),
                  _bcast_spec(A.shape), _bcast_spec(ml.shape), _bcast_spec(mr.shape)],
        out_specs=(_batch_spec((B, gc, N)), _batch_spec((B, gc, npad))),
        scratch_shapes=[pltpu.VMEM((kpad, N), jnp.bfloat16)],
        compiler_params=_cparams(blk),
    )(xp, fattp, sp, w, gamma, beta, A, ml, mr)


def gru_conv(a, bp, hp, w_ih, b_ih, w_hh, b_hh, ml, mr, *, H, W, interior, gc):
    B = a.shape[0]
    npad = hp.shape[2]
    N = H * W
    kpad = w_ih.shape[1]
    out_ch = 2 * gc
    blk = 2 * (_bytes((gc, N), jnp.float32) + 2 * _bytes((gc, npad), jnp.bfloat16)
               + _bytes(w_ih.shape, w_ih.dtype) + _bytes(w_hh.shape, w_hh.dtype)
               + _bytes((out_ch, N), jnp.float32) + _bytes((gc, N), jnp.float32)
               + 2 * _bytes(ml.shape, ml.dtype)) \
          + _bytes((kpad, N), jnp.bfloat16) + _bytes((gc, npad), jnp.bfloat16)
    kern = functools.partial(_gru_kernel, H=H, W=W, interior=interior, gc=gc,
                             zero_scratch=(gc % _SUB_BF16 != 0))
    return pl.pallas_call(
        kern,
        out_shape=(jax.ShapeDtypeStruct((B, out_ch, N), jnp.float32),   # final [a, b_new]
                   jax.ShapeDtypeStruct((B, gc, N), jnp.float32)),      # new hidden r
        grid=(B,),
        in_specs=[_batch_spec(a.shape), _batch_spec(bp.shape), _batch_spec(hp.shape),
                  _bcast_spec(w_ih.shape), _bcast_spec(b_ih.shape),
                  _bcast_spec(w_hh.shape), _bcast_spec(b_hh.shape),
                  _bcast_spec(ml.shape), _bcast_spec(mr.shape)],
        out_specs=(_batch_spec((B, out_ch, N)), _batch_spec((B, gc, N))),
        scratch_shapes=[pltpu.VMEM((kpad, N), jnp.bfloat16),
                        pltpu.VMEM((gc, npad), jnp.bfloat16)],
        compiler_params=_cparams(blk),
    )(a, bp, hp, w_ih, b_ih, w_hh, b_hh, ml, mr)


# ----------------------------- JAX glue (cheap, XLA-fused) -----------------------------

def _upsample2x_axis(a, axis):
    """Exact 2x bilinear (align_corners=False) along one axis via fixed 0.25/0.75 taps."""
    n = a.shape[axis]
    first = lax.slice_in_dim(a, 0, 1, axis=axis)
    last = lax.slice_in_dim(a, n - 1, n, axis=axis)
    left = jnp.concatenate([first, lax.slice_in_dim(a, 0, n - 1, axis=axis)], axis=axis)
    right = jnp.concatenate([lax.slice_in_dim(a, 1, n, axis=axis), last], axis=axis)
    even = 0.75 * a + 0.25 * left
    odd = 0.75 * a + 0.25 * right
    out = jnp.stack([even, odd], axis=axis + 1)
    new_shape = list(a.shape)
    new_shape[axis] = 2 * n
    return out.reshape(new_shape)


def upsample2x_bilinear_nchw(x):
    # Elementwise chain; the following pad + bf16 cast fuses with it in XLA, so the
    # upsampled x is written to HBM once, already in the padded kernel layout.
    return _upsample2x_axis(_upsample2x_axis(x, 2), 3)


def group_avg_matrix(channels, num_groups, dtype=jnp.float32):
    gs = channels // num_groups
    gid = jnp.arange(channels) // gs
    same = (gid[:, None] == gid[None, :]).astype(dtype)
    return same / gs


# ----------------------------- parameters -----------------------------

def init_params(key, in_ch, skip_ch, src_ch, out_ch):
    gc = out_ch // 2
    ks = jax.random.split(key, 15)
    nrm = jax.random.normal
    p = {}
    # 3x3 weights are per-tap stacks (9, Cout, Cin_slice), tap t = kh*3 + kw.
    # (Torch OIHW -> stack: jnp.transpose(w, (2, 3, 0, 1)).reshape(9, Cout, Cin),
    #  with the Cin axis split per concat source.)
    p["sc_w"] = 0.1 * nrm(ks[0], (9, in_ch, skip_ch), jnp.float32)
    p["sc_gamma"] = 1.0 + 0.1 * nrm(ks[1], (in_ch,), jnp.float32)
    p["sc_beta"] = 0.1 * nrm(ks[2], (in_ch,), jnp.float32)
    p["sc_A"] = group_avg_matrix(in_ch, in_ch // 4)
    p["att_w"] = 0.1 * nrm(ks[3], (in_ch, in_ch), jnp.float32)      # 1x1 conv, no bias
    p["conv_wx"] = 0.1 * nrm(ks[4], (9, out_ch, in_ch), jnp.float32)
    p["conv_wf"] = 0.1 * nrm(ks[5], (9, out_ch, in_ch), jnp.float32)
    p["conv_ws"] = 0.1 * nrm(ks[6], (9, out_ch, src_ch), jnp.float32)
    p["conv_gamma"] = 1.0 + 0.1 * nrm(ks[7], (out_ch,), jnp.float32)
    p["conv_beta"] = 0.1 * nrm(ks[8], (out_ch,), jnp.float32)
    p["conv_A"] = group_avg_matrix(out_ch, out_ch // 4)
    p["ih_wb"] = 0.1 * nrm(ks[9], (9, 2 * gc, gc), jnp.float32)
    p["ih_wh"] = 0.1 * nrm(ks[10], (9, 2 * gc, gc), jnp.float32)
    p["ih_b"] = 0.1 * nrm(ks[11], (2 * gc,), jnp.float32)
    p["hh_wb"] = 0.1 * nrm(ks[12], (9, gc, gc), jnp.float32)
    p["hh_wrh"] = 0.1 * nrm(ks[13], (9, gc, gc), jnp.float32)
    p["hh_b"] = 0.1 * nrm(ks[14], (gc,), jnp.float32)
    return p


def _pack_taps(w, cpad):
    """(9, Cout, Cin) per-tap stack -> (Cout, 9*cpad) packed K layout (tap-major, zero-padded)."""
    cout, cin = int(w.shape[1]), int(w.shape[2])
    wp = jnp.pad(w, ((0, 0), (0, 0), (0, cpad - cin)))
    return jnp.transpose(wp, (1, 0, 2)).reshape(cout, 9 * cpad)


def pack_params(p, *, in_channels, skip_channels, src_channels, out_channels):
    """One-time repack of the torch-like per-tap stacks into the kernels' K-packed layout."""
    gc = out_channels // 2
    gcp = _cpad16(gc)
    cdt = jnp.bfloat16
    q = {
        "sc_w_packed": _pack_taps(p["sc_w"], _cpad16(skip_channels)).astype(cdt),
        "att_w": p["att_w"].astype(cdt),
        "sc_gamma": p["sc_gamma"].reshape(-1, 1).astype(jnp.float32),
        "sc_beta": p["sc_beta"].reshape(-1, 1).astype(jnp.float32),
        "sc_A": p["sc_A"].astype(jnp.float32),
        "conv_w_packed": jnp.concatenate(
            [_pack_taps(p["conv_wx"], _cpad16(in_channels)),
             _pack_taps(p["conv_wf"], _cpad16(in_channels)),
             _pack_taps(p["conv_ws"], _cpad16(src_channels))], axis=1).astype(cdt),
        "conv_gamma": p["conv_gamma"].reshape(-1, 1).astype(jnp.float32),
        "conv_beta": p["conv_beta"].reshape(-1, 1).astype(jnp.float32),
        "conv_A": p["conv_A"].astype(jnp.float32),
        "ih_w_packed": jnp.concatenate(
            [_pack_taps(p["ih_wb"], gcp), _pack_taps(p["ih_wh"], gcp)], axis=1).astype(cdt),
        "ih_b": p["ih_b"].reshape(-1, 1).astype(jnp.float32),
        "hh_w_packed": jnp.concatenate(
            [_pack_taps(p["hh_wb"], gcp), _pack_taps(p["hh_wrh"], gcp)], axis=1).astype(cdt),
        "hh_b": p["hh_b"].reshape(-1, 1).astype(jnp.float32),
    }
    return q


# ----------------------------- forward -----------------------------

def upsampling_block_forward(params, x, f, s, r=None, *, out_channels):
    """Single-frame (4-D NCHW) UpsamplingBlock.forward. Returns (out, r_new), both NCHW f32."""
    assert x.ndim == 4
    gc = out_channels // 2
    B, _, Hs, Ws = s.shape
    cdt = jnp.bfloat16
    interior, npad = _pad_layout(Hs, Ws)

    # 2x bilinear upsample (align_corners=False), crop to skip spatial size.
    x_up = upsample2x_bilinear_nchw(x)[:, :, :Hs, :Ws]

    ml, mr = _edge_masks(Hs, Ws, cdt)
    xp = _pad_flat_nchw(x_up, Hs, Ws, interior, npad, cdt)
    fp = _pad_flat_nchw(f, Hs, Ws, interior, npad, cdt)
    sp = _pad_flat_nchw(s, Hs, Ws, interior, npad, cdt)

    # Kernel 1: f_att = sigmoid(att_1x1(x)) * hswish(GN(shortcut3x3(f))), pre-padded bf16.
    fattp = shortcut_att_conv(xp, fp, params["sc_w_packed"], params["att_w"],
                              params["sc_gamma"], params["sc_beta"], params["sc_A"],
                              ml, mr, H=Hs, W=Ws, interior=interior)

    # Kernel 2: y = hswish(GN(conv3x3([x, f_att, s]))); emits a = y[:gc] (f32) and the
    # pre-padded bf16 b = y[gc:] for the GRU (no wrapper re-pad / re-cast).
    a_flat, bp = main_conv(xp, fattp, sp, params["conv_w_packed"],
                           params["conv_gamma"], params["conv_beta"], params["conv_A"],
                           ml, mr, H=Hs, W=Ws, interior=interior, gc=gc)

    if r is None:
        hp = jnp.zeros((B, gc, npad), cdt)
    else:
        hp = _pad_flat_nchw(r, Hs, Ws, interior, npad, cdt)

    # Kernel 3: fused ConvGRU (both convs + sigmoid/tanh + gate) and final [a, b_new].
    out_flat, r_flat = gru_conv(a_flat, bp, hp, params["ih_w_packed"], params["ih_b"],
                                params["hh_w_packed"], params["hh_b"], ml, mr,
                                H=Hs, W=Ws, interior=interior, gc=gc)

    out = out_flat.reshape(B, out_channels, Hs, Ws)
    r_new = r_flat.reshape(B, gc, Hs, Ws)
    return out, r_new


# ----------------------------- demo -----------------------------

if __name__ == "__main__":
    in_ch, skip_ch, src_ch, out_ch = 8, 4, 4, 8
    B, Hs, Ws = 2, 16, 16

    key = jax.random.PRNGKey(0)
    kp, kx, kf, ks_ = jax.random.split(key, 4)
    raw = init_params(kp, in_ch, skip_ch, src_ch, out_ch)
    params = pack_params(raw, in_channels=in_ch, skip_channels=skip_ch,
                         src_channels=src_ch, out_channels=out_ch)

    x = jax.random.normal(kx, (B, in_ch, Hs // 2, Ws // 2), jnp.float32)   # decoder feature (NCHW)
    f = jax.random.normal(kf, (B, skip_ch, Hs, Ws), jnp.float32)           # skip feature
    s = jax.random.normal(ks_, (B, src_ch, Hs, Ws), jnp.float32)           # src feature
    r = None                                                               # GRU hidden (None -> zeros)

    fwd = jax.jit(functools.partial(upsampling_block_forward, out_channels=out_ch))
    out, r_new = fwd(params, x, f, s, r)
    jax.block_until_ready((out, r_new))

    assert out.shape == (B, out_ch, Hs, Ws), out.shape
    assert r_new.shape == (B, out_ch // 2, Hs, Ws), r_new.shape
    assert bool(jnp.all(jnp.isfinite(out))) and bool(jnp.all(jnp.isfinite(r_new)))
    print("KERNEL_OK")
</pallas_src>

<mosaic_0001>
module attributes {stable_mosaic.version = 11 : i64} {
  func.func @_shortcut_att_kernel(%arg0: i32, %arg1: memref<1x8x512xbf16, #tpu.memory_space<vmem>>, %arg2: memref<1x4x512xbf16, #tpu.memory_space<vmem>>, %arg3: memref<8x144xbf16, #tpu.memory_space<vmem>>, %arg4: memref<8x8xbf16, #tpu.memory_space<vmem>>, %arg5: memref<8x1xf32, #tpu.memory_space<vmem>>, %arg6: memref<8x1xf32, #tpu.memory_space<vmem>>, %arg7: memref<8x8xf32, #tpu.memory_space<vmem>>, %arg8: memref<1x256xbf16, #tpu.memory_space<vmem>>, %arg9: memref<1x256xbf16, #tpu.memory_space<vmem>>, %arg10: memref<1x8x512xbf16, #tpu.memory_space<vmem>>, %arg11: memref<144x256xbf16, #tpu.memory_space<vmem>>) attributes {dimension_semantics = [#tpu.dimension_semantics<parallel>], iteration_bounds = array<i64: 2>, scalar_prefetch = 0 : i64, scratch_operands = 1 : i64, tpu.core_type = #tpu.core_type<tc>, window_params = [{transform_indices = @transform_0, window_bounds = array<i64: 1, 8, 512>}, {transform_indices = @transform_1, window_bounds = array<i64: 1, 4, 512>}, {pipeline_mode = #tpu.pipeline_mode<synchronous>, transform_indices = @transform_2, window_bounds = array<i64: 8, 144>}, {pipeline_mode = #tpu.pipeline_mode<synchronous>, transform_indices = @transform_3, window_bounds = array<i64: 8, 8>}, {pipeline_mode = #tpu.pipeline_mode<synchronous>, transform_indices = @transform_4, window_bounds = array<i64: 8, 1>}, {pipeline_mode = #tpu.pipeline_mode<synchronous>, transform_indices = @transform_5, window_bounds = array<i64: 8, 1>}, {pipeline_mode = #tpu.pipeline_mode<synchronous>, transform_indices = @transform_6, window_bounds = array<i64: 8, 8>}, {pipeline_mode = #tpu.pipeline_mode<synchronous>, transform_indices = @transform_7, window_bounds = array<i64: 1, 256>}, {pipeline_mode = #tpu.pipeline_mode<synchronous>, transform_indices = @transform_8, window_bounds = array<i64: 1, 256>}, {transform_indices = @transform_9, window_bounds = array<i64: 1, 8, 512>}]} {
    %cst = arith.constant 0.000000e+00 : bf16
    %0 = vector.broadcast %cst : bf16 to vector<144x256xbf16>
    %c0 = arith.constant 0 : index
    %c0_0 = arith.constant 0 : index
    %1 = vector.load %arg11[%c0, %c0_0] : memref<144x256xbf16, #tpu.memory_space<vmem>>, vector<144x256xbf16>
    tpu.vector_store %arg11[%c0, %c0_0], %0 {strides = array<i32>} : memref<144x256xbf16, #tpu.memory_space<vmem>>, vector<144x256xbf16>,
    %c0_1 = arith.constant 0 : index
    %c0_2 = arith.constant 0 : index
    %2 = vector.load %arg8[%c0_1, %c0_2] : memref<1x256xbf16, #tpu.memory_space<vmem>>, vector<1x256xbf16>
    %c0_3 = arith.constant 0 : index
    %c0_4 = arith.constant 0 : index
    %3 = vector.load %arg9[%c0_3, %c0_4] : memref<1x256xbf16, #tpu.memory_space<vmem>>, vector<1x256xbf16>
    %c0_5 = arith.constant 0 : index
    %c0_6 = arith.constant 0 : index
    %c111 = arith.constant 111 : index
    %4 = vector.load %arg2[%c0_5, %c0_6, %c111] : memref<1x4x512xbf16, #tpu.memory_space<vmem>>, vector<1x4x256xbf16>
    %5 = vector.shape_cast %4 : vector<1x4x256xbf16> to vector<4x256xbf16>
    %6 = vector.broadcast %2 : vector<1x256xbf16> to vector<4x256xbf16>
    %7 = arith.mulf %5, %6 : vector<4x256xbf16>
    %c0_7 = arith.constant 0 : index
    %c0_8 = arith.constant 0 : index
    %8 = vector.load %arg11[%c0_7, %c0_8] : memref<144x256xbf16, #tpu.memory_space<vmem>>, vector<4x256xbf16>
    tpu.vector_store %arg11[%c0_7, %c0_8], %7 {strides = array<i32>} : memref<144x256xbf16, #tpu.memory_space<vmem>>, vector<4x256xbf16>,
    %c0_9 = arith.constant 0 : index
    %c0_10 = arith.constant 0 : index
    %c112 = arith.constant 112 : index
    %9 = vector.load %arg2[%c0_9, %c0_10, %c112] : memref<1x4x512xbf16, #tpu.memory_space<vmem>>, vector<1x4x256xbf16>
    %10 = vector.shape_cast %9 : vector<1x4x256xbf16> to vector<4x256xbf16>
    %c16 = arith.constant 16 : index
    %c0_11 = arith.constant 0 : index
    %11 = vector.load %arg11[%c16, %c0_11] : memref<144x256xbf16, #tpu.memory_space<vmem>>, vector<4x256xbf16>
    tpu.vector_store %arg11[%c16, %c0_11], %10 {strides = array<i32>} : memref<144x256xbf16, #tpu.memory_space<vmem>>, vector<4x256xbf16>,
    %c0_12 = arith.constant 0 : index
    %c0_13 = arith.constant 0 : index
    %c113 = arith.constant 113 : index
    %12 = vector.load %arg2[%c0_12, %c0_13, %c113] : memref<1x4x512xbf16, #tpu.memory_space<vmem>>, vector<1x4x256xbf16>
    %13 = vector.shape_cast %12 : vector<1x4x256xbf16> to vector<4x256xbf16>
    %14 = vector.broadcast %3 : vector<1x256xbf16> to vector<4x256xbf16>
    %15 = arith.mulf %13, %14 : vector<4x256xbf16>
    %c32 = arith.constant 32 : index
    %c0_14 = arith.constant 0 : index
    %16 = vector.load %arg11[%c32, %c0_14] : memref<144x256xbf16, #tpu.memory_space<vmem>>, vector<4x256xbf16>
    tpu.vector_store %arg11[%c32, %c0_14], %15 {strides = array<i32>} : memref<144x256xbf16, #tpu.memory_space<vmem>>, vector<4x256xbf16>,
    %c0_15 = arith.constant 0 : index
    %c0_16 = arith.constant 0 : index
    %c127 = arith.constant 127 : index
    %17 = vector.load %arg2[%c0_15, %c0_16, %c127] : memref<1x4x512xbf16, #tpu.memory_space<vmem>>, vector<1x4x256xbf16>
    %18 = vector.shape_cast %17 : vector<1x4x256xbf16> to vector<4x256xbf16>
    %19 = vector.broadcast %2 : vector<1x256xbf16> to vector<4x256xbf16>
    %20 = arith.mulf %18, %19 : vector<4x256xbf16>
    %c48 = arith.constant 48 : index
    %c0_17 = arith.constant 0 : index
    %21 = vector.load %arg11[%c48, %c0_17] : memref<144x256xbf16, #tpu.memory_space<vmem>>, vector<4x256xbf16>
    tpu.vector_store %arg11[%c48, %c0_17], %20 {strides = array<i32>} : memref<144x256xbf16, #tpu.memory_space<vmem>>, vector<4x256xbf16>,
    %c0_18 = arith.constant 0 : index
    %c0_19 = arith.constant 0 : index
    %c128 = arith.constant 128 : index
    %22 = vector.load %arg2[%c0_18, %c0_19, %c128] : memref<1x4x512xbf16, #tpu.memory_space<vmem>>, vector<1x4x256xbf16>
    %23 = vector.shape_cast %22 : vector<1x4x256xbf16> to vector<4x256xbf16>
    %c64 = arith.constant 64 : index
    %c0_20 = arith.constant 0 : index
    %24 = vector.load %arg11[%c64, %c0_20] : memref<144x256xbf16, #tpu.memory_space<vmem>>, vector<4x256xbf16>
    tpu.vector_store %arg11[%c64, %c0_20], %23 {strides = array<i32>} : memref<144x256xbf16, #tpu.memory_space<vmem>>, vector<4x256xbf16>,
    %c0_21 = arith.constant 0 : index
    %c0_22 = arith.constant 0 : index
    %c129 = arith.constant 129 : index
    %25 = vector.load %arg2[%c0_21, %c0_22, %c129] : memref<1x4x512xbf16, #tpu.memory_space<vmem>>, vector<1x4x256xbf16>
    %26 = vector.shape_cast %25 : vector<1x4x256xbf16> to vector<4x256xbf16>
    %27 = vector.broadcast %3 : vector<1x256xbf16> to vector<4x256xbf16>
    %28 = arith.mulf %26, %27 : vector<4x256xbf16>
    %c80 = arith.constant 80 : index
    %c0_23 = arith.constant 0 : index
    %29 = vector.load %arg11[%c80, %c0_23] : memref<144x256xbf16, #tpu.memory_space<vmem>>, vector<4x256xbf16>
    tpu.vector_store %arg11[%c80, %c0_23], %28 {strides = array<i32>} : memref<144x256xbf16, #tpu.memory_space<vmem>>, vector<4x256xbf16>,
    %c0_24 = arith.constant 0 : index
    %c0_25 = arith.constant 0 : index
    %c143 = arith.constant 143 : index
    %30 = vector.load %arg2[%c0_24, %c0_25, %c143] : memref<1x4x512xbf16, #tpu.memory_space<vmem>>, vector<1x4x256xbf16>
    %31 = vector.shape_cast %30 : vector<1x4x256xbf16> to vector<4x256xbf16>
    %32 = vector.broadcast %2 : vector<1x256xbf16> to vector<4x256xbf16>
    %33 = arith.mulf %31, %32 : vector<4x256xbf16>
    %c96 = arith.constant 96 : index
    %c0_26 = arith.constant 0 : index
    %34 = vector.load %arg11[%c96, %c0_26] : memref<144x256xbf16, #tpu.memory_space<vmem>>, vector<4x256xbf16>
    tpu.vector_store %arg11[%c96, %c0_26], %33 {strides = array<i32>} : memref<144x256xbf16, #tpu.memory_space<vmem>>, vector<4x256xbf16>,
    %c0_27 = arith.constant 0 : index
    %c0_28 = arith.constant 0 : index
    %c144 = arith.constant 144 : index
    %35 = vector.load %arg2[%c0_27, %c0_28, %c144] : memref<1x4x512xbf16, #tpu.memory_space<vmem>>, vector<1x4x256xbf16>
    %36 = vector.shape_cast %35 : vector<1x4x256xbf16> to vector<4x256xbf16>
    %c112_29 = arith.constant 112 : index
    %c0_30 = arith.constant 0 : index
    %37 = vector.load %arg11[%c112_29, %c0_30] : memref<144x256xbf16, #tpu.memory_space<vmem>>, vector<4x256xbf16>
    tpu.vector_store %arg11[%c112_29, %c0_30], %36 {strides = array<i32>} : memref<144x256xbf16, #tpu.memory_space<vmem>>, vector<4x256xbf16>,
    %c0_31 = arith.constant 0 : index
    %c0_32 = arith.constant 0 : index
    %c145 = arith.constant 145 : index
    %38 = vector.load %arg2[%c0_31, %c0_32, %c145] : memref<1x4x512xbf16, #tpu.memory_space<vmem>>, vector<1x4x256xbf16>
    %39 = vector.shape_cast %38 : vector<1x4x256xbf16> to vector<4x256xbf16>
    %40 = vector.broadcast %3 : vector<1x256xbf16> to vector<4x256xbf16>
    %41 = arith.mulf %39, %40 : vector<4x256xbf16>
    %c128_33 = arith.constant 128 : index
    %c0_34 = arith.constant 0 : index
    %42 = vector.load %arg11[%c128_33, %c0_34] : memref<144x256xbf16, #tpu.memory_space<vmem>>, vector<4x256xbf16>
    tpu.vector_store %arg11[%c128_33, %c0_34], %41 {strides = array<i32>} : memref<144x256xbf16, #tpu.memory_space<vmem>>, vector<4x256xbf16>,
    %c0_35 = arith.constant 0 : index
    %c0_36 = arith.constant 0 : index
    %43 = vector.load %arg3[%c0_35, %c0_36] : memref<8x144xbf16, #tpu.memory_space<vmem>>, vector<8x144xbf16>
    %c0_37 = arith.constant 0 : index
    %c0_38 = arith.constant 0 : index
    %44 = vector.load %arg11[%c0_37, %c0_38] : memref<144x256xbf16, #tpu.memory_space<vmem>>, vector<144x256xbf16>
    %cst_39 = arith.constant dense<0.000000e+00> : vector<8x256xf32>
    %45 = tpu.matmul %43, %44, %cst_39 {dimension_numbers = #tpu.dot_dimension_numbers<[1], [0], [0], [1], [0, 0, 1, 1], [], []>} : vector<8x144xbf16>, vector<144x256xbf16>, vector<8x256xf32> -> vector<8x256xf32>
    %c0_40 = arith.constant 0 : index
    %c0_41 = arith.constant 0 : index
    %46 = vector.load %arg7[%c0_40, %c0_41] : memref<8x8xf32, #tpu.memory_space<vmem>>, vector<8x8xf32>
    %c0_42 = arith.constant 0 : index
    %c0_43 = arith.constant 0 : index
    %47 = vector.load %arg5[%c0_42, %c0_43] : memref<8x1xf32, #tpu.memory_space<vmem>>, vector<8x1xf32>
    %c0_44 = arith.constant 0 : index
    %c0_45 = arith.constant 0 : index
    %48 = vector.load %arg6[%c0_44, %c0_45] : memref<8x1xf32, #tpu.memory_space<vmem>>, vector<8x1xf32>
    %cst_46 = arith.constant dense<0.000000e+00> : vector<8xf32>
    %49 = vector.multi_reduction <add>, %45, %cst_46 [1] : vector<8x256xf32> to vector<8xf32>
    %50 = vector.shape_cast %49 : vector<8xf32> to vector<8x1xf32>
    %cst_47 = arith.constant 3.906250e-03 : f32
    %51 = vector.broadcast %cst_47 : f32 to vector<8x1xf32>
    %52 = arith.mulf %50, %51 : vector<8x1xf32>
    %cst_48 = arith.constant dense<0.000000e+00> : vector<8x1xf32>
    %53 = tpu.matmul %46, %52, %cst_48 {dimension_numbers = #tpu.dot_dimension_numbers<[1], [0], [0], [1], [0, 0, 1, 1], [], []>} : vector<8x8xf32>, vector<8x1xf32>, vector<8x1xf32> -> vector<8x1xf32>
    %54 = vector.broadcast %53 : vector<8x1xf32> to vector<8x256xf32>
    %55 = arith.subf %45, %54 : vector<8x256xf32>
    %56 = arith.mulf %55, %55 : vector<8x256xf32>
    %cst_49 = arith.constant dense<0.000000e+00> : vector<8xf32>
    %57 = vector.multi_reduction <add>, %56, %cst_49 [1] : vector<8x256xf32> to vector<8xf32>
    %58 = vector.shape_cast %57 : vector<8xf32> to vector<8x1xf32>
    %cst_50 = arith.constant 3.906250e-03 : f32
    %59 = vector.broadcast %cst_50 : f32 to vector<8x1xf32>
    %60 = arith.mulf %58, %59 : vector<8x1xf32>
    %cst_51 = arith.constant dense<0.000000e+00> : vector<8x1xf32>
    %61 = tpu.matmul %46, %60, %cst_51 {dimension_numbers = #tpu.dot_dimension_numbers<[1], [0], [0], [1], [0, 0, 1, 1], [], []>} : vector<8x8xf32>, vector<8x1xf32>, vector<8x1xf32> -> vector<8x1xf32>
    %cst_52 = arith.constant 9.99999974E-6 : f32
    %62 = vector.broadcast %cst_52 : f32 to vector<8x1xf32>
    %63 = arith.addf %61, %62 : vector<8x1xf32>
    %64 = math.rsqrt %63 : vector<8x1xf32>
    %65 = vector.broadcast %64 : vector<8x1xf32> to vector<8x256xf32>
    %66 = arith.mulf %55, %65 : vector<8x256xf32>
    %67 = vector.broadcast %47 : vector<8x1xf32> to vector<8x256xf32>
    %68 = arith.mulf %66, %67 : vector<8x256xf32>
    %69 = vector.broadcast %48 : vector<8x1xf32> to vector<8x256xf32>
    %70 = arith.addf %68, %69 : vector<8x256xf32>
    %cst_53 = arith.constant 3.000000e+00 : f32
    %71 = vector.broadcast %cst_53 : f32 to vector<8x256xf32>
    %72 = arith.addf %70, %71 : vector<8x256xf32>
    %cst_54 = arith.constant 0.000000e+00 : f32
    %cst_55 = arith.constant 6.000000e+00 : f32
    %73 = vector.broadcast %cst_54 : f32 to vector<8x256xf32>
    %74 = arith.maximumf %73, %72 : vector<8x256xf32>
    %75 = vector.broadcast %cst_55 : f32 to vector<8x256xf32>
    %76 = arith.minimumf %75, %74 : vector<8x256xf32>
    %77 = arith.mulf %70, %76 : vector<8x256xf32>
    %cst_56 = arith.constant 0.166666672 : f32
    %78 = vector.broadcast %cst_56 : f32 to vector<8x256xf32>
    %79 = arith.mulf %77, %78 : vector<8x256xf32>
    %c0_57 = arith.constant 0 : index
    %c0_58 = arith.constant 0 : index
    %c128_59 = arith.constant 128 : index
    %80 = vector.load %arg1[%c0_57, %c0_58, %c128_59] : memref<1x8x512xbf16, #tpu.memory_space<vmem>>, vector<1x8x256xbf16>
    %81 = vector.shape_cast %80 : vector<1x8x256xbf16> to vector<8x256xbf16>
    %c0_60 = arith.constant 0 : index
    %c0_61 = arith.constant 0 : index
    %82 = vector.load %arg4[%c0_60, %c0_61] : memref<8x8xbf16, #tpu.memory_space<vmem>>, vector<8x8xbf16>
    %cst_62 = arith.constant dense<0.000000e+00> : vector<8x256xf32>
    %83 = tpu.matmul %82, %81, %cst_62 {dimension_numbers = #tpu.dot_dimension_numbers<[1], [0], [0], [1], [0, 0, 1, 1], [], []>} : vector<8x8xbf16>, vector<8x256xbf16>, vector<8x256xf32> -> vector<8x256xf32>
    %84 = arith.negf %83 : vector<8x256xf32>
    %85 = math.exp %84 : vector<8x256xf32>
    %cst_63 = arith.constant 1.000000e+00 : f32
    %86 = vector.broadcast %cst_63 : f32 to vector<8x256xf32>
    %87 = arith.addf %86, %85 : vector<8x256xf32>
    %88 = arith.divf %86, %87 : vector<8x256xf32>
    %89 = arith.mulf %88, %79 : vector<8x256xf32>
    %90 = arith.truncf %89 : vector<8x256xf32> to vector<8x256xbf16>
    %cst_64 = arith.constant 0.000000e+00 : bf16
    %91 = vector.broadcast %cst_64 : bf16 to vector<8x128xbf16>
    %c0_i32 = arith.constant 0 : i32
    %c0_i32_65 = arith.constant 0 : i32
    %c0_i32_66 = arith.constant 0 : i32
    %92 = tpu.memref_slice %arg10[%c0_i32, %c0_i32_65, %c0_i32_66] : memref<1x8x512xbf16, #tpu.memory_space<vmem>> -> memref<1x8x512xbf16, #tpu.memory_space<vmem>>
    %93 = tpu.memref_squeeze %92 : memref<1x8x512xbf16, #tpu.memory_space<vmem>> -> memref<8x512xbf16, #tpu.memory_space<vmem>>
    %c0_67 = arith.constant 0 : index
    %c0_68 = arith.constant 0 : index
    %94 = vector.load %93[%c0_67, %c0_68] : memref<8x512xbf16, #tpu.memory_space<vmem>>, vector<8x128xbf16>
    tpu.vector_store %93[%c0_67, %c0_68], %91 {strides = array<i32>} : memref<8x512xbf16, #tpu.memory_space<vmem>>, vector<8x128xbf16>,
    %c0_i32_69 = arith.constant 0 : i32
    %c0_i32_70 = arith.constant 0 : i32
    %c0_i32_71 = arith.constant 0 : i32
    %95 = tpu.memref_slice %arg10[%c0_i32_69, %c0_i32_70, %c0_i32_71] : memref<1x8x512xbf16, #tpu.memory_space<vmem>> -> memref<1x8x512xbf16, #tpu.memory_space<vmem>>
    %96 = tpu.memref_squeeze %95 : memref<1x8x512xbf16, #tpu.memory_space<vmem>> -> memref<8x512xbf16, #tpu.memory_space<vmem>>
    %c0_72 = arith.constant 0 : index
    %c128_73 = arith.constant 128 : index
    %97 = vector.load %96[%c0_72, %c128_73] : memref<8x512xbf16, #tpu.memory_space<vmem>>, vector<8x256xbf16>
    tpu.vector_store %96[%c0_72, %c128_73], %90 {strides = array<i32>} : memref<8x512xbf16, #tpu.memory_space<vmem>>, vector<8x256xbf16>,
    %cst_74 = arith.constant 0.000000e+00 : bf16
    %98 = vector.broadcast %cst_74 : bf16 to vector<8x128xbf16>
    %c0_i32_75 = arith.constant 0 : i32
    %c0_i32_76 = arith.constant 0 : i32
    %c0_i32_77 = arith.constant 0 : i32
    %99 = tpu.memref_slice %arg10[%c0_i32_75, %c0_i32_76, %c0_i32_77] : memref<1x8x512xbf16, #tpu.memory_space<vmem>> -> memref<1x8x512xbf16, #tpu.memory_space<vmem>>
    %100 = tpu.memref_squeeze %99 : memref<1x8x512xbf16, #tpu.memory_space<vmem>> -> memref<8x512xbf16, #tpu.memory_space<vmem>>
    %c0_78 = arith.constant 0 : index
    %c384 = arith.constant 384 : index
    %101 = vector.load %100[%c0_78, %c384] : memref<8x512xbf16, #tpu.memory_space<vmem>>, vector<8x128xbf16>
    tpu.vector_store %100[%c0_78, %c384], %98 {strides = array<i32>} : memref<8x512xbf16, #tpu.memory_space<vmem>>, vector<8x128xbf16>,
    return
  }
  func.func @transform_0(%arg0: i32) -> (i32, i32, i32) {
    %c0_i32 = arith.constant 0 : i32
    %c0_i32_0 = arith.constant 0 : i32
    %c0_i32_1 = arith.constant 0 : i32
    return %arg0, %c0_i32, %c0_i32_0 : i32, i32, i32
  }
  func.func @transform_1(%arg0: i32) -> (i32, i32, i32) {
    %c0_i32 = arith.constant 0 : i32
    %c0_i32_0 = arith.constant 0 : i32
    %c0_i32_1 = arith.constant 0 : i32
    return %arg0, %c0_i32, %c0_i32_0 : i32, i32, i32
  }
  func.func @transform_2(%arg0: i32) -> (i32, i32) {
    %c0_i32 = arith.constant 0 : i32
    %c0_i32_0 = arith.constant 0 : i32
    %c0_i32_1 = arith.constant 0 : i32
    return %c0_i32, %c0_i32_0 : i32, i32
  }
  func.func @transform_3(%arg0: i32) -> (i32, i32) {
    %c0_i32 = arith.constant 0 : i32
    %c0_i32_0 = arith.constant 0 : i32
    %c0_i32_1 = arith.constant 0 : i32
    return %c0_i32, %c0_i32_0 : i32, i32
  }
  func.func @transform_4(%arg0: i32) -> (i32, i32) {
    %c0_i32 = arith.constant 0 : i32
    %c0_i32_0 = arith.constant 0 : i32
    %c0_i32_1 = arith.constant 0 : i32
    return %c0_i32, %c0_i32_0 : i32, i32
  }
  func.func @transform_5(%arg0: i32) -> (i32, i32) {
    %c0_i32 = arith.constant 0 : i32
    %c0_i32_0 = arith.constant 0 : i32
    %c0_i32_1 = arith.constant 0 : i32
    return %c0_i32, %c0_i32_0 : i32, i32
  }
  func.func @transform_6(%arg0: i32) -> (i32, i32) {
    %c0_i32 = arith.constant 0 : i32
    %c0_i32_0 = arith.constant 0 : i32
    %c0_i32_1 = arith.constant 0 : i32
    return %c0_i32, %c0_i32_0 : i32, i32
  }
  func.func @transform_7(%arg0: i32) -> (i32, i32) {
    %c0_i32 = arith.constant 0 : i32
    %c0_i32_0 = arith.constant 0 : i32
    %c0_i32_1 = arith.constant 0 : i32
    return %c0_i32, %c0_i32_0 : i32, i32
  }
  func.func @transform_8(%arg0: i32) -> (i32, i32) {
    %c0_i32 = arith.constant 0 : i32
    %c0_i32_0 = arith.constant 0 : i32
    %c0_i32_1 = arith.constant 0 : i32
    return %c0_i32, %c0_i32_0 : i32, i32
  }
  func.func @transform_9(%arg0: i32) -> (i32, i32, i32) {
    %c0_i32 = arith.constant 0 : i32
    %c0_i32_0 = arith.constant 0 : i32
    %c0_i32_1 = arith.constant 0 : i32
    return %arg0, %c0_i32, %c0_i32_0 : i32, i32, i32
  }
}

module attributes {stable_mosaic.version = 11 : i64} {
  func.func @_gru_kernel(%arg0: i32, %arg1: memref<1x4x256xf32, #tpu.memory_space<vmem>>, %arg2: memref<1x4x512xbf16, #tpu.memory_space<vmem>>, %arg3: memref<1x4x512xbf16, #tpu.memory_space<vmem>>, %arg4: memref<8x288xbf16, #tpu.memory_space<vmem>>, %arg5: memref<8x1xf32, #tpu.memory_space<vmem>>, %arg6: memref<4x288xbf16, #tpu.memory_space<vmem>>, %arg7: memref<4x1xf32, #tpu.memory_space<vmem>>, %arg8: memref<1x256xbf16, #tpu.memory_space<vmem>>, %arg9: memref<1x256xbf16, #tpu.memory_space<vmem>>, %arg10: memref<1x8x256xf32, #tpu.memory_space<vmem>>, %arg11: memref<1x4x256xf32, #tpu.memory_space<vmem>>, %arg12: memref<288x256xbf16, #tpu.memory_space<vmem>>, %arg13: memref<4x512xbf16, #tpu.memory_space<vmem>>) attributes {dimension_semantics = [#tpu.dimension_semantics<parallel>], iteration_bounds = array<i64: 2>, scalar_prefetch = 0 : i64, scratch_operands = 2 : i64, tpu.core_type = #tpu.core_type<tc>, window_params = [{transform_indices = @transform_0, window_bounds = array<i64: 1, 4, 256>}, {transform_indices = @transform_1, window_bounds = array<i64: 1, 4, 512>}, {transform_indices = @transform_2, window_bounds = array<i64: 1, 4, 512>}, {pipeline_mode = #tpu.pipeline_mode<synchronous>, transform_indices = @transform_3, window_bounds = array<i64: 8, 288>}, {pipeline_mode = #tpu.pipeline_mode<synchronous>, transform_indices = @transform_4, window_bounds = array<i64: 8, 1>}, {pipeline_mode = #tpu.pipeline_mode<synchronous>, transform_indices = @transform_5, window_bounds = array<i64: 4, 288>}, {pipeline_mode = #tpu.pipeline_mode<synchronous>, transform_indices = @transform_6, window_bounds = array<i64: 4, 1>}, {pipeline_mode = #tpu.pipeline_mode<synchronous>, transform_indices = @transform_7, window_bounds = array<i64: 1, 256>}, {pipeline_mode = #tpu.pipeline_mode<synchronous>, transform_indices = @transform_8, window_bounds = array<i64: 1, 256>}, {transform_indices = @transform_9, window_bounds = array<i64: 1, 8, 256>}, {transform_indices = @transform_10, window_bounds = array<i64: 1, 4, 256>}]} {
    %cst = arith.constant 0.000000e+00 : bf16
    %0 = vector.broadcast %cst : bf16 to vector<288x256xbf16>
    %c0 = arith.constant 0 : index
    %c0_0 = arith.constant 0 : index
    %1 = vector.load %arg12[%c0, %c0_0] : memref<288x256xbf16, #tpu.memory_space<vmem>>, vector<288x256xbf16>
    tpu.vector_store %arg12[%c0, %c0_0], %0 {strides = array<i32>} : memref<288x256xbf16, #tpu.memory_space<vmem>>, vector<288x256xbf16>,
    %c0_1 = arith.constant 0 : index
    %c0_2 = arith.constant 0 : index
    %2 = vector.load %arg8[%c0_1, %c0_2] : memref<1x256xbf16, #tpu.memory_space<vmem>>, vector<1x256xbf16>
    %c0_3 = arith.constant 0 : index
    %c0_4 = arith.constant 0 : index
    %3 = vector.load %arg9[%c0_3, %c0_4] : memref<1x256xbf16, #tpu.memory_space<vmem>>, vector<1x256xbf16>
    %c0_5 = arith.constant 0 : index
    %c0_6 = arith.constant 0 : index
    %c111 = arith.constant 111 : index
    %4 = vector.load %arg2[%c0_5, %c0_6, %c111] : memref<1x4x512xbf16, #tpu.memory_space<vmem>>, vector<1x4x256xbf16>
    %5 = vector.shape_cast %4 : vector<1x4x256xbf16> to vector<4x256xbf16>
    %6 = vector.broadcast %2 : vector<1x256xbf16> to vector<4x256xbf16>
    %7 = arith.mulf %5, %6 : vector<4x256xbf16>
    %c0_7 = arith.constant 0 : index
    %c0_8 = arith.constant 0 : index
    %8 = vector.load %arg12[%c0_7, %c0_8] : memref<288x256xbf16, #tpu.memory_space<vmem>>, vector<4x256xbf16>
    tpu.vector_store %arg12[%c0_7, %c0_8], %7 {strides = array<i32>} : memref<288x256xbf16, #tpu.memory_space<vmem>>, vector<4x256xbf16>,
    %c0_9 = arith.constant 0 : index
    %c0_10 = arith.constant 0 : index
    %c112 = arith.constant 112 : index
    %9 = vector.load %arg2[%c0_9, %c0_10, %c112] : memref<1x4x512xbf16, #tpu.memory_space<vmem>>, vector<1x4x256xbf16>
    %10 = vector.shape_cast %9 : vector<1x4x256xbf16> to vector<4x256xbf16>
    %c16 = arith.constant 16 : index
    %c0_11 = arith.constant 0 : index
    %11 = vector.load %arg12[%c16, %c0_11] : memref<288x256xbf16, #tpu.memory_space<vmem>>, vector<4x256xbf16>
    tpu.vector_store %arg12[%c16, %c0_11], %10 {strides = array<i32>} : memref<288x256xbf16, #tpu.memory_space<vmem>>, vector<4x256xbf16>,
    %c0_12 = arith.constant 0 : index
    %c0_13 = arith.constant 0 : index
    %c113 = arith.constant 113 : index
    %12 = vector.load %arg2[%c0_12, %c0_13, %c113] : memref<1x4x512xbf16, #tpu.memory_space<vmem>>, vector<1x4x256xbf16>
    %13 = vector.shape_cast %12 : vector<1x4x256xbf16> to vector<4x256xbf16>
    %14 = vector.broadcast %3 : vector<1x256xbf16> to vector<4x256xbf16>
    %15 = arith.mulf %13, %14 : vector<4x256xbf16>
    %c32 = arith.constant 32 : index
    %c0_14 = arith.constant 0 : index
    %16 = vector.load %arg12[%c32, %c0_14] : memref<288x256xbf16, #tpu.memory_space<vmem>>, vector<4x256xbf16>
    tpu.vector_store %arg12[%c32, %c0_14], %15 {strides = array<i32>} : memref<288x256xbf16, #tpu.memory_space<vmem>>, vector<4x256xbf16>,
    %c0_15 = arith.constant 0 : index
    %c0_16 = arith.constant 0 : index
    %c127 = arith.constant 127 : index
    %17 = vector.load %arg2[%c0_15, %c0_16, %c127] : memref<1x4x512xbf16, #tpu.memory_space<vmem>>, vector<1x4x256xbf16>
    %18 = vector.shape_cast %17 : vector<1x4x256xbf16> to vector<4x256xbf16>
    %19 = vector.broadcast %2 : vector<1x256xbf16> to vector<4x256xbf16>
    %20 = arith.mulf %18, %19 : vector<4x256xbf16>
    %c48 = arith.constant 48 : index
    %c0_17 = arith.constant 0 : index
    %21 = vector.load %arg12[%c48, %c0_17] : memref<288x256xbf16, #tpu.memory_space<vmem>>, vector<4x256xbf16>
    tpu.vector_store %arg12[%c48, %c0_17], %20 {strides = array<i32>} : memref<288x256xbf16, #tpu.memory_space<vmem>>, vector<4x256xbf16>,
    %c0_18 = arith.constant 0 : index
    %c0_19 = arith.constant 0 : index
    %c128 = arith.constant 128 : index
    %22 = vector.load %arg2[%c0_18, %c0_19, %c128] : memref<1x4x512xbf16, #tpu.memory_space<vmem>>, vector<1x4x256xbf16>
    %23 = vector.shape_cast %22 : vector<1x4x256xbf16> to vector<4x256xbf16>
    %c64 = arith.constant 64 : index
    %c0_20 = arith.constant 0 : index
    %24 = vector.load %arg12[%c64, %c0_20] : memref<288x256xbf16, #tpu.memory_space<vmem>>, vector<4x256xbf16>
    tpu.vector_store %arg12[%c64, %c0_20], %23 {strides = array<i32>} : memref<288x256xbf16, #tpu.memory_space<vmem>>, vector<4x256xbf16>,
    %c0_21 = arith.constant 0 : index
    %c0_22 = arith.constant 0 : index
    %c129 = arith.constant 129 : index
    %25 = vector.load %arg2[%c0_21, %c0_22, %c129] : memref<1x4x512xbf16, #tpu.memory_space<vmem>>, vector<1x4x256xbf16>
    %26 = vector.shape_cast %25 : vector<1x4x256xbf16> to vector<4x256xbf16>
    %27 = vector.broadcast %3 : vector<1x256xbf16> to vector<4x256xbf16>
    %28 = arith.mulf %26, %27 : vector<4x256xbf16>
    %c80 = arith.constant 80 : index
    %c0_23 = arith.constant 0 : index
    %29 = vector.load %arg12[%c80, %c0_23] : memref<288x256xbf16, #tpu.memory_space<vmem>>, vector<4x256xbf16>
    tpu.vector_store %arg12[%c80, %c0_23], %28 {strides = array<i32>} : memref<288x256xbf16, #tpu.memory_space<vmem>>, vector<4x256xbf16>,
    %c0_24 = arith.constant 0 : index
    %c0_25 = arith.constant 0 : index
    %c143 = arith.constant 143 : index
    %30 = vector.load %arg2[%c0_24, %c0_25, %c143] : memref<1x4x512xbf16, #tpu.memory_space<vmem>>, vector<1x4x256xbf16>
    %31 = vector.shape_cast %30 : vector<1x4x256xbf16> to vector<4x256xbf16>
    %32 = vector.broadcast %2 : vector<1x256xbf16> to vector<4x256xbf16>
    %33 = arith.mulf %31, %32 : vector<4x256xbf16>
    %c96 = arith.constant 96 : index
    %c0_26 = arith.constant 0 : index
    %34 = vector.load %arg12[%c96, %c0_26] : memref<288x256xbf16, #tpu.memory_space<vmem>>, vector<4x256xbf16>
    tpu.vector_store %arg12[%c96, %c0_26], %33 {strides = array<i32>} : memref<288x256xbf16, #tpu.memory_space<vmem>>, vector<4x256xbf16>,
    %c0_27 = arith.constant 0 : index
    %c0_28 = arith.constant 0 : index
    %c144 = arith.constant 144 : index
    %35 = vector.load %arg2[%c0_27, %c0_28, %c144] : memref<1x4x512xbf16, #tpu.memory_space<vmem>>, vector<1x4x256xbf16>
    %36 = vector.shape_cast %35 : vector<1x4x256xbf16> to vector<4x256xbf16>
    %c112_29 = arith.constant 112 : index
    %c0_30 = arith.constant 0 : index
    %37 = vector.load %arg12[%c112_29, %c0_30] : memref<288x256xbf16, #tpu.memory_space<vmem>>, vector<4x256xbf16>
    tpu.vector_store %arg12[%c112_29, %c0_30], %36 {strides = array<i32>} : memref<288x256xbf16, #tpu.memory_space<vmem>>, vector<4x256xbf16>,
    %c0_31 = arith.constant 0 : index
    %c0_32 = arith.constant 0 : index
    %c145 = arith.constant 145 : index
    %38 = vector.load %arg2[%c0_31, %c0_32, %c145] : memref<1x4x512xbf16, #tpu.memory_space<vmem>>, vector<1x4x256xbf16>
    %39 = vector.shape_cast %38 : vector<1x4x256xbf16> to vector<4x256xbf16>
    %40 = vector.broadcast %3 : vector<1x256xbf16> to vector<4x256xbf16>
    %41 = arith.mulf %39, %40 : vector<4x256xbf16>
    %c128_33 = arith.constant 128 : index
    %c0_34 = arith.constant 0 : index
    %42 = vector.load %arg12[%c128_33, %c0_34] : memref<288x256xbf16, #tpu.memory_space<vmem>>, vector<4x256xbf16>
    tpu.vector_store %arg12[%c128_33, %c0_34], %41 {strides = array<i32>} : memref<288x256xbf16, #tpu.memory_space<vmem>>, vector<4x256xbf16>,
    %c0_35 = arith.constant 0 : index
    %c0_36 = arith.constant 0 : index
    %c111_37 = arith.constant 111 : index
    %43 = vector.load %arg3[%c0_35, %c0_36, %c111_37] : memref<1x4x512xbf16, #tpu.memory_space<vmem>>, vector<1x4x256xbf16>
    %44 = vector.shape_cast %43 : vector<1x4x256xbf16> to vector<4x256xbf16>
    %45 = vector.broadcast %2 : vector<1x256xbf16> to vector<4x256xbf16>
    %46 = arith.mulf %44, %45 : vector<4x256xbf16>
    %c144_38 = arith.constant 144 : index
    %c0_39 = arith.constant 0 : index
    %47 = vector.load %arg12[%c144_38, %c0_39] : memref<288x256xbf16, #tpu.memory_space<vmem>>, vector<4x256xbf16>
    tpu.vector_store %arg12[%c144_38, %c0_39], %46 {strides = array<i32>} : memref<288x256xbf16, #tpu.memory_space<vmem>>, vector<4x256xbf16>,
    %c0_40 = arith.constant 0 : index
    %c0_41 = arith.constant 0 : index
    %c112_42 = arith.constant 112 : index
    %48 = vector.load %arg3[%c0_40, %c0_41, %c112_42] : memref<1x4x512xbf16, #tpu.memory_space<vmem>>, vector<1x4x256xbf16>
    %49 = vector.shape_cast %48 : vector<1x4x256xbf16> to vector<4x256xbf16>
    %c160 = arith.constant 160 : index
    %c0_43 = arith.constant 0 : index
    %50 = vector.load %arg12[%c160, %c0_43] : memref<288x256xbf16, #tpu.memory_space<vmem>>, vector<4x256xbf16>
    tpu.vector_store %arg12[%c160, %c0_43], %49 {strides = array<i32>} : memref<288x256xbf16, #tpu.memory_space<vmem>>, vector<4x256xbf16>,
    %c0_44 = arith.constant 0 : index
    %c0_45 = arith.constant 0 : index
    %c113_46 = arith.constant 113 : index
    %51 = vector.load %arg3[%c0_44, %c0_45, %c113_46] : memref<1x4x512xbf16, #tpu.memory_space<vmem>>, vector<1x4x256xbf16>
    %52 = vector.shape_cast %51 : vector<1x4x256xbf16> to vector<4x256xbf16>
    %53 = vector.broadcast %3 : vector<1x256xbf16> to vector<4x256xbf16>
    %54 = arith.mulf %52, %53 : vector<4x256xbf16>
    %c176 = arith.constant 176 : index
    %c0_47 = arith.constant 0 : index
    %55 = vector.load %arg12[%c176, %c0_47] : memref<288x256xbf16, #tpu.memory_space<vmem>>, vector<4x256xbf16>
    tpu.vector_store %arg12[%c176, %c0_47], %54 {strides = array<i32>} : memref<288x256xbf16, #tpu.memory_space<vmem>>, vector<4x256xbf16>,
    %c0_48 = arith.constant 0 : index
    %c0_49 = arith.constant 0 : index
    %c127_50 = arith.constant 127 : index
    %56 = vector.load %arg3[%c0_48, %c0_49, %c127_50] : memref<1x4x512xbf16, #tpu.memory_space<vmem>>, vector<1x4x256xbf16>
    %57 = vector.shape_cast %56 : vector<1x4x256xbf16> to vector<4x256xbf16>
    %58 = vector.broadcast %2 : vector<1x256xbf16> to vector<4x256xbf16>
    %59 = arith.mulf %57, %58 : vector<4x256xbf16>
    %c192 = arith.constant 192 : index
    %c0_51 = arith.constant 0 : index
    %60 = vector.load %arg12[%c192, %c0_51] : memref<288x256xbf16, #tpu.memory_space<vmem>>, vector<4x256xbf16>
    tpu.vector_store %arg12[%c192, %c0_51], %59 {strides = array<i32>} : memref<288x256xbf16, #tpu.memory_space<vmem>>, vector<4x256xbf16>,
    %c0_52 = arith.constant 0 : index
    %c0_53 = arith.constant 0 : index
    %c128_54 = arith.constant 128 : index
    %61 = vector.load %arg3[%c0_52, %c0_53, %c128_54] : memref<1x4x512xbf16, #tpu.memory_space<vmem>>, vector<1x4x256xbf16>
    %62 = vector.shape_cast %61 : vector<1x4x256xbf16> to vector<4x256xbf16>
    %c208 = arith.constant 208 : index
    %c0_55 = arith.constant 0 : index
    %63 = vector.load %arg12[%c208, %c0_55] : memref<288x256xbf16, #tpu.memory_space<vmem>>, vector<4x256xbf16>
    tpu.vector_store %arg12[%c208, %c0_55], %62 {strides = array<i32>} : memref<288x256xbf16, #tpu.memory_space<vmem>>, vector<4x256xbf16>,
    %c0_56 = arith.constant 0 : index
    %c0_57 = arith.constant 0 : index
    %c129_58 = arith.constant 129 : index
    %64 = vector.load %arg3[%c0_56, %c0_57, %c129_58] : memref<1x4x512xbf16, #tpu.memory_space<vmem>>, vector<1x4x256xbf16>
    %65 = vector.shape_cast %64 : vector<1x4x256xbf16> to vector<4x256xbf16>
    %66 = vector.broadcast %3 : vector<1x256xbf16> to vector<4x256xbf16>
    %67 = arith.mulf %65, %66 : vector<4x256xbf16>
    %c224 = arith.constant 224 : index
    %c0_59 = arith.constant 0 : index
    %68 = vector.load %arg12[%c224, %c0_59] : memref<288x256xbf16, #tpu.memory_space<vmem>>, vector<4x256xbf16>
    tpu.vector_store %arg12[%c224, %c0_59], %67 {strides = array<i32>} : memref<288x256xbf16, #tpu.memory_space<vmem>>, vector<4x256xbf16>,
    %c0_60 = arith.constant 0 : index
    %c0_61 = arith.constant 0 : index
    %c143_62 = arith.constant 143 : index
    %69 = vector.load %arg3[%c0_60, %c0_61, %c143_62] : memref<1x4x512xbf16, #tpu.memory_space<vmem>>, vector<1x4x256xbf16>
    %70 = vector.shape_cast %69 : vector<1x4x256xbf16> to vector<4x256xbf16>
    %71 = vector.broadcast %2 : vector<1x256xbf16> to vector<4x256xbf16>
    %72 = arith.mulf %70, %71 : vector<4x256xbf16>
    %c240 = arith.constant 240 : index
    %c0_63 = arith.constant 0 : index
    %73 = vector.load %arg12[%c240, %c0_63] : memref<288x256xbf16, #tpu.memory_space<vmem>>, vector<4x256xbf16>
    tpu.vector_store %arg12[%c240, %c0_63], %72 {strides = array<i32>} : memref<288x256xbf16, #tpu.memory_space<vmem>>, vector<4x256xbf16>,
    %c0_64 = arith.constant 0 : index
    %c0_65 = arith.constant 0 : index
    %c144_66 = arith.constant 144 : index
    %74 = vector.load %arg3[%c0_64, %c0_65, %c144_66] : memref<1x4x512xbf16, #tpu.memory_space<vmem>>, vector<1x4x256xbf16>
    %75 = vector.shape_cast %74 : vector<1x4x256xbf16> to vector<4x256xbf16>
    %c256 = arith.constant 256 : index
    %c0_67 = arith.constant 0 : index
    %76 = vector.load %arg12[%c256, %c0_67] : memref<288x256xbf16, #tpu.memory_space<vmem>>, vector<4x256xbf16>
    tpu.vector_store %arg12[%c256, %c0_67], %75 {strides = array<i32>} : memref<288x256xbf16, #tpu.memory_space<vmem>>, vector<4x256xbf16>,
    %c0_68 = arith.constant 0 : index
    %c0_69 = arith.constant 0 : index
    %c145_70 = arith.constant 145 : index
    %77 = vector.load %arg3[%c0_68, %c0_69, %c145_70] : memref<1x4x512xbf16, #tpu.memory_space<vmem>>, vector<1x4x256xbf16>
    %78 = vector.shape_cast %77 : vector<1x4x256xbf16> to vector<4x256xbf16>
    %79 = vector.broadcast %3 : vector<1x256xbf16> to vector<4x256xbf16>
    %80 = arith.mulf %78, %79 : vector<4x256xbf16>
    %c272 = arith.constant 272 : index
    %c0_71 = arith.constant 0 : index
    %81 = vector.load %arg12[%c272, %c0_71] : memref<288x256xbf16, #tpu.memory_space<vmem>>, vector<4x256xbf16>
    tpu.vector_store %arg12[%c272, %c0_71], %80 {strides = array<i32>} : memref<288x256xbf16, #tpu.memory_space<vmem>>, vector<4x256xbf16>,
    %c0_72 = arith.constant 0 : index
    %c0_73 = arith.constant 0 : index
    %82 = vector.load %arg4[%c0_72, %c0_73] : memref<8x288xbf16, #tpu.memory_space<vmem>>, vector<8x288xbf16>
    %c0_74 = arith.constant 0 : index
    %c0_75 = arith.constant 0 : index
    %83 = vector.load %arg12[%c0_74, %c0_75] : memref<288x256xbf16, #tpu.memory_space<vmem>>, vector<288x256xbf16>
    %cst_76 = arith.constant dense<0.000000e+00> : vector<8x256xf32>
    %84 = tpu.matmul %82, %83, %cst_76 {dimension_numbers = #tpu.dot_dimension_numbers<[1], [0], [0], [1], [0, 0, 1, 1], [], []>} : vector<8x288xbf16>, vector<288x256xbf16>, vector<8x256xf32> -> vector<8x256xf32>
    %c0_77 = arith.constant 0 : index
    %c0_78 = arith.constant 0 : index
    %85 = vector.load %arg5[%c0_77, %c0_78] : memref<8x1xf32, #tpu.memory_space<vmem>>, vector<8x1xf32>
    %86 = vector.broadcast %85 : vector<8x1xf32> to vector<8x256xf32>
    %87 = arith.addf %84, %86 : vector<8x256xf32>
    %88 = arith.negf %87 : vector<8x256xf32>
    %89 = math.exp %88 : vector<8x256xf32>
    %cst_79 = arith.constant 1.000000e+00 : f32
    %90 = vector.broadcast %cst_79 : f32 to vector<8x256xf32>
    %91 = arith.addf %90, %89 : vector<8x256xf32>
    %92 = arith.divf %90, %91 : vector<8x256xf32>
    %93 = vector.extract_strided_slice %92 {offsets = [0, 0], sizes = [4, 256], strides = [1, 1]} : vector<8x256xf32> to vector<4x256xf32>
    %94 = vector.extract_strided_slice %92 {offsets = [4, 0], sizes = [4, 256], strides = [1, 1]} : vector<8x256xf32> to vector<4x256xf32>
    %c0_80 = arith.constant 0 : index
    %c0_81 = arith.constant 0 : index
    %c128_82 = arith.constant 128 : index
    %95 = vector.load %arg3[%c0_80, %c0_81, %c128_82] : memref<1x4x512xbf16, #tpu.memory_space<vmem>>, vector<1x4x256xbf16>
    %96 = vector.shape_cast %95 : vector<1x4x256xbf16> to vector<4x256xbf16>
    %97 = arith.extf %96 : vector<4x256xbf16> to vector<4x256xf32>
    %98 = arith.mulf %93, %97 : vector<4x256xf32>
    %99 = arith.truncf %98 : vector<4x256xf32> to vector<4x256xbf16>
    %cst_83 = arith.constant 0.000000e+00 : bf16
    %100 = vector.broadcast %cst_83 : bf16 to vector<4x128xbf16>
    %c0_84 = arith.constant 0 : index
    %c0_85 = arith.constant 0 : index
    %101 = vector.load %arg13[%c0_84, %c0_85] : memref<4x512xbf16, #tpu.memory_space<vmem>>, vector<4x128xbf16>
    tpu.vector_store %arg13[%c0_84, %c0_85], %100 {strides = array<i32>} : memref<4x512xbf16, #tpu.memory_space<vmem>>, vector<4x128xbf16>,
    %c0_86 = arith.constant 0 : index
    %c128_87 = arith.constant 128 : index
    %102 = vector.load %arg13[%c0_86, %c128_87] : memref<4x512xbf16, #tpu.memory_space<vmem>>, vector<4x256xbf16>
    tpu.vector_store %arg13[%c0_86, %c128_87], %99 {strides = array<i32>} : memref<4x512xbf16, #tpu.memory_space<vmem>>, vector<4x256xbf16>,
    %cst_88 = arith.constant 0.000000e+00 : bf16
    %103 = vector.broadcast %cst_88 : bf16 to vector<4x128xbf16>
    %c0_89 = arith.constant 0 : index
    %c384 = arith.constant 384 : index
    %104 = vector.load %arg13[%c0_89, %c384] : memref<4x512xbf16, #tpu.memory_space<vmem>>, vector<4x128xbf16>
    tpu.vector_store %arg13[%c0_89, %c384], %103 {strides = array<i32>} : memref<4x512xbf16, #tpu.memory_space<vmem>>, vector<4x128xbf16>,
    %c0_90 = arith.constant 0 : index
    %c111_91 = arith.constant 111 : index
    %105 = vector.load %arg13[%c0_90, %c111_91] : memref<4x512xbf16, #tpu.memory_space<vmem>>, vector<4x256xbf16>
    %106 = vector.broadcast %2 : vector<1x256xbf16> to vector<4x256xbf16>
    %107 = arith.mulf %105, %106 : vector<4x256xbf16>
    %c144_92 = arith.constant 144 : index
    %c0_93 = arith.constant 0 : index
    %108 = vector.load %arg12[%c144_92, %c0_93] : memref<288x256xbf16, #tpu.memory_space<vmem>>, vector<4x256xbf16>
    tpu.vector_store %arg12[%c144_92, %c0_93], %107 {strides = array<i32>} : memref<288x256xbf16, #tpu.memory_space<vmem>>, vector<4x256xbf16>,
    %c0_94 = arith.constant 0 : index
    %c112_95 = arith.constant 112 : index
    %109 = vector.load %arg13[%c0_94, %c112_95] : memref<4x512xbf16, #tpu.memory_space<vmem>>, vector<4x256xbf16>
    %c160_96 = arith.constant 160 : index
    %c0_97 = arith.constant 0 : index
    %110 = vector.load %arg12[%c160_96, %c0_97] : memref<288x256xbf16, #tpu.memory_space<vmem>>, vector<4x256xbf16>
    tpu.vector_store %arg12[%c160_96, %c0_97], %109 {strides = array<i32>} : memref<288x256xbf16, #tpu.memory_space<vmem>>, vector<4x256xbf16>,
    %c0_98 = arith.constant 0 : index
    %c113_99 = arith.constant 113 : index
    %111 = vector.load %arg13[%c0_98, %c113_99] : memref<4x512xbf16, #tpu.memory_space<vmem>>, vector<4x256xbf16>
    %112 = vector.broadcast %3 : vector<1x256xbf16> to vector<4x256xbf16>
    %113 = arith.mulf %111, %112 : vector<4x256xbf16>
    %c176_100 = arith.constant 176 : index
    %c0_101 = arith.constant 0 : index
    %114 = vector.load %arg12[%c176_100, %c0_101] : memref<288x256xbf16, #tpu.memory_space<vmem>>, vector<4x256xbf16>
    tpu.vector_store %arg12[%c176_100, %c0_101], %113 {strides = array<i32>} : memref<288x256xbf16, #tpu.memory_space<vmem>>, vector<4x256xbf16>,
    %c0_102 = arith.constant 0 : index
    %c127_103 = arith.constant 127 : index
    %115 = vector.load %arg13[%c0_102, %c127_103] : memref<4x512xbf16, #tpu.memory_space<vmem>>, vector<4x256xbf16>
    %116 = vector.broadcast %2 : vector<1x256xbf16> to vector<4x256xbf16>
    %117 = arith.mulf %115, %116 : vector<4x256xbf16>
    %c192_104 = arith.constant 192 : index
    %c0_105 = arith.constant 0 : index
    %118 = vector.load %arg12[%c192_104, %c0_105] : memref<288x256xbf16, #tpu.memory_space<vmem>>, vector<4x256xbf16>
    tpu.vector_store %arg12[%c192_104, %c0_105], %117 {strides = array<i32>} : memref<288x256xbf16, #tpu.memory_space<vmem>>, vector<4x256xbf16>,
    %c0_106 = arith.constant 0 : index
    %c128_107 = arith.constant 128 : index
    %119 = vector.load %arg13[%c0_106, %c128_107] : memref<4x512xbf16, #tpu.memory_space<vmem>>, vector<4x256xbf16>
    %c208_108 = arith.constant 208 : index
    %c0_109 = arith.constant 0 : index
    %120 = vector.load %arg12[%c208_108, %c0_109] : memref<288x256xbf16, #tpu.memory_space<vmem>>, vector<4x256xbf16>
    tpu.vector_store %arg12[%c208_108, %c0_109], %119 {strides = array<i32>} : memref<288x256xbf16, #tpu.memory_space<vmem>>, vector<4x256xbf16>,
    %c0_110 = arith.constant 0 : index
    %c129_111 = arith.constant 129 : index
    %121 = vector.load %arg13[%c0_110, %c129_111] : memref<4x512xbf16, #tpu.memory_space<vmem>>, vector<4x256xbf16>
    %122 = vector.broadcast %3 : vector<1x256xbf16> to vector<4x256xbf16>
    %123 = arith.mulf %121, %122 : vector<4x256xbf16>
    %c224_112 = arith.constant 224 : index
    %c0_113 = arith.constant 0 : index
    %124 = vector.load %arg12[%c224_112, %c0_113] : memref<288x256xbf16, #tpu.memory_space<vmem>>, vector<4x256xbf16>
    tpu.vector_store %arg12[%c224_112, %c0_113], %123 {strides = array<i32>} : memref<288x256xbf16, #tpu.memory_space<vmem>>, vector<4x256xbf16>,
    %c0_114 = arith.constant 0 : index
    %c143_115 = arith.constant 143 : index
    %125 = vector.load %arg13[%c0_114, %c143_115] : memref<4x512xbf16, #tpu.memory_space<vmem>>, vector<4x256xbf16>
    %126 = vector.broadcast %2 : vector<1x256xbf16> to vector<4x256xbf16>
    %127 = arith.mulf %125, %126 : vector<4x256xbf16>
    %c240_116 = arith.constant 240 : index
    %c0_117 = arith.constant 0 : index
    %128 = vector.load %arg12[%c240_116, %c0_117] : memref<288x256xbf16, #tpu.memory_space<vmem>>, vector<4x256xbf16>
    tpu.vector_store %arg12[%c240_116, %c0_117], %127 {strides = array<i32>} : memref<288x256xbf16, #tpu.memory_space<vmem>>, vector<4x256xbf16>,
    %c0_118 = arith.constant 0 : index
    %c144_119 = arith.constant 144 : index
    %129 = vector.load %arg13[%c0_118, %c144_119] : memref<4x512xbf16, #tpu.memory_space<vmem>>, vector<4x256xbf16>
    %c256_120 = arith.constant 256 : index
    %c0_121 = arith.constant 0 : index
    %130 = vector.load %arg12[%c256_120, %c0_121] : memref<288x256xbf16, #tpu.memory_space<vmem>>, vector<4x256xbf16>
    tpu.vector_store %arg12[%c256_120, %c0_121], %129 {strides = array<i32>} : memref<288x256xbf16, #tpu.memory_space<vmem>>, vector<4x256xbf16>,
    %c0_122 = arith.constant 0 : index
    %c145_123 = arith.constant 145 : index
    %131 = vector.load %arg13[%c0_122, %c145_123] : memref<4x512xbf16, #tpu.memory_space<vmem>>, vector<4x256xbf16>
    %132 = vector.broadcast %3 : vector<1x256xbf16> to vector<4x256xbf16>
    %133 = arith.mulf %131, %132 : vector<4x256xbf16>
    %c272_124 = arith.constant 272 : index
    %c0_125 = arith.constant 0 : index
    %134 = vector.load %arg12[%c272_124, %c0_125] : memref<288x256xbf16, #tpu.memory_space<vmem>>, vector<4x256xbf16>
    tpu.vector_store %arg12[%c272_124, %c0_125], %133 {strides = array<i32>} : memref<288x256xbf16, #tpu.memory_space<vmem>>, vector<4x256xbf16>,
    %c0_126 = arith.constant 0 : index
    %c0_127 = arith.constant 0 : index
    %135 = vector.load %arg6[%c0_126, %c0_127] : memref<4x288xbf16, #tpu.memory_space<vmem>>, vector<4x288xbf16>
    %c0_128 = arith.constant 0 : index
    %c0_129 = arith.constant 0 : index
    %136 = vector.load %arg12[%c0_128, %c0_129] : memref<288x256xbf16, #tpu.memory_space<vmem>>, vector<288x256xbf16>
    %cst_130 = arith.constant dense<0.000000e+00> : vector<4x256xf32>
    %137 = tpu.matmul %135, %136, %cst_130 {dimension_numbers = #tpu.dot_dimension_numbers<[1], [0], [0], [1], [0, 0, 1, 1], [], []>} : vector<4x288xbf16>, vector<288x256xbf16>, vector<4x256xf32> -> vector<4x256xf32>
    %c0_131 = arith.constant 0 : index
    %c0_132 = arith.constant 0 : index
    %138 = vector.load %arg7[%c0_131, %c0_132] : memref<4x1xf32, #tpu.memory_space<vmem>>, vector<4x1xf32>
    %139 = vector.broadcast %138 : vector<4x1xf32> to vector<4x256xf32>
    %140 = arith.addf %137, %139 : vector<4x256xf32>
    %141 = math.tanh %140 : vector<4x256xf32>
    %cst_133 = arith.constant 1.000000e+00 : f32
    %142 = vector.broadcast %cst_133 : f32 to vector<4x256xf32>
    %143 = arith.subf %142, %94 : vector<4x256xf32>
    %144 = arith.mulf %143, %97 : vector<4x256xf32>
    %145 = arith.mulf %94, %141 : vector<4x256xf32>
    %146 = arith.addf %144, %145 : vector<4x256xf32>
    %c0_134 = arith.constant 0 : index
    %c0_135 = arith.constant 0 : index
    %c0_136 = arith.constant 0 : index
    %147 = vector.load %arg1[%c0_134, %c0_135, %c0_136] : memref<1x4x256xf32, #tpu.memory_space<vmem>>, vector<1x4x256xf32>
    %148 = vector.shape_cast %147 : vector<1x4x256xf32> to vector<4x256xf32>
    %c0_137 = arith.constant 0 : index
    %c0_138 = arith.constant 0 : index
    %c0_139 = arith.constant 0 : index
    %149 = vector.load %arg10[%c0_137, %c0_138, %c0_139] : memref<1x8x256xf32, #tpu.memory_space<vmem>>, vector<1x4x256xf32>
    %150 = vector.shape_cast %149 : vector<1x4x256xf32> to vector<4x256xf32>
    %151 = vector.shape_cast %148 : vector<4x256xf32> to vector<1x4x256xf32>
    tpu.vector_store %arg10[%c0_137, %c0_138, %c0_139], %151 {strides = array<i32>} : memref<1x8x256xf32, #tpu.memory_space<vmem>>, vector<1x4x256xf32>,
    %c0_140 = arith.constant 0 : index
    %c4 = arith.constant 4 : index
    %c0_141 = arith.constant 0 : index
    %152 = vector.load %arg10[%c0_140, %c4, %c0_141] : memref<1x8x256xf32, #tpu.memory_space<vmem>>, vector<1x4x256xf32>
    %153 = vector.shape_cast %152 : vector<1x4x256xf32> to vector<4x256xf32>
    %154 = vector.shape_cast %146 : vector<4x256xf32> to vector<1x4x256xf32>
    tpu.vector_store %arg10[%c0_140, %c4, %c0_141], %154 {strides = array<i32>} : memref<1x8x256xf32, #tpu.memory_space<vmem>>, vector<1x4x256xf32>,
    %c0_142 = arith.constant 0 : index
    %c0_143 = arith.constant 0 : index
    %c0_144 = arith.constant 0 : index
    %155 = vector.load %arg11[%c0_142, %c0_143, %c0_144] : memref<1x4x256xf32, #tpu.memory_space<vmem>>, vector<1x4x256xf32>
    %156 = vector.shape_cast %155 : vector<1x4x256xf32> to vector<4x256xf32>
    %157 = vector.shape_cast %146 : vector<4x256xf32> to vector<1x4x256xf32>
    tpu.vector_store %arg11[%c0_142, %c0_143, %c0_144], %157 {strides = array<i32>} : memref<1x4x256xf32, #tpu.memory_space<vmem>>, vector<1x4x256xf32>,
    return
  }
  func.func @transform_0(%arg0: i32) -> (i32, i32, i32) {
    %c0_i32 = arith.constant 0 : i32
    %c0_i32_0 = arith.constant 0 : i32
    %c0_i32_1 = arith.constant 0 : i32
    return %arg0, %c0_i32, %c0_i32_0 : i32, i32, i32
  }
  func.func @transform_1(%arg0: i32) -> (i32, i32, i32) {
    %c0_i32 = arith.constant 0 : i32
    %c0_i32_0 = arith.constant 0 : i32
    %c0_i32_1 = arith.constant 0 : i32
    return %arg0, %c0_i32, %c0_i32_0 : i32, i32, i32
  }
  func.func @transform_2(%arg0: i32) -> (i32, i32, i32) {
    %c0_i32 = arith.constant 0 : i32
    %c0_i32_0 = arith.constant 0 : i32
    %c0_i32_1 = arith.constant 0 : i32
    return %arg0, %c0_i32, %c0_i32_0 : i32, i32, i32
  }
  func.func @transform_3(%arg0: i32) -> (i32, i32) {
    %c0_i32 = arith.constant 0 : i32
    %c0_i32_0 = arith.constant 0 : i32
    %c0_i32_1 = arith.constant 0 : i32
    return %c0_i32, %c0_i32_0 : i32, i32
  }
  func.func @transform_4(%arg0: i32) -> (i32, i32) {
    %c0_i32 = arith.constant 0 : i32
    %c0_i32_0 = arith.constant 0 : i32
    %c0_i32_1 = arith.constant 0 : i32
    return %c0_i32, %c0_i32_0 : i32, i32
  }
  func.func @transform_5(%arg0: i32) -> (i32, i32) {
    %c0_i32 = arith.constant 0 : i32
    %c0_i32_0 = arith.constant 0 : i32
    %c0_i32_1 = arith.constant 0 : i32
    return %c0_i32, %c0_i32_0 : i32, i32
  }
  func.func @transform_6(%arg0: i32) -> (i32, i32) {
    %c0_i32 = arith.constant 0 : i32
    %c0_i32_0 = arith.constant 0 : i32
    %c0_i32_1 = arith.constant 0 : i32
    return %c0_i32, %c0_i32_0 : i32, i32
  }
  func.func @transform_7(%arg0: i32) -> (i32, i32) {
    %c0_i32 = arith.constant 0 : i32
    %c0_i32_0 = arith.constant 0 : i32
    %c0_i32_1 = arith.constant 0 : i32
    return %c0_i32, %c0_i32_0 : i32, i32
  }
  func.func @transform_8(%arg0: i32) -> (i32, i32) {
    %c0_i32 = arith.constant 0 : i32
    %c0_i32_0 = arith.constant 0 : i32
    %c0_i32_1 = arith.constant 0 : i32
    return %c0_i32, %c0_i32_0 : i32, i32
  }
  func.func @transform_9(%arg0: i32) -> (i32, i32, i32) {
    %c0_i32 = arith.constant 0 : i32
    %c0_i32_0 = arith.constant 0 : i32
    %c0_i32_1 = arith.constant 0 : i32
    return %arg0, %c0_i32, %c0_i32_0 : i32, i32, i32
  }
  func.func @transform_10(%arg0: i32) -> (i32, i32, i32) {
    %c0_i32 = arith.constant 0 : i32
    %c0_i32_0 = arith.constant 0 : i32
    %c0_i32_1 = arith.constant 0 : i32
    return %arg0, %c0_i32, %c0_i32_0 : i32, i32, i32
  }
}

module attributes {stable_mosaic.version = 11 : i64} {
  func.func @_main_conv_kernel(%arg0: i32, %arg1: memref<1x8x512xbf16, #tpu.memory_space<vmem>>, %arg2: memref<1x8x512xbf16, #tpu.memory_space<vmem>>, %arg3: memref<1x4x512xbf16, #tpu.memory_space<vmem>>, %arg4: memref<8x432xbf16, #tpu.memory_space<vmem>>, %arg5: memref<8x1xf32, #tpu.memory_space<vmem>>, %arg6: memref<8x1xf32, #tpu.memory_space<vmem>>, %arg7: memref<8x8xf32, #tpu.memory_space<vmem>>, %arg8: memref<1x256xbf16, #tpu.memory_space<vmem>>, %arg9: memref<1x256xbf16, #tpu.memory_space<vmem>>, %arg10: memref<1x4x256xf32, #tpu.memory_space<vmem>>, %arg11: memref<1x4x512xbf16, #tpu.memory_space<vmem>>, %arg12: memref<432x256xbf16, #tpu.memory_space<vmem>>) attributes {dimension_semantics = [#tpu.dimension_semantics<parallel>], iteration_bounds = array<i64: 2>, scalar_prefetch = 0 : i64, scratch_operands = 1 : i64, tpu.core_type = #tpu.core_type<tc>, window_params = [{transform_indices = @transform_0, window_bounds = array<i64: 1, 8, 512>}, {transform_indices = @transform_1, window_bounds = array<i64: 1, 8, 512>}, {transform_indices = @transform_2, window_bounds = array<i64: 1, 4, 512>}, {pipeline_mode = #tpu.pipeline_mode<synchronous>, transform_indices = @transform_3, window_bounds = array<i64: 8, 432>}, {pipeline_mode = #tpu.pipeline_mode<synchronous>, transform_indices = @transform_4, window_bounds = array<i64: 8, 1>}, {pipeline_mode = #tpu.pipeline_mode<synchronous>, transform_indices = @transform_5, window_bounds = array<i64: 8, 1>}, {pipeline_mode = #tpu.pipeline_mode<synchronous>, transform_indices = @transform_6, window_bounds = array<i64: 8, 8>}, {pipeline_mode = #tpu.pipeline_mode<synchronous>, transform_indices = @transform_7, window_bounds = array<i64: 1, 256>}, {pipeline_mode = #tpu.pipeline_mode<synchronous>, transform_indices = @transform_8, window_bounds = array<i64: 1, 256>}, {transform_indices = @transform_9, window_bounds = array<i64: 1, 4, 256>}, {transform_indices = @transform_10, window_bounds = array<i64: 1, 4, 512>}]} {
    %cst = arith.constant 0.000000e+00 : bf16
    %0 = vector.broadcast %cst : bf16 to vector<432x256xbf16>
    %c0 = arith.constant 0 : index
    %c0_0 = arith.constant 0 : index
    %1 = vector.load %arg12[%c0, %c0_0] : memref<432x256xbf16, #tpu.memory_space<vmem>>, vector<432x256xbf16>
    tpu.vector_store %arg12[%c0, %c0_0], %0 {strides = array<i32>} : memref<432x256xbf16, #tpu.memory_space<vmem>>, vector<432x256xbf16>,
    %c0_1 = arith.constant 0 : index
    %c0_2 = arith.constant 0 : index
    %2 = vector.load %arg8[%c0_1, %c0_2] : memref<1x256xbf16, #tpu.memory_space<vmem>>, vector<1x256xbf16>
    %c0_3 = arith.constant 0 : index
    %c0_4 = arith.constant 0 : index
    %3 = vector.load %arg9[%c0_3, %c0_4] : memref<1x256xbf16, #tpu.memory_space<vmem>>, vector<1x256xbf16>
    %c0_5 = arith.constant 0 : index
    %c0_6 = arith.constant 0 : index
    %c111 = arith.constant 111 : index
    %4 = vector.load %arg1[%c0_5, %c0_6, %c111] : memref<1x8x512xbf16, #tpu.memory_space<vmem>>, vector<1x8x256xbf16>
    %5 = vector.shape_cast %4 : vector<1x8x256xbf16> to vector<8x256xbf16>
    %6 = vector.broadcast %2 : vector<1x256xbf16> to vector<8x256xbf16>
    %7 = arith.mulf %5, %6 : vector<8x256xbf16>
    %c0_7 = arith.constant 0 : index
    %c0_8 = arith.constant 0 : index
    %8 = vector.load %arg12[%c0_7, %c0_8] : memref<432x256xbf16, #tpu.memory_space<vmem>>, vector<8x256xbf16>
    tpu.vector_store %arg12[%c0_7, %c0_8], %7 {strides = array<i32>} : memref<432x256xbf16, #tpu.memory_space<vmem>>, vector<8x256xbf16>,
    %c0_9 = arith.constant 0 : index
    %c0_10 = arith.constant 0 : index
    %c112 = arith.constant 112 : index
    %9 = vector.load %arg1[%c0_9, %c0_10, %c112] : memref<1x8x512xbf16, #tpu.memory_space<vmem>>, vector<1x8x256xbf16>
    %10 = vector.shape_cast %9 : vector<1x8x256xbf16> to vector<8x256xbf16>
    %c16 = arith.constant 16 : index
    %c0_11 = arith.constant 0 : index
    %11 = vector.load %arg12[%c16, %c0_11] : memref<432x256xbf16, #tpu.memory_space<vmem>>, vector<8x256xbf16>
    tpu.vector_store %arg12[%c16, %c0_11], %10 {strides = array<i32>} : memref<432x256xbf16, #tpu.memory_space<vmem>>, vector<8x256xbf16>,
    %c0_12 = arith.constant 0 : index
    %c0_13 = arith.constant 0 : index
    %c113 = arith.constant 113 : index
    %12 = vector.load %arg1[%c0_12, %c0_13, %c113] : memref<1x8x512xbf16, #tpu.memory_space<vmem>>, vector<1x8x256xbf16>
    %13 = vector.shape_cast %12 : vector<1x8x256xbf16> to vector<8x256xbf16>
    %14 = vector.broadcast %3 : vector<1x256xbf16> to vector<8x256xbf16>
    %15 = arith.mulf %13, %14 : vector<8x256xbf16>
    %c32 = arith.constant 32 : index
    %c0_14 = arith.constant 0 : index
    %16 = vector.load %arg12[%c32, %c0_14] : memref<432x256xbf16, #tpu.memory_space<vmem>>, vector<8x256xbf16>
    tpu.vector_store %arg12[%c32, %c0_14], %15 {strides = array<i32>} : memref<432x256xbf16, #tpu.memory_space<vmem>>, vector<8x256xbf16>,
    %c0_15 = arith.constant 0 : index
    %c0_16 = arith.constant 0 : index
    %c127 = arith.constant 127 : index
    %17 = vector.load %arg1[%c0_15, %c0_16, %c127] : memref<1x8x512xbf16, #tpu.memory_space<vmem>>, vector<1x8x256xbf16>
    %18 = vector.shape_cast %17 : vector<1x8x256xbf16> to vector<8x256xbf16>
    %19 = vector.broadcast %2 : vector<1x256xbf16> to vector<8x256xbf16>
    %20 = arith.mulf %18, %19 : vector<8x256xbf16>
    %c48 = arith.constant 48 : index
    %c0_17 = arith.constant 0 : index
    %21 = vector.load %arg12[%c48, %c0_17] : memref<432x256xbf16, #tpu.memory_space<vmem>>, vector<8x256xbf16>
    tpu.vector_store %arg12[%c48, %c0_17], %20 {strides = array<i32>} : memref<432x256xbf16, #tpu.memory_space<vmem>>, vector<8x256xbf16>,
    %c0_18 = arith.constant 0 : index
    %c0_19 = arith.constant 0 : index
    %c128 = arith.constant 128 : index
    %22 = vector.load %arg1[%c0_18, %c0_19, %c128] : memref<1x8x512xbf16, #tpu.memory_space<vmem>>, vector<1x8x256xbf16>
    %23 = vector.shape_cast %22 : vector<1x8x256xbf16> to vector<8x256xbf16>
    %c64 = arith.constant 64 : index
    %c0_20 = arith.constant 0 : index
    %24 = vector.load %arg12[%c64, %c0_20] : memref<432x256xbf16, #tpu.memory_space<vmem>>, vector<8x256xbf16>
    tpu.vector_store %arg12[%c64, %c0_20], %23 {strides = array<i32>} : memref<432x256xbf16, #tpu.memory_space<vmem>>, vector<8x256xbf16>,
    %c0_21 = arith.constant 0 : index
    %c0_22 = arith.constant 0 : index
    %c129 = arith.constant 129 : index
    %25 = vector.load %arg1[%c0_21, %c0_22, %c129] : memref<1x8x512xbf16, #tpu.memory_space<vmem>>, vector<1x8x256xbf16>
    %26 = vector.shape_cast %25 : vector<1x8x256xbf16> to vector<8x256xbf16>
    %27 = vector.broadcast %3 : vector<1x256xbf16> to vector<8x256xbf16>
    %28 = arith.mulf %26, %27 : vector<8x256xbf16>
    %c80 = arith.constant 80 : index
    %c0_23 = arith.constant 0 : index
    %29 = vector.load %arg12[%c80, %c0_23] : memref<432x256xbf16, #tpu.memory_space<vmem>>, vector<8x256xbf16>
    tpu.vector_store %arg12[%c80, %c0_23], %28 {strides = array<i32>} : memref<432x256xbf16, #tpu.memory_space<vmem>>, vector<8x256xbf16>,
    %c0_24 = arith.constant 0 : index
    %c0_25 = arith.constant 0 : index
    %c143 = arith.constant 143 : index
    %30 = vector.load %arg1[%c0_24, %c0_25, %c143] : memref<1x8x512xbf16, #tpu.memory_space<vmem>>, vector<1x8x256xbf16>
    %31 = vector.shape_cast %30 : vector<1x8x256xbf16> to vector<8x256xbf16>
    %32 = vector.broadcast %2 : vector<1x256xbf16> to vector<8x256xbf16>
    %33 = arith.mulf %31, %32 : vector<8x256xbf16>
    %c96 = arith.constant 96 : index
    %c0_26 = arith.constant 0 : index
    %34 = vector.load %arg12[%c96, %c0_26] : memref<432x256xbf16, #tpu.memory_space<vmem>>, vector<8x256xbf16>
    tpu.vector_store %arg12[%c96, %c0_26], %33 {strides = array<i32>} : memref<432x256xbf16, #tpu.memory_space<vmem>>, vector<8x256xbf16>,
    %c0_27 = arith.constant 0 : index
    %c0_28 = arith.constant 0 : index
    %c144 = arith.constant 144 : index
    %35 = vector.load %arg1[%c0_27, %c0_28, %c144] : memref<1x8x512xbf16, #tpu.memory_space<vmem>>, vector<1x8x256xbf16>
    %36 = vector.shape_cast %35 : vector<1x8x256xbf16> to vector<8x256xbf16>
    %c112_29 = arith.constant 112 : index
    %c0_30 = arith.constant 0 : index
    %37 = vector.load %arg12[%c112_29, %c0_30] : memref<432x256xbf16, #tpu.memory_space<vmem>>, vector<8x256xbf16>
    tpu.vector_store %arg12[%c112_29, %c0_30], %36 {strides = array<i32>} : memref<432x256xbf16, #tpu.memory_space<vmem>>, vector<8x256xbf16>,
    %c0_31 = arith.constant 0 : index
    %c0_32 = arith.constant 0 : index
    %c145 = arith.constant 145 : index
    %38 = vector.load %arg1[%c0_31, %c0_32, %c145] : memref<1x8x512xbf16, #tpu.memory_space<vmem>>, vector<1x8x256xbf16>
    %39 = vector.shape_cast %38 : vector<1x8x256xbf16> to vector<8x256xbf16>
    %40 = vector.broadcast %3 : vector<1x256xbf16> to vector<8x256xbf16>
    %41 = arith.mulf %39, %40 : vector<8x256xbf16>
    %c128_33 = arith.constant 128 : index
    %c0_34 = arith.constant 0 : index
    %42 = vector.load %arg12[%c128_33, %c0_34] : memref<432x256xbf16, #tpu.memory_space<vmem>>, vector<8x256xbf16>
    tpu.vector_store %arg12[%c128_33, %c0_34], %41 {strides = array<i32>} : memref<432x256xbf16, #tpu.memory_space<vmem>>, vector<8x256xbf16>,
    %c0_35 = arith.constant 0 : index
    %c0_36 = arith.constant 0 : index
    %c111_37 = arith.constant 111 : index
    %43 = vector.load %arg2[%c0_35, %c0_36, %c111_37] : memref<1x8x512xbf16, #tpu.memory_space<vmem>>, vector<1x8x256xbf16>
    %44 = vector.shape_cast %43 : vector<1x8x256xbf16> to vector<8x256xbf16>
    %45 = vector.broadcast %2 : vector<1x256xbf16> to vector<8x256xbf16>
    %46 = arith.mulf %44, %45 : vector<8x256xbf16>
    %c144_38 = arith.constant 144 : index
    %c0_39 = arith.constant 0 : index
    %47 = vector.load %arg12[%c144_38, %c0_39] : memref<432x256xbf16, #tpu.memory_space<vmem>>, vector<8x256xbf16>
    tpu.vector_store %arg12[%c144_38, %c0_39], %46 {strides = array<i32>} : memref<432x256xbf16, #tpu.memory_space<vmem>>, vector<8x256xbf16>,
    %c0_40 = arith.constant 0 : index
    %c0_41 = arith.constant 0 : index
    %c112_42 = arith.constant 112 : index
    %48 = vector.load %arg2[%c0_40, %c0_41, %c112_42] : memref<1x8x512xbf16, #tpu.memory_space<vmem>>, vector<1x8x256xbf16>
    %49 = vector.shape_cast %48 : vector<1x8x256xbf16> to vector<8x256xbf16>
    %c160 = arith.constant 160 : index
    %c0_43 = arith.constant 0 : index
    %50 = vector.load %arg12[%c160, %c0_43] : memref<432x256xbf16, #tpu.memory_space<vmem>>, vector<8x256xbf16>
    tpu.vector_store %arg12[%c160, %c0_43], %49 {strides = array<i32>} : memref<432x256xbf16, #tpu.memory_space<vmem>>, vector<8x256xbf16>,
    %c0_44 = arith.constant 0 : index
    %c0_45 = arith.constant 0 : index
    %c113_46 = arith.constant 113 : index
    %51 = vector.load %arg2[%c0_44, %c0_45, %c113_46] : memref<1x8x512xbf16, #tpu.memory_space<vmem>>, vector<1x8x256xbf16>
    %52 = vector.shape_cast %51 : vector<1x8x256xbf16> to vector<8x256xbf16>
    %53 = vector.broadcast %3 : vector<1x256xbf16> to vector<8x256xbf16>
    %54 = arith.mulf %52, %53 : vector<8x256xbf16>
    %c176 = arith.constant 176 : index
    %c0_47 = arith.constant 0 : index
    %55 = vector.load %arg12[%c176, %c0_47] : memref<432x256xbf16, #tpu.memory_space<vmem>>, vector<8x256xbf16>
    tpu.vector_store %arg12[%c176, %c0_47], %54 {strides = array<i32>} : memref<432x256xbf16, #tpu.memory_space<vmem>>, vector<8x256xbf16>,
    %c0_48 = arith.constant 0 : index
    %c0_49 = arith.constant 0 : index
    %c127_50 = arith.constant 127 : index
    %56 = vector.load %arg2[%c0_48, %c0_49, %c127_50] : memref<1x8x512xbf16, #tpu.memory_space<vmem>>, vector<1x8x256xbf16>
    %57 = vector.shape_cast %56 : vector<1x8x256xbf16> to vector<8x256xbf16>
    %58 = vector.broadcast %2 : vector<1x256xbf16> to vector<8x256xbf16>
    %59 = arith.mulf %57, %58 : vector<8x256xbf16>
    %c192 = arith.constant 192 : index
    %c0_51 = arith.constant 0 : index
    %60 = vector.load %arg12[%c192, %c0_51] : memref<432x256xbf16, #tpu.memory_space<vmem>>, vector<8x256xbf16>
    tpu.vector_store %arg12[%c192, %c0_51], %59 {strides = array<i32>} : memref<432x256xbf16, #tpu.memory_space<vmem>>, vector<8x256xbf16>,
    %c0_52 = arith.constant 0 : index
    %c0_53 = arith.constant 0 : index
    %c128_54 = arith.constant 128 : index
    %61 = vector.load %arg2[%c0_52, %c0_53, %c128_54] : memref<1x8x512xbf16, #tpu.memory_space<vmem>>, vector<1x8x256xbf16>
    %62 = vector.shape_cast %61 : vector<1x8x256xbf16> to vector<8x256xbf16>
    %c208 = arith.constant 208 : index
    %c0_55 = arith.constant 0 : index
    %63 = vector.load %arg12[%c208, %c0_55] : memref<432x256xbf16, #tpu.memory_space<vmem>>, vector<8x256xbf16>
    tpu.vector_store %arg12[%c208, %c0_55], %62 {strides = array<i32>} : memref<432x256xbf16, #tpu.memory_space<vmem>>, vector<8x256xbf16>,
    %c0_56 = arith.constant 0 : index
    %c0_57 = arith.constant 0 : index
    %c129_58 = arith.constant 129 : index
    %64 = vector.load %arg2[%c0_56, %c0_57, %c129_58] : memref<1x8x512xbf16, #tpu.memory_space<vmem>>, vector<1x8x256xbf16>
    %65 = vector.shape_cast %64 : vector<1x8x256xbf16> to vector<8x256xbf16>
    %66 = vector.broadcast %3 : vector<1x256xbf16> to vector<8x256xbf16>
    %67 = arith.mulf %65, %66 : vector<8x256xbf16>
    %c224 = arith.constant 224 : index
    %c0_59 = arith.constant 0 : index
    %68 = vector.load %arg12[%c224, %c0_59] : memref<432x256xbf16, #tpu.memory_space<vmem>>, vector<8x256xbf16>
    tpu.vector_store %arg12[%c224, %c0_59], %67 {strides = array<i32>} : memref<432x256xbf16, #tpu.memory_space<vmem>>, vector<8x256xbf16>,
    %c0_60 = arith.constant 0 : index
    %c0_61 = arith.constant 0 : index
    %c143_62 = arith.constant 143 : index
    %69 = vector.load %arg2[%c0_60, %c0_61, %c143_62] : memref<1x8x512xbf16, #tpu.memory_space<vmem>>, vector<1x8x256xbf16>
    %70 = vector.shape_cast %69 : vector<1x8x256xbf16> to vector<8x256xbf16>
    %71 = vector.broadcast %2 : vector<1x256xbf16> to vector<8x256xbf16>
    %72 = arith.mulf %70, %71 : vector<8x256xbf16>
    %c240 = arith.constant 240 : index
    %c0_63 = arith.constant 0 : index
    %73 = vector.load %arg12[%c240, %c0_63] : memref<432x256xbf16, #tpu.memory_space<vmem>>, vector<8x256xbf16>
    tpu.vector_store %arg12[%c240, %c0_63], %72 {strides = array<i32>} : memref<432x256xbf16, #tpu.memory_space<vmem>>, vector<8x256xbf16>,
    %c0_64 = arith.constant 0 : index
    %c0_65 = arith.constant 0 : index
    %c144_66 = arith.constant 144 : index
    %74 = vector.load %arg2[%c0_64, %c0_65, %c144_66] : memref<1x8x512xbf16, #tpu.memory_space<vmem>>, vector<1x8x256xbf16>
    %75 = vector.shape_cast %74 : vector<1x8x256xbf16> to vector<8x256xbf16>
    %c256 = arith.constant 256 : index
    %c0_67 = arith.constant 0 : index
    %76 = vector.load %arg12[%c256, %c0_67] : memref<432x256xbf16, #tpu.memory_space<vmem>>, vector<8x256xbf16>
    tpu.vector_store %arg12[%c256, %c0_67], %75 {strides = array<i32>} : memref<432x256xbf16, #tpu.memory_space<vmem>>, vector<8x256xbf16>,
    %c0_68 = arith.constant 0 : index
    %c0_69 = arith.constant 0 : index
    %c145_70 = arith.constant 145 : index
    %77 = vector.load %arg2[%c0_68, %c0_69, %c145_70] : memref<1x8x512xbf16, #tpu.memory_space<vmem>>, vector<1x8x256xbf16>
    %78 = vector.shape_cast %77 : vector<1x8x256xbf16> to vector<8x256xbf16>
    %79 = vector.broadcast %3 : vector<1x256xbf16> to vector<8x256xbf16>
    %80 = arith.mulf %78, %79 : vector<8x256xbf16>
    %c272 = arith.constant 272 : index
    %c0_71 = arith.constant 0 : index
    %81 = vector.load %arg12[%c272, %c0_71] : memref<432x256xbf16, #tpu.memory_space<vmem>>, vector<8x256xbf16>
    tpu.vector_store %arg12[%c272, %c0_71], %80 {strides = array<i32>} : memref<432x256xbf16, #tpu.memory_space<vmem>>, vector<8x256xbf16>,
    %c0_72 = arith.constant 0 : index
    %c0_73 = arith.constant 0 : index
    %c111_74 = arith.constant 111 : index
    %82 = vector.load %arg3[%c0_72, %c0_73, %c111_74] : memref<1x4x512xbf16, #tpu.memory_space<vmem>>, vector<1x4x256xbf16>
    %83 = vector.shape_cast %82 : vector<1x4x256xbf16> to vector<4x256xbf16>
    %84 = vector.broadcast %2 : vector<1x256xbf16> to vector<4x256xbf16>
    %85 = arith.mulf %83, %84 : vector<4x256xbf16>
    %c288 = arith.constant 288 : index
    %c0_75 = arith.constant 0 : index
    %86 = vector.load %arg12[%c288, %c0_75] : memref<432x256xbf16, #tpu.memory_space<vmem>>, vector<4x256xbf16>
    tpu.vector_store %arg12[%c288, %c0_75], %85 {strides = array<i32>} : memref<432x256xbf16, #tpu.memory_space<vmem>>, vector<4x256xbf16>,
    %c0_76 = arith.constant 0 : index
    %c0_77 = arith.constant 0 : index
    %c112_78 = arith.constant 112 : index
    %87 = vector.load %arg3[%c0_76, %c0_77, %c112_78] : memref<1x4x512xbf16, #tpu.memory_space<vmem>>, vector<1x4x256xbf16>
    %88 = vector.shape_cast %87 : vector<1x4x256xbf16> to vector<4x256xbf16>
    %c304 = arith.constant 304 : index
    %c0_79 = arith.constant 0 : index
    %89 = vector.load %arg12[%c304, %c0_79] : memref<432x256xbf16, #tpu.memory_space<vmem>>, vector<4x256xbf16>
    tpu.vector_store %arg12[%c304, %c0_79], %88 {strides = array<i32>} : memref<432x256xbf16, #tpu.memory_space<vmem>>, vector<4x256xbf16>,
    %c0_80 = arith.constant 0 : index
    %c0_81 = arith.constant 0 : index
    %c113_82 = arith.constant 113 : index
    %90 = vector.load %arg3[%c0_80, %c0_81, %c113_82] : memref<1x4x512xbf16, #tpu.memory_space<vmem>>, vector<1x4x256xbf16>
    %91 = vector.shape_cast %90 : vector<1x4x256xbf16> to vector<4x256xbf16>
    %92 = vector.broadcast %3 : vector<1x256xbf16> to vector<4x256xbf16>
    %93 = arith.mulf %91, %92 : vector<4x256xbf16>
    %c320 = arith.constant 320 : index
    %c0_83 = arith.constant 0 : index
    %94 = vector.load %arg12[%c320, %c0_83] : memref<432x256xbf16, #tpu.memory_space<vmem>>, vector<4x256xbf16>
    tpu.vector_store %arg12[%c320, %c0_83], %93 {strides = array<i32>} : memref<432x256xbf16, #tpu.memory_space<vmem>>, vector<4x256xbf16>,
    %c0_84 = arith.constant 0 : index
    %c0_85 = arith.constant 0 : index
    %c127_86 = arith.constant 127 : index
    %95 = vector.load %arg3[%c0_84, %c0_85, %c127_86] : memref<1x4x512xbf16, #tpu.memory_space<vmem>>, vector<1x4x256xbf16>
    %96 = vector.shape_cast %95 : vector<1x4x256xbf16> to vector<4x256xbf16>
    %97 = vector.broadcast %2 : vector<1x256xbf16> to vector<4x256xbf16>
    %98 = arith.mulf %96, %97 : vector<4x256xbf16>
    %c336 = arith.constant 336 : index
    %c0_87 = arith.constant 0 : index
    %99 = vector.load %arg12[%c336, %c0_87] : memref<432x256xbf16, #tpu.memory_space<vmem>>, vector<4x256xbf16>
    tpu.vector_store %arg12[%c336, %c0_87], %98 {strides = array<i32>} : memref<432x256xbf16, #tpu.memory_space<vmem>>, vector<4x256xbf16>,
    %c0_88 = arith.constant 0 : index
    %c0_89 = arith.constant 0 : index
    %c128_90 = arith.constant 128 : index
    %100 = vector.load %arg3[%c0_88, %c0_89, %c128_90] : memref<1x4x512xbf16, #tpu.memory_space<vmem>>, vector<1x4x256xbf16>
    %101 = vector.shape_cast %100 : vector<1x4x256xbf16> to vector<4x256xbf16>
    %c352 = arith.constant 352 : index
    %c0_91 = arith.constant 0 : index
    %102 = vector.load %arg12[%c352, %c0_91] : memref<432x256xbf16, #tpu.memory_space<vmem>>, vector<4x256xbf16>
    tpu.vector_store %arg12[%c352, %c0_91], %101 {strides = array<i32>} : memref<432x256xbf16, #tpu.memory_space<vmem>>, vector<4x256xbf16>,
    %c0_92 = arith.constant 0 : index
    %c0_93 = arith.constant 0 : index
    %c129_94 = arith.constant 129 : index
    %103 = vector.load %arg3[%c0_92, %c0_93, %c129_94] : memref<1x4x512xbf16, #tpu.memory_space<vmem>>, vector<1x4x256xbf16>
    %104 = vector.shape_cast %103 : vector<1x4x256xbf16> to vector<4x256xbf16>
    %105 = vector.broadcast %3 : vector<1x256xbf16> to vector<4x256xbf16>
    %106 = arith.mulf %104, %105 : vector<4x256xbf16>
    %c368 = arith.constant 368 : index
    %c0_95 = arith.constant 0 : index
    %107 = vector.load %arg12[%c368, %c0_95] : memref<432x256xbf16, #tpu.memory_space<vmem>>, vector<4x256xbf16>
    tpu.vector_store %arg12[%c368, %c0_95], %106 {strides = array<i32>} : memref<432x256xbf16, #tpu.memory_space<vmem>>, vector<4x256xbf16>,
    %c0_96 = arith.constant 0 : index
    %c0_97 = arith.constant 0 : index
    %c143_98 = arith.constant 143 : index
    %108 = vector.load %arg3[%c0_96, %c0_97, %c143_98] : memref<1x4x512xbf16, #tpu.memory_space<vmem>>, vector<1x4x256xbf16>
    %109 = vector.shape_cast %108 : vector<1x4x256xbf16> to vector<4x256xbf16>
    %110 = vector.broadcast %2 : vector<1x256xbf16> to vector<4x256xbf16>
    %111 = arith.mulf %109, %110 : vector<4x256xbf16>
    %c384 = arith.constant 384 : index
    %c0_99 = arith.constant 0 : index
    %112 = vector.load %arg12[%c384, %c0_99] : memref<432x256xbf16, #tpu.memory_space<vmem>>, vector<4x256xbf16>
    tpu.vector_store %arg12[%c384, %c0_99], %111 {strides = array<i32>} : memref<432x256xbf16, #tpu.memory_space<vmem>>, vector<4x256xbf16>,
    %c0_100 = arith.constant 0 : index
    %c0_101 = arith.constant 0 : index
    %c144_102 = arith.constant 144 : index
    %113 = vector.load %arg3[%c0_100, %c0_101, %c144_102] : memref<1x4x512xbf16, #tpu.memory_space<vmem>>, vector<1x4x256xbf16>
    %114 = vector.shape_cast %113 : vector<1x4x256xbf16> to vector<4x256xbf16>
    %c400 = arith.constant 400 : index
    %c0_103 = arith.constant 0 : index
    %115 = vector.load %arg12[%c400, %c0_103] : memref<432x256xbf16, #tpu.memory_space<vmem>>, vector<4x256xbf16>
    tpu.vector_store %arg12[%c400, %c0_103], %114 {strides = array<i32>} : memref<432x256xbf16, #tpu.memory_space<vmem>>, vector<4x256xbf16>,
    %c0_104 = arith.constant 0 : index
    %c0_105 = arith.constant 0 : index
    %c145_106 = arith.constant 145 : index
    %116 = vector.load %arg3[%c0_104, %c0_105, %c145_106] : memref<1x4x512xbf16, #tpu.memory_space<vmem>>, vector<1x4x256xbf16>
    %117 = vector.shape_cast %116 : vector<1x4x256xbf16> to vector<4x256xbf16>
    %118 = vector.broadcast %3 : vector<1x256xbf16> to vector<4x256xbf16>
    %119 = arith.mulf %117, %118 : vector<4x256xbf16>
    %c416 = arith.constant 416 : index
    %c0_107 = arith.constant 0 : index
    %120 = vector.load %arg12[%c416, %c0_107] : memref<432x256xbf16, #tpu.memory_space<vmem>>, vector<4x256xbf16>
    tpu.vector_store %arg12[%c416, %c0_107], %119 {strides = array<i32>} : memref<432x256xbf16, #tpu.memory_space<vmem>>, vector<4x256xbf16>,
    %c0_108 = arith.constant 0 : index
    %c0_109 = arith.constant 0 : index
    %121 = vector.load %arg4[%c0_108, %c0_109] : memref<8x432xbf16, #tpu.memory_space<vmem>>, vector<8x432xbf16>
    %c0_110 = arith.constant 0 : index
    %c0_111 = arith.constant 0 : index
    %122 = vector.load %arg12[%c0_110, %c0_111] : memref<432x256xbf16, #tpu.memory_space<vmem>>, vector<432x256xbf16>
    %cst_112 = arith.constant dense<0.000000e+00> : vector<8x256xf32>
    %123 = tpu.matmul %121, %122, %cst_112 {dimension_numbers = #tpu.dot_dimension_numbers<[1], [0], [0], [1], [0, 0, 1, 1], [], []>} : vector<8x432xbf16>, vector<432x256xbf16>, vector<8x256xf32> -> vector<8x256xf32>
    %c0_113 = arith.constant 0 : index
    %c0_114 = arith.constant 0 : index
    %124 = vector.load %arg7[%c0_113, %c0_114] : memref<8x8xf32, #tpu.memory_space<vmem>>, vector<8x8xf32>
    %c0_115 = arith.constant 0 : index
    %c0_116 = arith.constant 0 : index
    %125 = vector.load %arg5[%c0_115, %c0_116] : memref<8x1xf32, #tpu.memory_space<vmem>>, vector<8x1xf32>
    %c0_117 = arith.constant 0 : index
    %c0_118 = arith.constant 0 : index
    %126 = vector.load %arg6[%c0_117, %c0_118] : memref<8x1xf32, #tpu.memory_space<vmem>>, vector<8x1xf32>
    %cst_119 = arith.constant dense<0.000000e+00> : vector<8xf32>
    %127 = vector.multi_reduction <add>, %123, %cst_119 [1] : vector<8x256xf32> to vector<8xf32>
    %128 = vector.shape_cast %127 : vector<8xf32> to vector<8x1xf32>
    %cst_120 = arith.constant 3.906250e-03 : f32
    %129 = vector.broadcast %cst_120 : f32 to vector<8x1xf32>
    %130 = arith.mulf %128, %129 : vector<8x1xf32>
    %cst_121 = arith.constant dense<0.000000e+00> : vector<8x1xf32>
    %131 = tpu.matmul %124, %130, %cst_121 {dimension_numbers = #tpu.dot_dimension_numbers<[1], [0], [0], [1], [0, 0, 1, 1], [], []>} : vector<8x8xf32>, vector<8x1xf32>, vector<8x1xf32> -> vector<8x1xf32>
    %132 = vector.broadcast %131 : vector<8x1xf32> to vector<8x256xf32>
    %133 = arith.subf %123, %132 : vector<8x256xf32>
    %134 = arith.mulf %133, %133 : vector<8x256xf32>
    %cst_122 = arith.constant dense<0.000000e+00> : vector<8xf32>
    %135 = vector.multi_reduction <add>, %134, %cst_122 [1] : vector<8x256xf32> to vector<8xf32>
    %136 = vector.shape_cast %135 : vector<8xf32> to vector<8x1xf32>
    %cst_123 = arith.constant 3.906250e-03 : f32
    %137 = vector.broadcast %cst_123 : f32 to vector<8x1xf32>
    %138 = arith.mulf %136, %137 : vector<8x1xf32>
    %cst_124 = arith.constant dense<0.000000e+00> : vector<8x1xf32>
    %139 = tpu.matmul %124, %138, %cst_124 {dimension_numbers = #tpu.dot_dimension_numbers<[1], [0], [0], [1], [0, 0, 1, 1], [], []>} : vector<8x8xf32>, vector<8x1xf32>, vector<8x1xf32> -> vector<8x1xf32>
    %cst_125 = arith.constant 9.99999974E-6 : f32
    %140 = vector.broadcast %cst_125 : f32 to vector<8x1xf32>
    %141 = arith.addf %139, %140 : vector<8x1xf32>
    %142 = math.rsqrt %141 : vector<8x1xf32>
    %143 = vector.broadcast %142 : vector<8x1xf32> to vector<8x256xf32>
    %144 = arith.mulf %133, %143 : vector<8x256xf32>
    %145 = vector.broadcast %125 : vector<8x1xf32> to vector<8x256xf32>
    %146 = arith.mulf %144, %145 : vector<8x256xf32>
    %147 = vector.broadcast %126 : vector<8x1xf32> to vector<8x256xf32>
    %148 = arith.addf %146, %147 : vector<8x256xf32>
    %cst_126 = arith.constant 3.000000e+00 : f32
    %149 = vector.broadcast %cst_126 : f32 to vector<8x256xf32>
    %150 = arith.addf %148, %149 : vector<8x256xf32>
    %cst_127 = arith.constant 0.000000e+00 : f32
    %cst_128 = arith.constant 6.000000e+00 : f32
    %151 = vector.broadcast %cst_127 : f32 to vector<8x256xf32>
    %152 = arith.maximumf %151, %150 : vector<8x256xf32>
    %153 = vector.broadcast %cst_128 : f32 to vector<8x256xf32>
    %154 = arith.minimumf %153, %152 : vector<8x256xf32>
    %155 = arith.mulf %148, %154 : vector<8x256xf32>
    %cst_129 = arith.constant 0.166666672 : f32
    %156 = vector.broadcast %cst_129 : f32 to vector<8x256xf32>
    %157 = arith.mulf %155, %156 : vector<8x256xf32>
    %158 = vector.extract_strided_slice %157 {offsets = [0, 0], sizes = [4, 256], strides = [1, 1]} : vector<8x256xf32> to vector<4x256xf32>
    %c0_130 = arith.constant 0 : index
    %c0_131 = arith.constant 0 : index
    %c0_132 = arith.constant 0 : index
    %159 = vector.load %arg10[%c0_130, %c0_131, %c0_132] : memref<1x4x256xf32, #tpu.memory_space<vmem>>, vector<1x4x256xf32>
    %160 = vector.shape_cast %159 : vector<1x4x256xf32> to vector<4x256xf32>
    %161 = vector.shape_cast %158 : vector<4x256xf32> to vector<1x4x256xf32>
    tpu.vector_store %arg10[%c0_130, %c0_131, %c0_132], %161 {strides = array<i32>} : memref<1x4x256xf32, #tpu.memory_space<vmem>>, vector<1x4x256xf32>,
    %162 = vector.extract_strided_slice %157 {offsets = [4, 0], sizes = [4, 256], strides = [1, 1]} : vector<8x256xf32> to vector<4x256xf32>
    %163 = arith.truncf %162 : vector<4x256xf32> to vector<4x256xbf16>
    %cst_133 = arith.constant 0.000000e+00 : bf16
    %164 = vector.broadcast %cst_133 : bf16 to vector<4x128xbf16>
    %c0_i32 = arith.constant 0 : i32
    %c0_i32_134 = arith.constant 0 : i32
    %c0_i32_135 = arith.constant 0 : i32
    %165 = tpu.memref_slice %arg11[%c0_i32, %c0_i32_134, %c0_i32_135] : memref<1x4x512xbf16, #tpu.memory_space<vmem>> -> memref<1x4x512xbf16, #tpu.memory_space<vmem>>
    %166 = tpu.memref_squeeze %165 : memref<1x4x512xbf16, #tpu.memory_space<vmem>> -> memref<4x512xbf16, #tpu.memory_space<vmem>>
    %c0_136 = arith.constant 0 : index
    %c0_137 = arith.constant 0 : index
    %167 = vector.load %166[%c0_136, %c0_137] : memref<4x512xbf16, #tpu.memory_space<vmem>>, vector<4x128xbf16>
    tpu.vector_store %166[%c0_136, %c0_137], %164 {strides = array<i32>} : memref<4x512xbf16, #tpu.memory_space<vmem>>, vector<4x128xbf16>,
    %c0_i32_138 = arith.constant 0 : i32
    %c0_i32_139 = arith.constant 0 : i32
    %c0_i32_140 = arith.constant 0 : i32
    %168 = tpu.memref_slice %arg11[%c0_i32_138, %c0_i32_139, %c0_i32_140] : memref<1x4x512xbf16, #tpu.memory_space<vmem>> -> memref<1x4x512xbf16, #tpu.memory_space<vmem>>
    %169 = tpu.memref_squeeze %168 : memref<1x4x512xbf16, #tpu.memory_space<vmem>> -> memref<4x512xbf16, #tpu.memory_space<vmem>>
    %c0_141 = arith.constant 0 : index
    %c128_142 = arith.constant 128 : index
    %170 = vector.load %169[%c0_141, %c128_142] : memref<4x512xbf16, #tpu.memory_space<vmem>>, vector<4x256xbf16>
    tpu.vector_store %169[%c0_141, %c128_142], %163 {strides = array<i32>} : memref<4x512xbf16, #tpu.memory_space<vmem>>, vector<4x256xbf16>,
    %cst_143 = arith.constant 0.000000e+00 : bf16
    %171 = vector.broadcast %cst_143 : bf16 to vector<4x128xbf16>
    %c0_i32_144 = arith.constant 0 : i32
    %c0_i32_145 = arith.constant 0 : i32
    %c0_i32_146 = arith.constant 0 : i32
    %172 = tpu.memref_slice %arg11[%c0_i32_144, %c0_i32_145, %c0_i32_146] : memref<1x4x512xbf16, #tpu.memory_space<vmem>> -> memref<1x4x512xbf16, #tpu.memory_space<vmem>>
    %173 = tpu.memref_squeeze %172 : memref<1x4x512xbf16, #tpu.memory_space<vmem>> -> memref<4x512xbf16, #tpu.memory_space<vmem>>
    %c0_147 = arith.constant 0 : index
    %c384_148 = arith.constant 384 : index
    %174 = vector.load %173[%c0_147, %c384_148] : memref<4x512xbf16, #tpu.memory_space<vmem>>, vector<4x128xbf16>
    tpu.vector_store %173[%c0_147, %c384_148], %171 {strides = array<i32>} : memref<4x512xbf16, #tpu.memory_space<vmem>>, vector<4x128xbf16>,
    return
  }
  func.func @transform_0(%arg0: i32) -> (i32, i32, i32) {
    %c0_i32 = arith.constant 0 : i32
    %c0_i32_0 = arith.constant 0 : i32
    %c0_i32_1 = arith.constant 0 : i32
    return %arg0, %c0_i32, %c0_i32_0 : i32, i32, i32
  }
  func.func @transform_1(%arg0: i32) -> (i32, i32, i32) {
    %c0_i32 = arith.constant 0 : i32
    %c0_i32_0 = arith.constant 0 : i32
    %c0_i32_1 = arith.constant 0 : i32
    return %arg0, %c0_i32, %c0_i32_0 : i32, i32, i32
  }
  func.func @transform_2(%arg0: i32) -> (i32, i32, i32) {
    %c0_i32 = arith.constant 0 : i32
    %c0_i32_0 = arith.constant 0 : i32
    %c0_i32_1 = arith.constant 0 : i32
    return %arg0, %c0_i32, %c0_i32_0 : i32, i32, i32
  }
  func.func @transform_3(%arg0: i32) -> (i32, i32) {
    %c0_i32 = arith.constant 0 : i32
    %c0_i32_0 = arith.constant 0 : i32
    %c0_i32_1 = arith.constant 0 : i32
    return %c0_i32, %c0_i32_0 : i32, i32
  }
  func.func @transform_4(%arg0: i32) -> (i32, i32) {
    %c0_i32 = arith.constant 0 : i32
    %c0_i32_0 = arith.constant 0 : i32
    %c0_i32_1 = arith.constant 0 : i32
    return %c0_i32, %c0_i32_0 : i32, i32
  }
  func.func @transform_5(%arg0: i32) -> (i32, i32) {
    %c0_i32 = arith.constant 0 : i32
    %c0_i32_0 = arith.constant 0 : i32
    %c0_i32_1 = arith.constant 0 : i32
    return %c0_i32, %c0_i32_0 : i32, i32
  }
  func.func @transform_6(%arg0: i32) -> (i32, i32) {
    %c0_i32 = arith.constant 0 : i32
    %c0_i32_0 = arith.constant 0 : i32
    %c0_i32_1 = arith.constant 0 : i32
    return %c0_i32, %c0_i32_0 : i32, i32
  }
  func.func @transform_7(%arg0: i32) -> (i32, i32) {
    %c0_i32 = arith.constant 0 : i32
    %c0_i32_0 = arith.constant 0 : i32
    %c0_i32_1 = arith.constant 0 : i32
    return %c0_i32, %c0_i32_0 : i32, i32
  }
  func.func @transform_8(%arg0: i32) -> (i32, i32) {
    %c0_i32 = arith.constant 0 : i32
    %c0_i32_0 = arith.constant 0 : i32
    %c0_i32_1 = arith.constant 0 : i32
    return %c0_i32, %c0_i32_0 : i32, i32
  }
  func.func @transform_9(%arg0: i32) -> (i32, i32, i32) {
    %c0_i32 = arith.constant 0 : i32
    %c0_i32_0 = arith.constant 0 : i32
    %c0_i32_1 = arith.constant 0 : i32
    return %arg0, %c0_i32, %c0_i32_0 : i32, i32, i32
  }
  func.func @transform_10(%arg0: i32) -> (i32, i32, i32) {
    %c0_i32 = arith.constant 0 : i32
    %c0_i32_0 = arith.constant 0 : i32
    %c0_i32_1 = arith.constant 0 : i32
    return %arg0, %c0_i32, %c0_i32_0 : i32, i32, i32
  }
}

</mosaic_0001>

<bundles_post_ra>
// kernel: upsampling_block_forward.3
= control target key start
LH: loop header
LB: loop body
LE: loop exit
PB: predicated region body
PF: predicated region fallthrough
CT: control target
= control target key end

     0   :  { %s1317_s30 = smov 0   ;;  %s1484_s0 = inlined_call_operand.vmem [shape: bf16[2,8,512], index: 0, kind: input, shape index: {}]   ;;  %s1485_s1 = inlined_call_operand.vmem [shape: bf16[2,4,512], index: 1, kind: input, shape index: {}]   ;;  %s1486_s2 = inlined_call_operand.vmem [shape: bf16[8,144], index: 2, kind: input, shape index: {}]   ;;  %s1487_s3 = inlined_call_operand.vmem [shape: bf16[8,8], index: 3, kind: input, shape index: {}]   ;;  %s1488_s4 = inlined_call_operand.vmem [shape: f32[8,1], index: 4, kind: input, shape index: {}]   ;;  %s1489_s5 = inlined_call_operand.vmem [shape: f32[8,1], index: 5, kind: input, shape index: {}]   ;;  %s1490_s6 = inlined_call_operand.vmem [shape: f32[8,8], index: 6, kind: input, shape index: {}]   ;;  %s1491_s7 = inlined_call_operand.vmem [shape: bf16[1,256], index: 7, kind: input, shape index: {}]   ;;  %s1492_s8 = inlined_call_operand.vmem [shape: bf16[1,256], index: 8, kind: input, shape index: {}]   ;;  %s1493_s9 = inlined_call_operand.vmem [shape: bf16[2,8,512], index: 9, kind: output, shape index: {}]  }
   0x1 LB: > { %s1107_s10 = sadd.s32 4294967295, %s1256_s30   ;;  %p1111_p0 = scmp.ge.s32.totalorder %s1256_s30, 1  ;;  %s1256_s30 = sphi %s1317_s30, %s19_s30  }
   0x2   : > { %p297_p1 = scmp.lt.s32.totalorder %s1256_s30, 3 }
   0x4   : > { %p298_p2 = pnand %p1111_p0, %p297_p1 }
   0x5   : > { %s1258_s13 = smov (!%p298_p2), 111   ;;  %s1259_s14 = smov (!%p298_p2), 15  }
   0x6   : > { %301 = sbr.rel (%p298_p2) target bundleno = 1381 (0x565), region = 56  ;;  %s1260_s15 = smov (!%p298_p2), 127  }
   0x7   : > { %p338_p3 = scmp.lt.s32.totalorder (!%p298_p2), %s1107_s10, 1  ;;  %s1261_s22 = smov (!%p298_p2), 17  }
   0x8   : > { %s1262_s23 = smov (!%p298_p2), 1   ;;  %s1263_s24 = smov (!%p298_p2), 113  }
   0x9   : > { %s1264_s25 = smov (!%p298_p2), 112   ;;  %s1265_s26 = smov (!%p298_p2), 16  }
   0xb   : > { %v372_v0 = vld [vmem:[%s1491_s7] sm:$0x3]  ;;  %vm392_vm0 = vcmask 1043456   ;;  %s1497_s10 = smov (!%p338_p3, %s1107_s10), 1  ;;  %vm397_vm1 = vcmask 908288   ;;  %vm470_vm2 = vcmask 924672  }
   0xc   : > { %376 = vst [vmem:[#allocation1] ss:$9 sm:$0xff] %v372_v0  ;;  %s1201_s16 = sshll.u32 %s1497_s10, 3  ;;  %v373_v22 = vld [vmem:[%s1492_s8] sm:$0x3]  ;;  %vm508_vm3 = vcmask 1039360  }
   0xd   : > { %s1338_s19 = scalar_lea.vmem %s1485_s1, %s1201_s16  ;;  %vm536_vm4 = vcmask 7168   ;;  %vm498_vm5 = vcmask 121856   ;;  %vm426_vm6 = vcmask 138240   ;;  %vm636_vm7 = vcmask 916480  }
   0xe   : > { %v374_v11 = vld [vmem:[%s1338_s19] sm:$0x3f]  ;;  %vm444_vm8 = vcmask 130048   ;;  %vm856_vm9 = vcmask 64512  }
   0xf   : > { %v386_v12 = vunpack.c.h.bf16 %v374_v11  ;;  %v385_v14 = vunpack.c.l.bf16 %v374_v11  ;;  %v430_v19 = vld [vmem:[%s1338_s19] sm:$0x3f] }
  0x10   : > { %v448_v36 = vld [vmem:[%s1338_s19] sm:$0x3f] }
  0x11   : > { %v460_v37 = vunpack.c.h.bf16 %v448_v36  ;;  %v459_v38 = vunpack.c.l.bf16 %v448_v36  ;;  %v502_v44 = vld [vmem:[%s1338_s19] sm:$0x3f] }
  0x12   : > { %v504_v47 = vunpack.c.h.bf16 %v502_v44  ;;  %v503_v48 = vunpack.c.l.bf16 %v502_v44  ;;  %v546_v55 = vld [vmem:[%s1338_s19 + $0x2] sm:$0x3f] }
  0x13   : > { %v377_v1 = vld [vmem:[#allocation1] sm:$0xff]  ;;  %v378_v2 = vld [vmem:[#allocation1 + $0x9] sm:$0xff]  ;;  %v548_v57 = vunpack.c.h.bf16 %v546_v55 }
  0x14   : > { %v379_v3 = vpack.i.b16 %v377_v1, %v377_v1  ;;  %v382_v4 = vpack.i.b16 %v378_v2, %v378_v2  ;;  %v540_v59 = vld [vmem:[%s1338_s19 + $0x2] sm:$0xf] }
  0x15   : > { %v584_v61 = vld [vmem:[%s1338_s19 + $0x2] sm:$0x3f] }
  0x16   : > { %v381_v5 = vperm.slane %v379_v3, 0  ;;  %v384_v6 = vperm.slane %v382_v4, 0  ;;  %v586_v2 = vunpack.c.h.bf16 %v584_v61  ;;  %v547_v4 = vunpack.c.l.bf16 %v546_v55 }
  0x18   : > { %v387_v7 = vunpack.c.l.bf16 %v381_v5  ;;  %v388_v8 = vunpack.c.l.bf16 %v384_v6 }
  0x1a   : > { %v391_v9 = vrot.slane %v388_v8, 4  ;;  %v640_v8 = vld [vmem:[%s1338_s19 + $0x2] sm:$0x3f] }
  0x1c   : > { %v393_v10 = vsel %vm392_vm0, %v387_v7, %v391_v9 }
  0x1d   : > { %394 = vrot.lane.b32.xlu0 %v393_v10, %s1258_s13  ;;  %587 = vrot.lane.b32.xlu2 %v393_v10, %s1259_s14 }
  0x1e   : > { %505 = vrot.lane.b32.xlu1 %v393_v10, %s1260_s15 }
  0x77   : > { %v588_v60 = vpop.permute.xlu2 %587 }
  0x78   : > { %v589_v3 = vrot.slane %v588_v60, 4 }
  0x7a   : > { %v595_v6 = vmul.f32 %v589_v3, %v586_v2 }
  0x8f   : > { %v395_v13 = vpop.permute.xlu0 %394 }
  0x90   : > { %v396_v15 = vrot.slane %v395_v13, 4  ;;  %v506_v43 = vpop.permute.xlu1 %505 }
  0x91   : > { %v507_v46 = vrot.slane %v506_v43, 4 }
  0x92   : > { %v398_v16 = vsel %vm397_vm1, %v396_v15, %v395_v13  ;;  %v402_v17 = vmul.f32 %v396_v15, %v386_v12  ;;  %v585_v12 = vunpack.c.l.bf16 %v584_v61  ;;  %v591_v13 = vsel %vm498_vm5, %v589_v3, %v588_v60 }
  0x93   : > { %v401_v18 = vmul.f32 %v398_v16, %v385_v14  ;;  %v509_v49 = vsel %vm508_vm3, %v507_v46, %v506_v43  ;;  %v513_v50 = vmul.f32 %v507_v46, %v504_v47  ;;  %v642_v14 = vunpack.c.h.bf16 %v640_v8 }
  0x94   : > { %407 = vst [vmem:[#allocation1 + $0x10] ss:$2 sm:$0xff] %v402_v17  ;;  %v512_v51 = vmul.f32 %v509_v49, %v503_v48  ;;  %v594_v16 = vmul.f32 %v591_v13, %v585_v12 }
  0x95   : > { %405 = vst [vmem:[#allocation1] ss:$2 sm:$0xff] %v401_v18 }
  0x9b   : > { %v1350_v23 = vld.sshfl [vmem:[#allocation1 + $0x10] sm:$0xff pattern:$0x75316420] }
  0x9c   : > { %v1343_v20 = vld.sshfl [vmem:[#allocation1] sm:$0xff pattern:$0x75316420]  ;;  %v1345_v21 = vld.sshfl [vmem:[#allocation1 + $0x8] sm:$0xff pattern:$0x75316420]  ;;  %v415_v47 = vpack.c.bf16 %v1350_v23, %v1350_v23 }
  0x9d   : > { %432 = vst [vmem:[#allocation1] ss:$2 sm:$0xff] %v430_v19  ;;  %v414_v44 = vpack.c.bf16 %v1345_v21, %v1343_v20 }
  0xa4   : > { %v1352_v24 = vld.sshfl [vmem:[#allocation1] sm:$0xff pattern:$0x75643120]  ;;  %v1354_v25 = vld.sshfl [vmem:[#allocation1 + $0x8] sm:$0xff pattern:$0x75643120] }
  0xa5   : > { %450 = vst [vmem:[#allocation1] ss:$9 sm:$0xff] %v373_v22 }
  0xac   : > { %v452_v26 = vld [vmem:[#allocation1 + $0x9] sm:$0xff]  ;;  %v451_v27 = vld [vmem:[#allocation1] sm:$0xff] }
  0xad   : > { %v453_v28 = vpack.i.b16 %v451_v27, %v451_v27  ;;  %v456_v29 = vpack.i.b16 %v452_v26, %v452_v26  ;;  %v622_v27 = vld [vmem:[%s1338_s19 + $0x2] sm:$0x3f] }
  0xaf   : > { %v455_v30 = vperm.slane %v453_v28, 0  ;;  %v458_v31 = vperm.slane %v456_v29, 0 }
  0xb1   : > { %v461_v32 = vunpack.c.l.bf16 %v455_v30  ;;  %v462_v33 = vunpack.c.l.bf16 %v458_v31  ;;  %v641_v31 = vunpack.c.l.bf16 %v640_v8 }
  0xb3   : > { %v465_v34 = vrot.slane %v462_v33, 4 }
  0xb5   : > { %v466_v35 = vsel %vm392_vm0, %v461_v32, %v465_v34 }
  0xb6   : > { %643 = vrot.lane.b32.xlu2 %v466_v35, %s1261_s22  ;;  %549 = vrot.lane.b32.xlu1 %v466_v35, %s1262_s23 }
  0xb7   : > { %467 = vrot.lane.b32.xlu0 %v466_v35, %s1263_s24 }
 0x110   : > { %v644_v10 = vpop.permute.xlu2 %643 }
 0x111   : > { %v645_v15 = vrot.slane %v644_v10, 4 }
 0x113   : > { %v651_v17 = vmul.f32 %v645_v15, %v642_v14  ;;  %v647_v32 = vsel %vm426_vm6, %v645_v15, %v644_v10 }
 0x114   : > { %v650_v33 = vmul.f32 %v647_v32, %v641_v31 }
 0x128   : > { %v550_v56 = vpop.permute.xlu1 %549 }
 0x129   : > { %v468_v39 = vpop.permute.xlu0 %467  ;;  %v551_v58 = vrot.slane %v550_v56, 4 }
 0x12a   : > { %v469_v40 = vrot.slane %v468_v39, 4 }
 0x12b   : > { %v557_v62 = vmul.f32 %v551_v58, %v548_v57  ;;  %v553_v5 = vsel %vm536_vm4, %v551_v58, %v550_v56 }
 0x12c   : > { %v471_v41 = vsel %vm470_vm2, %v469_v40, %v468_v39  ;;  %v475_v42 = vmul.f32 %v469_v40, %v460_v37  ;;  %v556_v7 = vmul.f32 %v553_v5, %v547_v4 }
 0x12d   : > { %v474_v45 = vmul.f32 %v471_v41, %v459_v38 }
 0x12e   : > { %480 = vst [vmem:[#allocation1 + $0x10] ss:$2 sm:$0xff] %v475_v42 }
 0x12f   : > { %478 = vst [vmem:[#allocation1] ss:$2 sm:$0xff] %v474_v45 }
 0x135   : > { %v1364_v52 = vld.sshfl [vmem:[#allocation1 + $0x10] sm:$0xff pattern:$0x75316420] }
 0x136   : > { %v1366_v53 = vld.sshfl [vmem:[#allocation1] sm:$0xff pattern:$0x75316420]  ;;  %v1368_v54 = vld.sshfl [vmem:[#allocation1 + $0x8] sm:$0xff pattern:$0x75316420]  ;;  %v488_v41 = vpack.c.bf16 %v1364_v52, %v1364_v52 }
 0x137   : > { %516 = vst [vmem:[#allocation1] ss:$2 sm:$0xff] %v512_v51  ;;  %v487_v39 = vpack.c.bf16 %v1368_v54, %v1366_v53 }
 0x138   : > { %518 = vst [vmem:[#allocation1 + $0x10] ss:$2 sm:$0xff] %v513_v50 }
 0x13e   : > { %v519_v63 = vld.sshfl [vmem:[#allocation1] sm:$0xff pattern:$0x75316420]  ;;  %v520_v0 = vld.sshfl [vmem:[#allocation1 + $0x8] sm:$0xff pattern:$0x75316420] }
 0x13f   : > { %v521_v1 = vld.sshfl [vmem:[#allocation1 + $0x10] sm:$0xff pattern:$0x75316420]  ;;  %542 = vst [vmem:[#allocation1] ss:$2 sm:$0xff] %v540_v59  ;;  %v525_v38 = vpack.c.bf16 %v520_v0, %v519_v63 }
 0x140   : > { %562 = vst [vmem:[#allocation1 + $0x10] ss:$2 sm:$0xff] %v557_v62  ;;  %v526_v40 = vpack.c.bf16 %v521_v1, %v521_v1 }
 0x146   : > { %v1375_v9 = vld.sshfl [vmem:[#allocation1] sm:$0xff pattern:$0x75643120] }
 0x147   : > { %v565_v11 = vld.sshfl [vmem:[#allocation1 + $0x10] sm:$0xff pattern:$0x75316420]  ;;  %560 = vst [vmem:[#allocation1] ss:$2 sm:$0xff] %v556_v7 }
 0x148   : > { %600 = vst [vmem:[#allocation1 + $0x10] ss:$2 sm:$0xff] %v595_v6  ;;  %v570_v36 = vpack.c.bf16 %v565_v11, %v565_v11 }
 0x14e   : > { %v563_v18 = vld.sshfl [vmem:[#allocation1] sm:$0xff pattern:$0x75316420]  ;;  %v564_v19 = vld.sshfl [vmem:[#allocation1 + $0x8] sm:$0xff pattern:$0x75316420] }
 0x14f   : > { %v603_v22 = vld.sshfl [vmem:[#allocation1 + $0x10] sm:$0xff pattern:$0x75316420]  ;;  %598 = vst [vmem:[#allocation1] ss:$2 sm:$0xff] %v594_v16  ;;  %v569_v37 = vpack.c.bf16 %v564_v19, %v563_v18 }
 0x150   : > { %v608_v26 = vpack.c.bf16 %v603_v22, %v603_v22  ;;  %656 = vst [vmem:[#allocation1 + $0x10] ss:$2 sm:$0xff] %v651_v17 }
 0x152   : > { %613 = vrot.lane.b32.xlu0 %v608_v26, %s1263_s24 }
 0x156   : > { %v601_v28 = vld.sshfl [vmem:[#allocation1] sm:$0xff pattern:$0x75316420]  ;;  %v602_v29 = vld.sshfl [vmem:[#allocation1 + $0x8] sm:$0xff pattern:$0x75316420] }
 0x157   : > { %v607_v30 = vpack.c.bf16 %v602_v29, %v601_v28  ;;  %624 = vst [vmem:[#allocation1] ss:$2 sm:$0xff] %v622_v27  ;;  %v659_v46 = vld.sshfl [vmem:[#allocation1 + $0x10] sm:$0xff pattern:$0x75316420] }
 0x158   : > { %v664_v48 = vpack.c.bf16 %v659_v46, %v659_v46 }
 0x159   : > { %611 = vrot.lane.b32.xlu2 %v607_v30, %s1263_s24 }
 0x15e   : > { %v627_v34 = vld.sshfl [vmem:[#allocation1 + $0x8] sm:$0xff pattern:$0x75643120]  ;;  %v625_v35 = vld.sshfl [vmem:[#allocation1] sm:$0xff pattern:$0x75643120] }
 0x15f   : > { %631 = vrot.lane.b32.xlu1 %v627_v34, %s1264_s25  ;;  %629 = vrot.lane.b32.xlu0 %v625_v35, %s1264_s25  ;;  %654 = vst [vmem:[#allocation1] ss:$2 sm:$0xff] %v650_v33 }
 0x161   : > { %575 = vrot.lane.b32.xlu2 %v570_v36, %s1260_s15 }
 0x166   : > { %v657_v42 = vld.sshfl [vmem:[#allocation1] sm:$0xff pattern:$0x75316420]  ;;  %v658_v43 = vld.sshfl [vmem:[#allocation1 + $0x8] sm:$0xff pattern:$0x75316420] }
 0x167   : > { %573 = vrot.lane.b32.xlu1 %v569_v37, %s1260_s15  ;;  %529 = vrot.lane.b32.xlu0 %v525_v38, %s1262_s23  ;;  %v663_v45 = vpack.c.bf16 %v658_v43, %v657_v42 }
 0x169   : > { %491 = vrot.lane.b32.xlu2 %v487_v39, %s1259_s14 }
 0x16f   : > { %531 = vrot.lane.b32.xlu1 %v526_v40, %s1262_s23  ;;  %493 = vrot.lane.b32.xlu0 %v488_v41, %s1259_s14  ;;  %s1200_s14 = sshll.u32 %s1497_s10, 4 }
 0x170   : > { %s1454_s17 = scalar_lea.vmem %s1493_s9, %s1200_s14  ;;  %s342_s19 = scalar_lea.vmem %s1484_s0, %s1200_s14 }
 0x171   : > { %439 = vrot.lane.b32.xlu2 %v1354_v25, %s1265_s26  ;;  %v1266_v25 = vmov 0  }
 0x172   : > { %366 = vst [vmem:[#allocation2 + $0x60] sm:$0xff] %v1266_v25  ;;  %1238 = vset.pattern.permute.xlu2 %v1266_v25  ;;  %1239 = vset.pattern.permute.xlu0 %v1266_v25 }
 0x173   : > { %354 = vst [vmem:[#allocation2] sm:$0xff] %v1266_v25 }
 0x174   : > { %355 = vst [vmem:[#allocation2 + $0x8] sm:$0xff] %v1266_v25 }
 0x175   : > { %356 = vst [vmem:[#allocation2 + $0x10] sm:$0xff] %v1266_v25 }
 0x176   : > { %357 = vst [vmem:[#allocation2 + $0x18] sm:$0xff] %v1266_v25 }
 0x177   : > { %437 = vrot.lane.b32.xlu1 %v1352_v24, %s1265_s26  ;;  %418 = vrot.lane.b32.xlu0 %v414_v44, %s1261_s22  ;;  %358 = vst [vmem:[#allocation2 + $0x20] sm:$0xff] %v1266_v25 }
 0x178   : > { %359 = vst [vmem:[#allocation2 + $0x28] sm:$0xff] %v1266_v25 }
 0x179   : > { %667 = vrot.lane.b32.xlu2 %v663_v45, %s1258_s13  ;;  %360 = vst [vmem:[#allocation2 + $0x30] sm:$0xff] %v1266_v25 }
 0x17a   : > { %361 = vst [vmem:[#allocation2 + $0x38] sm:$0xff] %v1266_v25 }
 0x17b   : > { %362 = vst [vmem:[#allocation2 + $0x40] sm:$0xff] %v1266_v25 }
 0x17c   : > { %363 = vst [vmem:[#allocation2 + $0x48] sm:$0xff] %v1266_v25 }
 0x17d   : > { %364 = vst [vmem:[#allocation2 + $0x50] sm:$0xff] %v1266_v25 }
 0x17e   : > { %365 = vst [vmem:[#allocation2 + $0x58] sm:$0xff] %v1266_v25 }
 0x17f   : > { %420 = vrot.lane.b32.xlu1 %v415_v47, %s1261_s22  ;;  %669 = vrot.lane.b32.xlu0 %v664_v48, %s1258_s13  ;;  %367 = vst [vmem:[#allocation2 + $0x68] sm:$0xff] %v1266_v25 }
 0x180   : > { %368 = vst [vmem:[#allocation2 + $0x70] sm:$0xff] %v1266_v25 }
 0x181   : > { %369 = vst [vmem:[#allocation2 + $0x78] sm:$0xff] %v1266_v25  ;;  %v1210_v45 = vld [vmem:[#allocation2 + $0x34] sm:$0xf0]  ;;  %v1146_v46 = vld [vmem:[#allocation2 + $0x38] sm:$0xf0] }
 0x182   : > { %370 = vst [vmem:[#allocation2 + $0x80] sm:$0xff] %v1266_v25 }
 0x183   : > { %371 = vst [vmem:[#allocation2 + $0x88] sm:$0xff] %v1266_v25  ;;  %v1212_v30 = vld [vmem:[#allocation2 + $0x44] sm:$0xf0]  ;;  %v1154_v36 = vld [vmem:[#allocation2 + $0x48] sm:$0xf0] }
 0x184   : > { %545 = vst [vmem:[#allocation2 + $0x40] sm:$0x33] %v1375_v9 }
 0x185   : > { %v1214_v19 = vld [vmem:[#allocation2 + $0x54] sm:$0xf0]  ;;  %v1162_v22 = vld [vmem:[#allocation2 + $0x58] sm:$0xf0]  ;;  %1037 = vst [vmem:[%s1454_s17] sm:$0xf] %v1266_v25 }
 0x186   : > { %v1216_v8 = vld [vmem:[#allocation2 + $0x64] sm:$0xf0]  ;;  %v1170_v10 = vld [vmem:[#allocation2 + $0x68] sm:$0xf0]  ;;  %1039 = vst [vmem:[%s1454_s17 + $0xc] sm:$0xf] %v1266_v25 }
 0x188   : > { %v1218_v63 = vld [vmem:[#allocation2 + $0x74] sm:$0xf0]  ;;  %v1178_v0 = vld [vmem:[#allocation2 + $0x78] sm:$0xf0] }
 0x18b   : > { %v1152_v29 = vld [vmem:[#allocation2 + $0x40] sm:$0xf]  ;;  %v1211_v31 = vld [vmem:[#allocation2 + $0x44] sm:$0xf] }
 0x18c   : > { %v1153_v40 = vor.u32 %v1212_v30, %v1152_v29  ;;  %v1157_v41 = vor.u32 %v1211_v31, %v1154_v36 }
 0x1b3   : > { %v612_v20 = vpop.permute.xlu2 %611 }
 0x1b4   : > { %v615_v23 = vrot.slane %v612_v20, 4 }
 0x1bb   : > { %v576_v51 = vpop.permute.xlu2 %575 }
 0x1bc   : > { %v578_v60 = vrot.slane %v576_v51, 4 }
 0x1c3   : > { %v492_v61 = vpop.permute.xlu2 %491 }
 0x1c4   : > { %v614_v21 = vpop.permute.xlu0 %613  ;;  %v495_v11 = vrot.slane %v492_v61, 4 }
 0x1c5   : > { %v616_v24 = vrot.slane %v614_v21, 4 }
 0x1c7   : > { %v617_v49 = vsel %vm392_vm0, %v615_v23, %v616_v24 }
 0x1c8   : > { %v619_v50 = vsel %vm470_vm2, %v612_v20, %v617_v49 }
 0x1c9   : > { %621 = vst [vmem:[#allocation2 + $0x60] sm:$0x33] %v619_v50  ;;  %v1208_v50 = vld [vmem:[#allocation2 + $0x24] sm:$0xf0] }
 0x1cb   : > { %v440_v26 = vpop.permute.xlu2 %439 }
 0x1cc   : > { %v442_v39 = vrot.slane %v440_v26, 4 }
 0x1d0   : > { %v1168_v7 = vld [vmem:[#allocation2 + $0x60] sm:$0xf]  ;;  %v1215_v9 = vld [vmem:[#allocation2 + $0x64] sm:$0xf] }
 0x1d1   : > { %v632_v52 = vpop.permute.xlu1 %631  ;;  %v630_v53 = vpop.permute.xlu0 %629  ;;  %v1169_v14 = vor.u32 %v1216_v8, %v1168_v7  ;;  %v1173_v18 = vor.u32 %v1215_v9, %v1170_v10  ;;  %v678_v8 = vld [vmem:[%s1486_s2] sm:$0xff]  ;;  %v1204_v9 = vld [vmem:[#allocation2 + $0x4] sm:$0xf0]  ;;  %v1122_v10 = vld [vmem:[#allocation2 + $0x8] sm:$0xf0] }
 0x1d2   : > { %v634_v54 = vrot.slane %v632_v52, 4  ;;  %v633_v55 = vrot.slane %v630_v53, 4 }
 0x1d3   : > { %v668_v23 = vpop.permute.xlu2 %667 }
 0x1d4   : > { %v635_v56 = vsel %vm392_vm0, %v633_v55, %v634_v54  ;;  %v671_v54 = vrot.slane %v668_v23, 4 }
 0x1d5   : > { %v637_v57 = vsel %vm636_vm7, %v630_v53, %v635_v56  ;;  %v1138_v53 = vld [vmem:[#allocation2 + $0x28] sm:$0xf0] }
 0x1d6   : > { %639 = vst [vmem:[#allocation2 + $0x70] sm:$0x33] %v637_v57 }
 0x1d9   : > { %v574_v58 = vpop.permute.xlu1 %573  ;;  %v530_v59 = vpop.permute.xlu0 %529 }
 0x1da   : > { %v577_v62 = vrot.slane %v574_v58, 4  ;;  %v533_v15 = vrot.slane %v530_v59, 4 }
 0x1dc   : > { %v579_v1 = vsel %vm392_vm0, %v577_v62, %v578_v60  ;;  %v1206_v62 = vld [vmem:[#allocation2 + $0x14] sm:$0xf0] }
 0x1dd   : > { %v581_v2 = vsel %vm508_vm3, %v574_v58, %v579_v1  ;;  %v1176_v3 = vld [vmem:[#allocation2 + $0x70] sm:$0xf]  ;;  %v1217_v4 = vld [vmem:[#allocation2 + $0x74] sm:$0xf] }
 0x1de   : > { %583 = vst [vmem:[#allocation2 + $0x50] sm:$0x33] %v581_v2  ;;  %v1177_v5 = vor.u32 %v1218_v63, %v1176_v3  ;;  %v1181_v6 = vor.u32 %v1217_v4, %v1178_v0  ;;  %v1130_v63 = vld [vmem:[#allocation2 + $0x18] sm:$0xf0] }
 0x1e0   : > { %797 = vmatpush.bf16.msra.mxu0 %v1177_v5  ;;  %823 = vmatpush.bf16.msra.mxu2 %v1181_v6 }
 0x1e1   : > { %v532_v12 = vpop.permute.xlu1 %531  ;;  %v494_v13 = vpop.permute.xlu0 %493 }
 0x1e2   : > { %v534_v16 = vrot.slane %v532_v12, 4  ;;  %v496_v17 = vrot.slane %v494_v13, 4  ;;  %v1220_v12 = vld [vmem:[#allocation2 + $0x84] sm:$0xf0]  ;;  %v1186_v13 = vld [vmem:[#allocation2 + $0x88] sm:$0xf0] }
 0x1e4   : > { %v535_v27 = vsel %vm392_vm0, %v533_v15, %v534_v16  ;;  %v497_v28 = vsel %vm392_vm0, %v495_v11, %v496_v17  ;;  %798 = vmatpush.bf16.msra.mxu0 %v1169_v14  ;;  %824 = vmatpush.bf16.msra.mxu2 %v1173_v18  ;;  %v698_v11 = vunpack.c.l.b16 %v678_v8  ;;  %v699_v14 = vunpack.c.h.b16 %v678_v8 }
 0x1e5   : > { %v537_v32 = vsel %vm536_vm4, %v530_v59, %v535_v27  ;;  %v499_v33 = vsel %vm498_vm5, %v492_v61, %v497_v28  ;;  %v1160_v34 = vld [vmem:[#allocation2 + $0x50] sm:$0xf]  ;;  %v1213_v35 = vld [vmem:[#allocation2 + $0x54] sm:$0xf] }
 0x1e6   : > { %539 = vst [vmem:[#allocation2 + $0x30] sm:$0x33] %v537_v32  ;;  %v1161_v37 = vor.u32 %v1214_v19, %v1160_v34  ;;  %v1165_v38 = vor.u32 %v1213_v35, %v1162_v22  ;;  %v700_v28 = vpack.c.b16 %v698_v11, %v698_v11  ;;  %v701_v29 = vpack.c.b16 %v699_v14, %v699_v14 }
 0x1e7   : > { %501 = vst [vmem:[#allocation2 + $0x20] sm:$0x33] %v499_v33 }
 0x1e8   : > { %799 = vmatpush.bf16.msra.mxu0 %v1161_v37  ;;  %825 = vmatpush.bf16.msra.mxu2 %v1165_v38 }
 0x1e9   : > { %v438_v42 = vpop.permute.xlu1 %437  ;;  %v419_v43 = vpop.permute.xlu0 %418 }
 0x1ea   : > { %v441_v44 = vrot.slane %v438_v42, 4  ;;  %v422_v55 = vrot.slane %v419_v43, 4 }
 0x1ec   : > { %v443_v47 = vsel %vm392_vm0, %v441_v44, %v442_v39  ;;  %800 = vmatpush.bf16.msra.mxu0 %v1153_v40  ;;  %826 = vmatpush.bf16.msra.mxu2 %v1157_v41 }
 0x1ed   : > { %v445_v48 = vsel %vm444_vm8, %v438_v42, %v443_v47  ;;  %v1144_v20 = vld [vmem:[#allocation2 + $0x30] sm:$0xf]  ;;  %v1209_v21 = vld [vmem:[#allocation2 + $0x34] sm:$0xf] }
 0x1ee   : > { %447 = vst [vmem:[#allocation2 + $0x10] sm:$0x33] %v445_v48  ;;  %v1145_v24 = vor.u32 %v1210_v45, %v1144_v20  ;;  %v1149_v49 = vor.u32 %v1209_v21, %v1146_v46  ;;  %v1136_v51 = vld [vmem:[#allocation2 + $0x20] sm:$0xf]  ;;  %v1207_v52 = vld [vmem:[#allocation2 + $0x24] sm:$0xf] }
 0x1ef   : > { %v1137_v60 = vor.u32 %v1208_v50, %v1136_v51  ;;  %v1141_v61 = vor.u32 %v1207_v52, %v1138_v53  ;;  %v850_v45 = vld [vmem:[%s1488_s4] sm:$0xff] }
 0x1f0   : > { %801 = vmatpush.bf16.msra.mxu0 %v1145_v24  ;;  %827 = vmatpush.bf16.msra.mxu2 %v1149_v49  ;;  %v954_v24 = vld [vmem:[%s342_s19 + $0x4] sm:$0xff]  ;;  %v955_v52 = vld [vmem:[%s1487_s3] sm:$0xf] }
 0x1f1   : > { %v421_v56 = vpop.permute.xlu1 %420  ;;  %v670_v57 = vpop.permute.xlu0 %669  ;;  %v957_v49 = vunpack.c.l.b16 %v954_v24  ;;  %v958_v25 = vunpack.c.h.b16 %v954_v24 }
 0x1f2   : > { %v423_v58 = vrot.slane %v421_v56, 4  ;;  %v672_v59 = vrot.slane %v670_v57, 4 }
 0x1f3   : > { %v959_v50 = vpack.c.b16 %v957_v49, %v957_v49  ;;  %v960_v53 = vpack.c.b16 %v958_v25, %v958_v25 }
 0x1f4   : > { %v425_v0 = vsel %vm392_vm0, %v422_v55, %v423_v58  ;;  %v673_v1 = vsel %vm392_vm0, %v671_v54, %v672_v59  ;;  %802 = vmatpush.bf16.msra.mxu0 %v1137_v60  ;;  %828 = vmatpush.bf16.msra.mxu2 %v1141_v61 }
 0x1f5   : > { %v427_v2 = vsel %vm426_vm6, %v419_v43, %v425_v0  ;;  %v675_v3 = vsel %vm397_vm1, %v668_v23, %v673_v1  ;;  %v1128_v4 = vld [vmem:[#allocation2 + $0x10] sm:$0xf]  ;;  %v1205_v5 = vld [vmem:[#allocation2 + $0x14] sm:$0xf]  ;;  %v849_v43 = vld [vmem:[%s1490_s6] sm:$0xff]  ;;  %v965_v51 = vsel %vm392_vm0, %v959_v50, 0 }
 0x1f6   : > { %429 = vst [vmem:[#allocation2] sm:$0x33] %v427_v2  ;;  %v1129_v6 = vor.u32 %v1206_v62, %v1128_v4  ;;  %v1133_v7 = vor.u32 %v1205_v5, %v1130_v63  ;;  %v968_v56 = vsel %vm392_vm0, %v960_v53, 0 }
 0x1f7   : > { %677 = vst [vmem:[#allocation2 + $0x80] sm:$0x33] %v675_v3 }
 0x1f8   : > { %803 = vmatpush.bf16.msra.mxu0 %v1129_v6  ;;  %829 = vmatpush.bf16.msra.mxu2 %v1133_v7  ;;  %v851_v6 = vld [vmem:[%s1489_s5] sm:$0xff] }
 0x1fd   : > { %v1120_v15 = vld [vmem:[#allocation2] sm:$0xf]  ;;  %v1203_v16 = vld [vmem:[#allocation2 + $0x4] sm:$0xf] }
 0x1fe   : > { %v1121_v17 = vor.u32 %v1204_v9, %v1120_v15  ;;  %v1184_v18 = vld [vmem:[#allocation2 + $0x80] sm:$0xf]  ;;  %v1125_v19 = vor.u32 %v1203_v16, %v1122_v10  ;;  %v1219_v22 = vld [vmem:[#allocation2 + $0x84] sm:$0xf] }
 0x1ff   : > { %v1185_v26 = vor.u32 %v1220_v12, %v1184_v18  ;;  %v1189_v27 = vor.u32 %v1219_v22, %v1186_v13 }
 0x200   : > { %804 = vmatpush.bf16.msra.mxu0 %v1121_v17  ;;  %830 = vmatpush.bf16.msra.mxu2 %v1125_v19 }
 0x201   : > { %817 = vmatpush.bf16.msra.mxu1 %v1185_v26  ;;  %843 = vmatpush.bf16.msra.mxu3 %v1189_v27 }
 0x203   : > { %805 = vmatmul.bf16.vlgmr.msra.gmra.mxu0 %v700_v28  ;;  %831 = vmatmul.bf16.vlgmr.msra.gmra.mxu2 %v700_v28 }
 0x204   : > { %1190 = vmatmul.msk.bf16.vlgmr.msra.gmra.mxu1 %vm444_vm8, %v701_v29  ;;  %1191 = vmatmul.msk.bf16.vlgmr.msra.gmra.mxu3 %vm444_vm8, %v701_v29 }
 0x280   : > { %v806_v30 = vpop.f32.mrf.mxu0 }
 0x281   : > { %v819_v31 = vpop.f32.mrf.mxu1 }
 0x282   : > { %v820_v32 = vadd.f32 %v819_v31, %v806_v30 }
 0x286   : > { %v832_v33 = vpop.f32.mrf.mxu2 }
 0x287   : > { %v845_v34 = vpop.f32.mrf.mxu3 }
 0x288   : > { %v846_v35 = vadd.f32 %v845_v34, %v832_v33  ;;  %v808_v36 = vpop.f32.mrf.mxu0 }
 0x289   : > { %v821_v37 = vpop.f32.mrf.mxu1 }
 0x28a   : > { %v852_v38 = vadd.f32 %v846_v35, %v820_v32 }
 0x28c   : > { %853 = vadd.xlane.f32.xlu1 %v852_v38 }
 0x28e   : > { %v834_v39 = vpop.f32.mrf.mxu2 }
 0x28f   : > { %v847_v40 = vpop.f32.mrf.mxu3 }
 0x2ff   : > { %v854_v41 = vpop.xlane.xlu1 %853 }
 0x300   : > { %v855_v42 = vmul.f32 0.00390625, %v854_v41 }
 0x302   : > { %875 = vmatpush.msrb.mxu1 %v855_v42 }
 0x303   : > { %1192 = vmatmul.msk.f32.vlgmr.msrb.gmra.mxu1 %vm856_vm9, %v849_v43 }
 0x304   : > { %977 = vmatpush.bf16.msra.mxu1 %v965_v51 }
 0x30b   : > { %1194 = vmatmul.msk.bf16.vlgmr.msra.gmra.mxu1 %vm856_vm9, %v955_v52 }
 0x380   : > { %v877_v44 = vpop.f32.mrf.mxu1 }
 0x381   : > { %882 = vperm.xlu2 %1238, %v877_v44  }
 0x388   : > { %v979_v57 = vpop.f32.mrf.mxu1 }
 0x389   : > { %932 = vperm.xlu2 %1238, %v850_v45   ;;  %v1196_v7 = vmul.f32 -1.442695, %v979_v57 }
 0x390   : > { %v981_v60 = vpop.f32.mrf.mxu1 }
 0x3db   : > { %v883_v46 = vpop.permute.xlu2 %882 }
 0x3dc   : > { %v885_v47 = vsub.f32 %v820_v32, %v883_v46  ;;  %v886_v48 = vsub.f32 %v846_v35, %v883_v46 }
 0x3de   : > { %v887_v20 = vmul.f32 %v885_v47, %v885_v47  ;;  %v888_v21 = vmul.f32 %v886_v48, %v886_v48 }
 0x3e0   : > { %v889_v23 = vadd.f32 %v888_v21, %v887_v20 }
 0x3e2   : > { %890 = vadd.xlane.f32.xlu0 %v889_v23 }
 0x3e3   : > { %v933_v13 = vpop.permute.xlu2 %932 }
 0x455   : > { %v891_v54 = vpop.xlane.xlu0 %890 }
 0x456   : > { %v892_v55 = vmul.f32 0.00390625, %v891_v54 }
 0x458   : > { %908 = vmatpush.msrb.mxu3 %v892_v55 }
 0x459   : > { %1193 = vmatmul.msk.f32.vlgmr.msrb.gmra.mxu3 %vm856_vm9, %v849_v43 }
 0x45a   : > { %990 = vmatpush.bf16.msra.mxu3 %v968_v56 }
 0x461   : > { %1195 = vmatmul.msk.bf16.vlgmr.msra.gmra.mxu3 %vm856_vm9, %v955_v52 }
 0x4dc   : > { %v910_v58 = vpop.f32.mrf.mxu3 }
 0x4dd   : > { %v911_v59 = vadd.f32 1e-05, %v910_v58 }
 0x4df   : > { %1240 = vrsqrt.f32 %v911_v59  ;;  %vm919_vm11 = vweird.f32 %v911_v59 }
 0x4e0   : > { %1242 = vpow2.f32 %v1196_v7 }
 0x4e4   : > { %v992_v61 = vpop.f32.mrf.mxu3 }
 0x4e5   : > { %v1241_v62 = vpop.eup %1240  ;;  %v1197_v8 = vmul.f32 -1.442695, %v992_v61 }
 0x4e6   : > { %v914_v63 = vmul.f32 %v1241_v62, %v911_v59  ;;  %vm920_vm10 = vweird.f32 %v1241_v62  ;;  %v1243_v9 = vpop.eup %1242 }
 0x4e7   : > { %vm921_vm12 = vmor %vm919_vm11, %vm920_vm10  ;;  %1244 = vpow2.f32 %v1197_v8  ;;  %v1002_v11 = vadd.f32 1.0, %v1243_v9 }
 0x4e8   : > { %v915_v0 = vmul.f32 %v1241_v62, %v914_v63 }
 0x4e9   : > { %1246 = vrcp.f32 %v1002_v11  ;;  %vm1009_vm13 = vweird.f32 %v1002_v11  ;;  %v1013_v38 = vand.u32 2147483647, %v1002_v11  ;;  %v1015_v39 = vand.u32 2147483648, %v1002_v11 }
 0x4ea   : > { %v916_v1 = vmul.f32 0.5, %v915_v0 }
 0x4eb   : > { %vm1014_vm3 = vcmp.eq.f32.partialorder %v1013_v38, 8.507059e+37  ;;  %v1016_v20 = vor.u32 1.1754944e-38, %v1015_v39 }
 0x4ec   : > { %v917_v2 = vsub.f32 1.5, %v916_v1  ;;  %v994_v3 = vpop.f32.mrf.mxu3 }
 0x4ed   : > { %v1245_v10 = vpop.eup %1244 }
 0x4ee   : > { %v918_v4 = vmul.f32 %v1241_v62, %v917_v2  ;;  %v1003_v12 = vadd.f32 1.0, %v1245_v10 }
 0x4ef   : > { %v1247_v14 = vpop.eup %1246 }
 0x4f0   : > { %v922_v5 = vsel %vm921_vm12, %v1241_v62, %v918_v4  ;;  %1248 = vrcp.f32 %v1003_v12  ;;  %v1005_v16 = vmul.f32 %v1247_v14, %v1002_v11  ;;  %vm1010_vm14 = vweird.f32 %v1247_v14 }
 0x4f1   : > { %925 = vperm.xlu2 %1238, %v922_v5   ;;  %vm1024_vm15 = vweird.f32 %v1003_v12  ;;  %v1030_v40 = vand.u32 2147483648, %v1003_v12  ;;  %vm1474_vm1 = vmor %vm1009_vm13, %vm1010_vm14  ;;  %v1028_v45 = vand.u32 2147483647, %v1003_v12 }
 0x4f2   : > { %v1006_v26 = vsub.f32 1.0, %v1005_v16 }
 0x4f3   : > { %v1031_v21 = vor.u32 1.1754944e-38, %v1030_v40  ;;  %vm1029_vm4 = vcmp.eq.f32.partialorder %v1028_v45, 8.507059e+37 }
 0x4f4   : > { %v1007_v31 = vmul.f32 %v1247_v14, %v1006_v26 }
 0x4f6   : > { %v1249_v15 = vpop.eup %1248  ;;  %v1008_v37 = vadd.f32 %v1247_v14, %v1007_v31 }
 0x4f7   : > { %v1020_v18 = vmul.f32 %v1249_v15, %v1003_v12  ;;  %vm1025_vm0 = vweird.f32 %v1249_v15 }
 0x4f8   : > { %vm1026_vm2 = vmor %vm1024_vm15, %vm1025_vm0 }
 0x4f9   : > { %939 = vperm.xlu2 %1238, %v851_v6   ;;  %v1021_v27 = vsub.f32 1.0, %v1020_v18 }
 0x4fb   : > { %v1022_v34 = vmul.f32 %v1249_v15, %v1021_v27 }
 0x4fd   : > { %v1023_v44 = vadd.f32 %v1249_v15, %v1022_v34 }
 0x4ff   : > { %v1027_v49 = vsel %vm1026_vm2, %v1249_v15, %v1023_v44 }
 0x500   : > { %v1032_v25 = vsel %vm1029_vm4, %v1031_v21, %v1027_v49 }
 0x54b   : > { %v926_v17 = vpop.permute.xlu2 %925 }
 0x54c   : > { %v928_v19 = vmul.f32 %v926_v17, %v885_v47  ;;  %v929_v22 = vmul.f32 %v926_v17, %v886_v48  ;;  %v1012_v48 = vsel %vm1474_vm1, %v1247_v14, %v1008_v37 }
 0x54d   : > { %v1017_v52 = vsel %vm1014_vm3, %v1016_v20, %v1012_v48 }
 0x54e   : > { %v935_v28 = vmul.f32 %v933_v13, %v928_v19  ;;  %v936_v29 = vmul.f32 %v933_v13, %v929_v22 }
 0x553   : > { %v940_v30 = vpop.permute.xlu2 %939 }
 0x554   : > { %v942_v32 = vadd.f32 %v940_v30, %v935_v28  ;;  %v943_v33 = vadd.f32 %v940_v30, %v936_v29 }
 0x556   : > { %v944_v35 = vadd.f32 3.0, %v942_v32  ;;  %v945_v36 = vadd.f32 3.0, %v943_v33 }
 0x558   : > { %v946_v41 = vmax.f32 %v944_v35, 0.0  ;;  %v947_v42 = vmax.f32 %v945_v36, 0.0 }
 0x55a   : > { %v948_v46 = vmin.f32 %v946_v41, 6.0  ;;  %v949_v47 = vmin.f32 %v947_v42, 6.0 }
 0x55c   : > { %v950_v23 = vmul.f32 %v948_v46, %v942_v32  ;;  %v951_v24 = vmul.f32 %v949_v47, %v943_v33 }
 0x55e   : > { %v952_v50 = vmul.f32 0.16666667, %v950_v23  ;;  %v953_v51 = vmul.f32 0.16666667, %v951_v24 }
 0x560   : > { %v1034_v53 = vmul.f32 %v1017_v52, %v952_v50  ;;  %v1035_v54 = vmul.f32 %v1032_v25, %v953_v51 }
 0x562   : > { %v1036_v55 = vpack.c.bf16 %v1035_v54, %v1034_v53 }
 0x564   : > { %1038 = vst [vmem:[%s1454_s17 + $0x4] sm:$0xff] %v1036_v55 }
 0x565 PF: > { %s19_s30 = sadd.s32 1, %s1256_s30  }
 0x566   : > { %p16_p4 = scmp.ge.s32.totalorder %s19_s30, 4  }
 0x568   :  { %18 = sbr.rel (!%p16_p4) target bundleno = 1 (0x1), region = 95 }

// kernel: upsampling_block_forward.5
= control target key start
LH: loop header
LB: loop body
LE: loop exit
PB: predicated region body
PF: predicated region fallthrough
CT: control target
= control target key end

     0   :  { %s2526_s13 = smov 0   ;;  %s2961_s0 = inlined_call_operand.vmem [shape: f32[2,4,256], index: 0, kind: input, shape index: {}]   ;;  %s2962_s1 = inlined_call_operand.vmem [shape: bf16[2,4,512], index: 1, kind: input, shape index: {}]   ;;  %s2963_s2 = inlined_call_operand.vmem [shape: bf16[2,4,512], index: 2, kind: input, shape index: {}]   ;;  %s2964_s3 = inlined_call_operand.vmem [shape: bf16[8,288], index: 3, kind: input, shape index: {}]   ;;  %s2965_s4 = inlined_call_operand.vmem [shape: f32[8,1], index: 4, kind: input, shape index: {}]   ;;  %s2966_s5 = inlined_call_operand.vmem [shape: bf16[4,288], index: 5, kind: input, shape index: {}]   ;;  %s2967_s6 = inlined_call_operand.vmem [shape: f32[4,1], index: 6, kind: input, shape index: {}]   ;;  %s2968_s7 = inlined_call_operand.vmem [shape: bf16[1,256], index: 7, kind: input, shape index: {}]   ;;  %s2969_s8 = inlined_call_operand.vmem [shape: bf16[1,256], index: 8, kind: input, shape index: {}]   ;;  %s2970_s9 = inlined_call_operand.vmem [shape: f32[2,8,256], index: 9, kind: output, shape index: {0}]   ;;  %s2971_s10 = inlined_call_operand.vmem [shape: f32[2,4,256], index: 10, kind: output, shape index: {1}]  }
   0x1 LB: > { %s2034_s14 = sadd.s32 4294967295, %s2460_s13   ;;  %p2038_p0 = scmp.ge.s32.totalorder %s2460_s13, 1  ;;  %s2460_s13 = sphi %s2526_s13, %s21_s13  }
   0x2   : > { %p335_p1 = scmp.lt.s32.totalorder %s2460_s13, 3 }
   0x4   : > { %p336_p2 = pnand %p2038_p0, %p335_p1 }
   0x5   : > { %s2462_s17 = smov (!%p336_p2), 111   ;;  %s2463_s18 = smov (!%p336_p2), 15  }
   0x6   : > { %339 = sbr.rel (%p336_p2) target bundleno = 1188 (0x4a4), region = 56  ;;  %s2464_s19 = smov (!%p336_p2), 127  }
   0x7   : > { %p388_p3 = scmp.lt.s32.totalorder (!%p336_p2), %s2034_s14, 1  ;;  %s2465_s26 = smov (!%p336_p2), 17  }
   0x8   : > { %s2466_s27 = smov (!%p336_p2), 1   ;;  %s2467_s28 = smov (!%p336_p2), 113  }
   0x9   : > { %s2468_s29 = smov (!%p336_p2), 16   ;;  %s2469_s15 = smov (!%p336_p2), 112  }
   0xb   : > { %v450_v0 = vld [vmem:[%s2968_s7] sm:$0x3]  ;;  %vm470_vm0 = vcmask 1043456   ;;  %s2978_s14 = smov (!%p388_p3, %s2034_s14), 1  ;;  %vm475_vm1 = vcmask 908288   ;;  %vm548_vm2 = vcmask 924672  }
   0xc   : > { %454 = vst [vmem:[#allocation1] ss:$9 sm:$0xff] %v450_v0  ;;  %s2544_s20 = sshll.u32 %s2978_s14, 3  ;;  %v451_v22 = vld [vmem:[%s2969_s8] sm:$0x3]  ;;  %vm586_vm3 = vcmask 1039360  }
   0xd   : > { %s2550_s23 = scalar_lea.vmem %s2962_s1, %s2544_s20  ;;  %vm614_vm4 = vcmask 7168   ;;  %vm576_vm5 = vcmask 121856   ;;  %s2620_s12 = scalar_lea.vmem %s2963_s2, %s2544_s20  ;;  %vm504_vm6 = vcmask 138240   ;;  %vm2973_vm7 = vcmask 130048  }
   0xe   : > { %v452_v11 = vld [vmem:[%s2550_s23] sm:$0x3f]  ;;  %vm714_vm8 = vcmask 916480   ;;  %vm2972_vm9 = vcmask 261120   ;;  %s392_s30 = scalar_lea.vmem %s2961_s0, %s2544_s20  ;;  %s412_s21 = scalar_lea.vmem %s2971_s10, %s2544_s20 }
   0xf   : > { %v464_v12 = vunpack.c.h.bf16 %v452_v11  ;;  %v463_v14 = vunpack.c.l.bf16 %v452_v11  ;;  %v508_v19 = vld [vmem:[%s2550_s23] sm:$0x3f] }
  0x10   : > { %v526_v36 = vld [vmem:[%s2550_s23] sm:$0x3f] }
  0x11   : > { %v538_v37 = vunpack.c.h.bf16 %v526_v36  ;;  %v537_v38 = vunpack.c.l.bf16 %v526_v36  ;;  %v580_v44 = vld [vmem:[%s2550_s23] sm:$0x3f] }
  0x12   : > { %v582_v47 = vunpack.c.h.bf16 %v580_v44  ;;  %v581_v48 = vunpack.c.l.bf16 %v580_v44  ;;  %v624_v56 = vld [vmem:[%s2550_s23 + $0x2] sm:$0x3f] }
  0x13   : > { %v455_v1 = vld [vmem:[#allocation1] sm:$0xff]  ;;  %v456_v2 = vld [vmem:[#allocation1 + $0x9] sm:$0xff]  ;;  %v626_v59 = vunpack.c.h.bf16 %v624_v56 }
  0x14   : > { %v457_v3 = vpack.i.b16 %v455_v1, %v455_v1  ;;  %v460_v4 = vpack.i.b16 %v456_v2, %v456_v2  ;;  %v618_v61 = vld [vmem:[%s2550_s23 + $0x2] sm:$0xf] }
  0x15   : > { %v662_v63 = vld [vmem:[%s2550_s23 + $0x2] sm:$0x3f] }
  0x16   : > { %v459_v5 = vperm.slane %v457_v3, 0  ;;  %v462_v6 = vperm.slane %v460_v4, 0  ;;  %v803_v36 = vld [vmem:[%s2620_s12] sm:$0x3f] }
  0x18   : > { %v465_v7 = vunpack.c.l.bf16 %v459_v5  ;;  %v466_v8 = vunpack.c.l.bf16 %v462_v6  ;;  %v664_v5 = vunpack.c.h.bf16 %v662_v63 }
  0x1a   : > { %v469_v9 = vrot.slane %v466_v8, 4  ;;  %v625_v8 = vunpack.c.l.bf16 %v624_v56 }
  0x1c   : > { %v471_v10 = vsel %vm470_vm0, %v465_v7, %v469_v9 }
  0x1d   : > { %472 = vrot.lane.b32.xlu0 %v471_v10, %s2462_s17  ;;  %665 = vrot.lane.b32.xlu2 %v471_v10, %s2463_s18 }
  0x1e   : > { %583 = vrot.lane.b32.xlu1 %v471_v10, %s2464_s19 }
  0x77   : > { %v666_v62 = vpop.permute.xlu2 %665 }
  0x78   : > { %v2603_v6 = vrot.slane %v666_v62, 4 }
  0x7a   : > { %v673_v10 = vmul.f32 %v2603_v6, %v664_v5 }
  0x8f   : > { %v473_v13 = vpop.permute.xlu0 %472 }
  0x90   : > { %v2553_v15 = vrot.slane %v473_v13, 4  ;;  %v584_v43 = vpop.permute.xlu1 %583 }
  0x91   : > { %v2587_v46 = vrot.slane %v584_v43, 4 }
  0x92   : > { %v2557_v16 = vsel %vm475_vm1, %v2553_v15, %v473_v13  ;;  %v480_v17 = vmul.f32 %v2553_v15, %v464_v12  ;;  %v718_v12 = vld [vmem:[%s2550_s23 + $0x2] sm:$0x3f] }
  0x93   : > { %v479_v18 = vmul.f32 %v2557_v16, %v463_v14  ;;  %v2591_v49 = vsel %vm586_vm3, %v2587_v46, %v584_v43  ;;  %v591_v50 = vmul.f32 %v2587_v46, %v582_v47  ;;  %v719_v44 = vunpack.c.l.bf16 %v718_v12 }
  0x94   : > { %485 = vst [vmem:[#allocation1 + $0x10] ss:$2 sm:$0xff] %v480_v17  ;;  %v590_v51 = vmul.f32 %v2591_v49, %v581_v48  ;;  %v805_v47 = vunpack.c.h.bf16 %v803_v36 }
  0x95   : > { %483 = vst [vmem:[#allocation1] ss:$2 sm:$0xff] %v479_v18 }
  0x9b   : > { %v2569_v23 = vld.sshfl [vmem:[#allocation1 + $0x10] sm:$0xff pattern:$0x75316420] }
  0x9c   : > { %v2562_v20 = vld.sshfl [vmem:[#allocation1] sm:$0xff pattern:$0x75316420]  ;;  %v2564_v21 = vld.sshfl [vmem:[#allocation1 + $0x8] sm:$0xff pattern:$0x75316420] }
  0x9d   : > { %510 = vst [vmem:[#allocation1] ss:$2 sm:$0xff] %v508_v19  ;;  %v663_v19 = vunpack.c.l.bf16 %v662_v63 }
  0xa4   : > { %v511_v24 = vld.sshfl [vmem:[#allocation1] sm:$0xff pattern:$0x75643120]  ;;  %v513_v25 = vld.sshfl [vmem:[#allocation1 + $0x8] sm:$0xff pattern:$0x75643120] }
  0xa5   : > { %528 = vst [vmem:[#allocation1] ss:$9 sm:$0xff] %v451_v22  ;;  %v2624_v22 = vsel %vm576_vm5, %v2603_v6, %v666_v62 }
  0xac   : > { %v529_v26 = vld [vmem:[#allocation1] sm:$0xff]  ;;  %v530_v27 = vld [vmem:[#allocation1 + $0x9] sm:$0xff] }
  0xad   : > { %v531_v28 = vpack.i.b16 %v529_v26, %v529_v26  ;;  %v534_v29 = vpack.i.b16 %v530_v27, %v530_v27  ;;  %v756_v26 = vld [vmem:[%s2620_s12] sm:$0x3f]  ;;  %v672_v27 = vmul.f32 %v2624_v22, %v663_v19 }
  0xaf   : > { %v533_v30 = vperm.slane %v531_v28, 0  ;;  %v536_v31 = vperm.slane %v534_v29, 0 }
  0xb1   : > { %v539_v32 = vunpack.c.l.bf16 %v533_v30  ;;  %v540_v33 = vunpack.c.l.bf16 %v536_v31 }
  0xb3   : > { %v543_v34 = vrot.slane %v540_v33, 4 }
  0xb5   : > { %v544_v35 = vsel %vm470_vm0, %v539_v32, %v543_v34  ;;  %v758_v34 = vunpack.c.h.bf16 %v756_v26 }
  0xb6   : > { %721 = vrot.lane.b32.xlu2 %v544_v35, %s2465_s26  ;;  %627 = vrot.lane.b32.xlu1 %v544_v35, %s2466_s27 }
  0xb7   : > { %545 = vrot.lane.b32.xlu0 %v544_v35, %s2467_s28  ;;  %v700_v35 = vld [vmem:[%s2550_s23 + $0x2] sm:$0x3f] }
  0xbe   : > { %515 = vrot.lane.b32.xlu2 %v511_v24, %s2468_s29  ;;  %v720_v24 = vunpack.c.h.bf16 %v718_v12 }
  0xbf   : > { %517 = vrot.lane.b32.xlu0 %v513_v25, %s2468_s29 }
 0x110   : > { %v722_v14 = vpop.permute.xlu2 %721 }
 0x111   : > { %v2626_v25 = vrot.slane %v722_v14, 4 }
 0x113   : > { %v729_v28 = vmul.f32 %v2626_v25, %v720_v24 }
 0x128   : > { %v628_v57 = vpop.permute.xlu1 %627 }
 0x129   : > { %v546_v39 = vpop.permute.xlu0 %545  ;;  %v2598_v60 = vrot.slane %v628_v57, 4 }
 0x12a   : > { %v2578_v40 = vrot.slane %v546_v39, 4 }
 0x12b   : > { %v635_v0 = vmul.f32 %v2598_v60, %v626_v59  ;;  %v2608_v9 = vsel %vm614_vm4, %v2598_v60, %v628_v57 }
 0x12c   : > { %v2582_v41 = vsel %vm548_vm2, %v2578_v40, %v546_v39  ;;  %v553_v42 = vmul.f32 %v2578_v40, %v538_v37  ;;  %v634_v11 = vmul.f32 %v2608_v9, %v625_v8  ;;  %v760_v37 = vmul.f32 %v758_v34, %v2553_v15 }
 0x12d   : > { %v552_v45 = vmul.f32 %v2582_v41, %v537_v38 }
 0x12e   : > { %558 = vst [vmem:[#allocation1 + $0x10] ss:$2 sm:$0xff] %v553_v42 }
 0x12f   : > { %556 = vst [vmem:[#allocation1] ss:$2 sm:$0xff] %v552_v45  ;;  %v2642_v45 = vsel %vm504_vm6, %v2626_v25, %v722_v14  ;;  %v2674_v14 = vld [vmem:[%s2620_s12 + $0x2] sm:$0x3f] }
 0x130   : > { %v728_v48 = vmul.f32 %v2642_v45, %v719_v44 }
 0x135   : > { %v561_v52 = vld.sshfl [vmem:[#allocation1 + $0x10] sm:$0xff pattern:$0x75316420] }
 0x136   : > { %v559_v53 = vld.sshfl [vmem:[#allocation1] sm:$0xff pattern:$0x75316420]  ;;  %v560_v54 = vld.sshfl [vmem:[#allocation1 + $0x8] sm:$0xff pattern:$0x75316420]  ;;  %v566_v55 = vpack.c.bf16 %v561_v52, %v561_v52 }
 0x137   : > { %594 = vst [vmem:[#allocation1] ss:$2 sm:$0xff] %v590_v51  ;;  %v565_v58 = vpack.c.bf16 %v560_v54, %v559_v53  ;;  %v807_v51 = vmul.f32 %v805_v47, %v2578_v40 }
 0x138   : > { %596 = vst [vmem:[#allocation1 + $0x10] ss:$2 sm:$0xff] %v591_v50  ;;  %571 = vrot.lane.b32.xlu2 %v566_v55, %s2463_s18  ;;  %v833_v50 = vld [vmem:[%s2620_s12] sm:$0x3f]  ;;  %v757_v55 = vunpack.c.l.bf16 %v756_v26 }
 0x139   : > { %569 = vrot.lane.b32.xlu1 %v565_v58, %s2463_s18  ;;  %v835_v56 = vunpack.c.h.bf16 %v833_v50  ;;  %v2653_v58 = vld [vmem:[%s2620_s12 + $0x2] sm:$0x3f] }
 0x13a   : > { %v759_v57 = vmul.f32 %v757_v55, %v2557_v16 }
 0x13b   : > { %v837_v59 = vmul.f32 %v835_v56, %v2587_v46 }
 0x13e   : > { %v597_v1 = vld.sshfl [vmem:[#allocation1] sm:$0xff pattern:$0x75316420]  ;;  %v598_v2 = vld.sshfl [vmem:[#allocation1 + $0x8] sm:$0xff pattern:$0x75316420] }
 0x13f   : > { %v599_v3 = vld.sshfl [vmem:[#allocation1 + $0x10] sm:$0xff pattern:$0x75316420]  ;;  %620 = vst [vmem:[#allocation1] ss:$2 sm:$0xff] %v618_v61  ;;  %v603_v4 = vpack.c.bf16 %v598_v2, %v597_v1  ;;  %v871_v1 = vunpack.c.h.bf16 %v2653_v58 }
 0x140   : > { %640 = vst [vmem:[#allocation1 + $0x10] ss:$2 sm:$0xff] %v635_v0  ;;  %v604_v7 = vpack.c.bf16 %v599_v3, %v599_v3  ;;  %v786_v2 = vld [vmem:[%s2620_s12] sm:$0x3f] }
 0x141   : > { %607 = vrot.lane.b32.xlu0 %v603_v4, %s2466_s27  ;;  %v2664_v3 = vld [vmem:[%s2620_s12 + $0x2] sm:$0x3f]  ;;  %v873_v4 = vmul.f32 %v871_v1, %v2598_v60  ;;  %v516_v1 = vpop.permute.xlu2 %515 }
 0x142   : > { %609 = vrot.lane.b32.xlu1 %v604_v7, %s2466_s27  ;;  %v901_v12 = vunpack.c.h.bf16 %v2664_v3 }
 0x146   : > { %v2614_v13 = vld.sshfl [vmem:[#allocation1] sm:$0xff pattern:$0x75643120] }
 0x147   : > { %638 = vst [vmem:[#allocation1] ss:$2 sm:$0xff] %v634_v11  ;;  %v643_v17 = vld.sshfl [vmem:[#allocation1 + $0x10] sm:$0xff pattern:$0x75316420]  ;;  %v804_v11 = vunpack.c.l.bf16 %v803_v36 }
 0x148   : > { %678 = vst [vmem:[#allocation1 + $0x10] ss:$2 sm:$0xff] %v673_v10  ;;  %v648_v18 = vpack.c.bf16 %v643_v17, %v643_v17  ;;  %v863_v36 = vld [vmem:[%s2620_s12 + $0x2] sm:$0xf] }
 0x149   : > { %v806_v17 = vmul.f32 %v804_v11, %v2582_v41 }
 0x14a   : > { %653 = vrot.lane.b32.xlu2 %v648_v18, %s2464_s19  ;;  %v903_v18 = vmul.f32 %v901_v12, %v2603_v6  ;;  %v518_v12 = vpop.permute.xlu0 %517 }
 0x14e   : > { %v641_v29 = vld.sshfl [vmem:[#allocation1] sm:$0xff pattern:$0x75316420]  ;;  %v642_v30 = vld.sshfl [vmem:[#allocation1 + $0x8] sm:$0xff pattern:$0x75316420] }
 0x14f   : > { %v681_v31 = vld.sshfl [vmem:[#allocation1 + $0x10] sm:$0xff pattern:$0x75316420]  ;;  %v647_v32 = vpack.c.bf16 %v642_v30, %v641_v29  ;;  %676 = vst [vmem:[#allocation1] ss:$2 sm:$0xff] %v672_v27  ;;  %v948_v29 = vunpack.c.h.bf16 %v2674_v14 }
 0x150   : > { %v686_v33 = vpack.c.bf16 %v681_v31, %v681_v31  ;;  %734 = vst [vmem:[#allocation1 + $0x10] ss:$2 sm:$0xff] %v729_v28  ;;  %v834_v28 = vunpack.c.l.bf16 %v833_v50  ;;  %v2470_v50 = vmov 0  }
 0x151   : > { %651 = vrot.lane.b32.xlu1 %v647_v32, %s2464_s19  ;;  %v950_v31 = vmul.f32 %v948_v29, %v2626_v25  ;;  %418 = vst [vmem:[#allocation2 + $0x20] sm:$0xff] %v2470_v50  ;;  %2439 = vset.pattern.permute.xlu2 %v2470_v50 }
 0x152   : > { %691 = vrot.lane.b32.xlu0 %v686_v33, %s2467_s28  ;;  %v836_v30 = vmul.f32 %v834_v28, %v2591_v49  ;;  %414 = vst [vmem:[#allocation2] sm:$0xff] %v2470_v50  ;;  %2440 = vset.pattern.permute.xlu1 %v2470_v50  ;;  %v520_v28 = vrot.slane %v518_v12, 4 }
 0x153   : > { %415 = vst [vmem:[#allocation2 + $0x8] sm:$0xff] %v2470_v50  ;;  %2441 = vset.pattern.permute.xlu0 %v2470_v50 }
 0x154   : > { %416 = vst [vmem:[#allocation2 + $0x10] sm:$0xff] %v2470_v50 }
 0x155   : > { %417 = vst [vmem:[#allocation2 + $0x18] sm:$0xff] %v2470_v50 }
 0x156   : > { %v679_v38 = vld.sshfl [vmem:[#allocation1] sm:$0xff pattern:$0x75316420]  ;;  %v680_v39 = vld.sshfl [vmem:[#allocation1 + $0x8] sm:$0xff pattern:$0x75316420] }
 0x157   : > { %v685_v42 = vpack.c.bf16 %v680_v39, %v679_v38  ;;  %702 = vst [vmem:[#allocation1] ss:$2 sm:$0xff] %v700_v35  ;;  %v2637_v43 = vld.sshfl [vmem:[#allocation1 + $0x10] sm:$0xff pattern:$0x75316420] }
 0x158   : > { %765 = vst [vmem:[#allocation1 + $0x10] ss:$2 sm:$0xff] %v760_v37 }
 0x159   : > { %689 = vrot.lane.b32.xlu2 %v685_v42, %s2467_s28  ;;  %419 = vst [vmem:[#allocation2 + $0x28] sm:$0xff] %v2470_v50 }
 0x15a   : > { %420 = vst [vmem:[#allocation2 + $0x30] sm:$0xff] %v2470_v50 }
 0x15b   : > { %421 = vst [vmem:[#allocation2 + $0x38] sm:$0xff] %v2470_v50 }
 0x15c   : > { %422 = vst [vmem:[#allocation2 + $0x40] sm:$0xff] %v2470_v50 }
 0x15d   : > { %423 = vst [vmem:[#allocation2 + $0x48] sm:$0xff] %v2470_v50 }
 0x15e   : > { %v703_v52 = vld.sshfl [vmem:[#allocation1] sm:$0xff pattern:$0x75643120]  ;;  %v705_v53 = vld.sshfl [vmem:[#allocation1 + $0x8] sm:$0xff pattern:$0x75643120] }
 0x15f   : > { %707 = vrot.lane.b32.xlu0 %v703_v52, %s2469_s15  ;;  %732 = vst [vmem:[#allocation1] ss:$2 sm:$0xff] %v728_v48  ;;  %709 = vrot.lane.b32.xlu1 %v705_v53, %s2469_s15  ;;  %v2649_v54 = vld.sshfl [vmem:[#allocation1 + $0x10] sm:$0xff pattern:$0x75316420]  ;;  %v870_v48 = vunpack.c.l.bf16 %v2653_v58  ;;  %v900_v53 = vunpack.c.l.bf16 %v2664_v3  ;;  %v947_v3 = vunpack.c.l.bf16 %v2674_v14 }
 0x160   : > { %812 = vst [vmem:[#allocation1 + $0x10] ss:$2 sm:$0xff] %v807_v51 }
 0x161   : > { %v872_v51 = vmul.f32 %v870_v48, %v2608_v9  ;;  %v902_v55 = vmul.f32 %v900_v53, %v2624_v22  ;;  %424 = vst [vmem:[#allocation2 + $0x50] sm:$0xff] %v2470_v50 }
 0x162   : > { %425 = vst [vmem:[#allocation2 + $0x58] sm:$0xff] %v2470_v50 }
 0x163   : > { %426 = vst [vmem:[#allocation2 + $0x60] sm:$0xff] %v2470_v50 }
 0x164   : > { %427 = vst [vmem:[#allocation2 + $0x68] sm:$0xff] %v2470_v50 }
 0x165   : > { %428 = vst [vmem:[#allocation2 + $0x70] sm:$0xff] %v2470_v50 }
 0x166   : > { %v2656_v61 = vld.sshfl [vmem:[#allocation1] sm:$0xff pattern:$0x75316420]  ;;  %v2658_v62 = vld.sshfl [vmem:[#allocation1 + $0x8] sm:$0xff pattern:$0x75316420] }
 0x167   : > { %763 = vst [vmem:[#allocation1] ss:$2 sm:$0xff] %v759_v57  ;;  %v815_v63 = vld.sshfl [vmem:[#allocation1 + $0x10] sm:$0xff pattern:$0x75316420]  ;;  %v741_v48 = vpack.c.bf16 %v2658_v62, %v2656_v61 }
 0x168   : > { %v820_v0 = vpack.c.bf16 %v815_v63, %v815_v63  ;;  %842 = vst [vmem:[#allocation1 + $0x10] ss:$2 sm:$0xff] %v837_v59  ;;  %v929_v59 = vld [vmem:[%s2620_s12 + $0x2] sm:$0x3f] }
 0x169   : > { %429 = vst [vmem:[#allocation2 + $0x78] sm:$0xff] %v2470_v50 }
 0x16a   : > { %825 = vrot.lane.b32.xlu2 %v820_v0, %s2463_s18  ;;  %430 = vst [vmem:[#allocation2 + $0x80] sm:$0xff] %v2470_v50 }
 0x16b   : > { %431 = vst [vmem:[#allocation2 + $0x88] sm:$0xff] %v2470_v50 }
 0x16c   : > { %432 = vst [vmem:[#allocation2 + $0x90] sm:$0xff] %v2470_v50 }
 0x16d   : > { %433 = vst [vmem:[#allocation2 + $0x98] sm:$0xff] %v2470_v50 }
 0x16e   : > { %v2667_v5 = vld.sshfl [vmem:[#allocation1] sm:$0xff pattern:$0x75316420]  ;;  %v2669_v7 = vld.sshfl [vmem:[#allocation1 + $0x8] sm:$0xff pattern:$0x75316420] }
 0x16f   : > { %788 = vst [vmem:[#allocation1] ss:$2 sm:$0xff] %v786_v2  ;;  %v845_v8 = vld.sshfl [vmem:[#allocation1 + $0x10] sm:$0xff pattern:$0x75316420] }
 0x170   : > { %v850_v10 = vpack.c.bf16 %v845_v8, %v845_v8  ;;  %878 = vst [vmem:[#allocation1 + $0x10] ss:$2 sm:$0xff] %v873_v4  ;;  %v949_v4 = vmul.f32 %v947_v3, %v2642_v45 }
 0x171   : > { %434 = vst [vmem:[#allocation2 + $0xa0] sm:$0xff] %v2470_v50 }
 0x172   : > { %855 = vrot.lane.b32.xlu1 %v850_v10, %s2466_s27  ;;  %435 = vst [vmem:[#allocation2 + $0xa8] sm:$0xff] %v2470_v50 }
 0x173   : > { %436 = vst [vmem:[#allocation2 + $0xb0] sm:$0xff] %v2470_v50 }
 0x174   : > { %437 = vst [vmem:[#allocation2 + $0xb8] sm:$0xff] %v2470_v50 }
 0x175   : > { %438 = vst [vmem:[#allocation2 + $0xc0] sm:$0xff] %v2470_v50 }
 0x176   : > { %v2678_v19 = vld.sshfl [vmem:[#allocation1] sm:$0xff pattern:$0x75643120]  ;;  %v2680_v24 = vld.sshfl [vmem:[#allocation1 + $0x8] sm:$0xff pattern:$0x75643120] }
 0x177   : > { %v881_v26 = vld.sshfl [vmem:[#allocation1 + $0x10] sm:$0xff pattern:$0x75316420]  ;;  %810 = vst [vmem:[#allocation1] ss:$2 sm:$0xff] %v806_v17 }
 0x178   : > { %v886_v27 = vpack.c.bf16 %v881_v26, %v881_v26  ;;  %908 = vst [vmem:[#allocation1 + $0x10] ss:$2 sm:$0xff] %v903_v18  ;;  %v519_v26 = vrot.slane %v516_v1, 4 }
 0x179   : > { %439 = vst [vmem:[#allocation2 + $0xc8] sm:$0xff] %v2470_v50 }
 0x17a   : > { %891 = vrot.lane.b32.xlu0 %v886_v27, %s2464_s19  ;;  %440 = vst [vmem:[#allocation2 + $0xd0] sm:$0xff] %v2470_v50 }
 0x17b   : > { %441 = vst [vmem:[#allocation2 + $0xd8] sm:$0xff] %v2470_v50 }
 0x17c   : > { %442 = vst [vmem:[#allocation2 + $0xe0] sm:$0xff] %v2470_v50 }
 0x17d   : > { %443 = vst [vmem:[#allocation2 + $0xe8] sm:$0xff] %v2470_v50 }
 0x17e   : > { %v813_v32 = vld.sshfl [vmem:[#allocation1] sm:$0xff pattern:$0x75316420]  ;;  %v814_v33 = vld.sshfl [vmem:[#allocation1 + $0x8] sm:$0xff pattern:$0x75316420] }
 0x17f   : > { %v911_v34 = vld.sshfl [vmem:[#allocation1 + $0x10] sm:$0xff pattern:$0x75316420]  ;;  %840 = vst [vmem:[#allocation1] ss:$2 sm:$0xff] %v836_v30  ;;  %v819_v47 = vpack.c.bf16 %v814_v33, %v813_v32  ;;  %v492_v32 = vpack.c.bf16 %v2564_v21, %v2562_v20 }
 0x180   : > { %v916_v35 = vpack.c.bf16 %v911_v34, %v911_v34  ;;  %955 = vst [vmem:[#allocation1 + $0x10] ss:$2 sm:$0xff] %v950_v31  ;;  %v521_v34 = vsel %vm470_vm0, %v519_v26, %v520_v28 }
 0x181   : > { %444 = vst [vmem:[#allocation2 + $0xf0] sm:$0xff] %v2470_v50 }
 0x182   : > { %921 = vrot.lane.b32.xlu1 %v916_v35, %s2467_s28  ;;  %445 = vst [vmem:[#allocation2 + $0xf8] sm:$0xff] %v2470_v50  ;;  %v2751_v35 = vld [vmem:[%s2620_s12 + $0x2] sm:$0xf] }
 0x183   : > { %446 = vst [vmem:[#allocation2 + $0x100] sm:$0xff] %v2470_v50 }
 0x184   : > { %447 = vst [vmem:[#allocation2 + $0x108] sm:$0xff] %v2470_v50 }
 0x185   : > { %448 = vst [vmem:[#allocation2 + $0x110] sm:$0xff] %v2470_v50 }
 0x186   : > { %v843_v37 = vld.sshfl [vmem:[#allocation1] sm:$0xff pattern:$0x75316420]  ;;  %v844_v38 = vld.sshfl [vmem:[#allocation1 + $0x8] sm:$0xff pattern:$0x75316420] }
 0x187   : > { %v958_v39 = vld.sshfl [vmem:[#allocation1 + $0x10] sm:$0xff pattern:$0x75316420]  ;;  %v849_v42 = vpack.c.bf16 %v844_v38, %v843_v37  ;;  %865 = vst [vmem:[#allocation1] ss:$2 sm:$0xff] %v863_v36  ;;  %v523_v36 = vsel %vm2973_vm7, %v516_v1, %v521_v34  ;;  %v773_v38 = vpack.c.bf16 %v2649_v54, %v2649_v54 }
 0x188   : > { %v963_v44 = vpack.c.bf16 %v958_v39, %v958_v39  ;;  %449 = vst [vmem:[#allocation2 + $0x118] sm:$0xff] %v2470_v50  ;;  %v1331_v39 = vunpack.c.l.bf16 %v2751_v35  ;;  %v2355_v34 = vld [vmem:[#allocation2 + $0x24] sm:$0xf0]  ;;  %v1608_v35 = vld [vmem:[%s2967_s6] sm:$0xf] }
 0x189   : > { %853 = vrot.lane.b32.xlu0 %v849_v42, %s2466_s27  ;;  %1341 = vst [vmem:[#allocation3] sm:$0x3] %v2470_v50 }
 0x18a   : > { %968 = vrot.lane.b32.xlu2 %v963_v44, %s2462_s17  ;;  %823 = vrot.lane.b32.xlu1 %v819_v47, %s2463_s18  ;;  %1350 = vst [vmem:[#allocation3 + $0x6] sm:$0x3] %v2470_v50  ;;  %v493_v44 = vpack.c.bf16 %v2569_v23, %v2569_v23  ;;  %v772_v23 = vpack.c.bf16 %v2669_v7, %v2667_v5 }
 0x18b   : > { %525 = vst [vmem:[#allocation2 + $0x10] sm:$0x33] %v523_v36  ;;  %v742_v5 = vpack.c.bf16 %v2637_v43, %v2637_v43 }
 0x18c   : > { %623 = vst [vmem:[#allocation2 + $0x40] sm:$0x33] %v2614_v13 }
 0x18e   : > { %v2700_v52 = vld.sshfl [vmem:[#allocation1] sm:$0xff pattern:$0x75643120] }
 0x18f   : > { %876 = vst [vmem:[#allocation1] ss:$2 sm:$0xff] %v872_v51 }
 0x190   : > { %868 = vst [vmem:[#allocation2 + $0xd0] sm:$0x33] %v2700_v52 }
 0x192   : > { %v572_v11 = vpop.permute.xlu2 %571 }
 0x193   : > { %v574_v17 = vrot.slane %v572_v11, 4 }
 0x196   : > { %v879_v56 = vld.sshfl [vmem:[#allocation1] sm:$0xff pattern:$0x75316420]  ;;  %v880_v57 = vld.sshfl [vmem:[#allocation1 + $0x8] sm:$0xff pattern:$0x75316420] }
 0x197   : > { %v885_v58 = vpack.c.bf16 %v880_v57, %v879_v56  ;;  %906 = vst [vmem:[#allocation1] ss:$2 sm:$0xff] %v902_v55 }
 0x199   : > { %889 = vrot.lane.b32.xlu2 %v885_v58, %s2464_s19 }
 0x19e   : > { %v909_v63 = vld.sshfl [vmem:[#allocation1] sm:$0xff pattern:$0x75316420]  ;;  %v910_v0 = vld.sshfl [vmem:[#allocation1 + $0x8] sm:$0xff pattern:$0x75316420] }
 0x19f   : > { %v915_v2 = vpack.c.bf16 %v910_v0, %v909_v63  ;;  %931 = vst [vmem:[#allocation1] ss:$2 sm:$0xff] %v929_v59 }
 0x1a1   : > { %919 = vrot.lane.b32.xlu0 %v915_v2, %s2467_s28  ;;  %v2365_v2 = vld [vmem:[#allocation2 + $0x74] sm:$0xf0] }
 0x1a4   : > { %v654_v54 = vpop.permute.xlu2 %653 }
 0x1a5   : > { %v656_v50 = vrot.slane %v654_v54, 4 }
 0x1a6   : > { %v932_v8 = vld.sshfl [vmem:[#allocation1] sm:$0xff pattern:$0x75643120]  ;;  %v934_v10 = vld.sshfl [vmem:[#allocation1 + $0x8] sm:$0xff pattern:$0x75643120] }
 0x1a7   : > { %936 = vrot.lane.b32.xlu2 %v932_v8, %s2469_s15  ;;  %953 = vst [vmem:[#allocation1] ss:$2 sm:$0xff] %v949_v4 }
 0x1a9   : > { %938 = vrot.lane.b32.xlu0 %v934_v10, %s2469_s15  ;;  %v2363_v10 = vld [vmem:[#allocation2 + $0x64] sm:$0xf0] }
 0x1ab   : > { %v570_v14 = vpop.permute.xlu1 %569 }
 0x1ac   : > { %v573_v18 = vrot.slane %v570_v14, 4 }
 0x1ae   : > { %v575_v27 = vsel %vm470_vm0, %v573_v18, %v574_v17  ;;  %v956_v29 = vld.sshfl [vmem:[#allocation1] sm:$0xff pattern:$0x75316420]  ;;  %v957_v31 = vld.sshfl [vmem:[#allocation1 + $0x8] sm:$0xff pattern:$0x75316420] }
 0x1af   : > { %v577_v30 = vsel %vm576_vm5, %v570_v14, %v575_v27  ;;  %793 = vrot.lane.b32.xlu2 %v2678_v19, %s2468_s29  ;;  %v962_v33 = vpack.c.bf16 %v957_v31, %v956_v29  ;;  %1333 = vst [vmem:[#allocation1] ss:$2 sm:$0xff] %v1331_v39  ;;  %v2361_v14 = vld [vmem:[#allocation2 + $0x54] sm:$0xf0]  ;;  %v2083_v17 = vld [vmem:[#allocation2 + $0x40] sm:$0xf] }
 0x1b0   : > { %579 = vst [vmem:[#allocation2 + $0x20] sm:$0x33] %v577_v30  ;;  %v2359_v18 = vld [vmem:[#allocation2 + $0x44] sm:$0xf0]  ;;  %v2357_v30 = vld [vmem:[#allocation2 + $0x34] sm:$0xf0] }
 0x1b1   : > { %496 = vrot.lane.b32.xlu0 %v492_v32, %s2465_s26  ;;  %966 = vrot.lane.b32.xlu1 %v962_v33, %s2462_s17  ;;  %v2084_v27 = vor.u32 %v2359_v18, %v2083_v17 }
 0x1b3   : > { %v608_v19 = vpop.permute.xlu0 %607  ;;  %v690_v13 = vpop.permute.xlu2 %689 }
 0x1b4   : > { %v610_v20 = vpop.permute.xlu1 %609  ;;  %v611_v21 = vrot.slane %v608_v19, 4  ;;  %v693_v53 = vrot.slane %v690_v13, 4 }
 0x1b5   : > { %v612_v37 = vrot.slane %v610_v20, 4  ;;  %v2059_v20 = vld [vmem:[#allocation2 + $0x10] sm:$0xf] }
 0x1b7   : > { %v613_v42 = vsel %vm470_vm0, %v611_v21, %v612_v37  ;;  %778 = vrot.lane.b32.xlu2 %v773_v38, %s2465_s26  ;;  %v2067_v33 = vld [vmem:[#allocation2 + $0x20] sm:$0xf]  ;;  %v2353_v21 = vld [vmem:[#allocation2 + $0x14] sm:$0xf0] }
 0x1b8   : > { %v615_v47 = vsel %vm614_vm4, %v608_v19, %v613_v42  ;;  %v2068_v36 = vor.u32 %v2355_v34, %v2067_v33 }
 0x1b9   : > { %795 = vrot.lane.b32.xlu0 %v2680_v24, %s2468_s29  ;;  %498 = vrot.lane.b32.xlu1 %v493_v44, %s2465_s26  ;;  %617 = vst [vmem:[#allocation2 + $0x30] sm:$0x33] %v615_v47  ;;  %v2060_v47 = vor.u32 %v2353_v21, %v2059_v20 }
 0x1c0   : > { %v2075_v29 = vld [vmem:[#allocation2 + $0x30] sm:$0xf] }
 0x1c1   : > { %745 = vrot.lane.b32.xlu0 %v741_v48, %s2462_s17  ;;  %776 = vrot.lane.b32.xlu1 %v772_v23, %s2465_s26  ;;  %v2076_v32 = vor.u32 %v2357_v30, %v2075_v29  ;;  %v2377_v30 = vld [vmem:[#allocation2 + $0xd4] sm:$0xf0] }
 0x1c3   : > { %v652_v24 = vpop.permute.xlu1 %651 }
 0x1c4   : > { %v692_v51 = vpop.permute.xlu0 %691  ;;  %v655_v52 = vrot.slane %v652_v24, 4  ;;  %v826_v11 = vpop.permute.xlu2 %825 }
 0x1c5   : > { %v694_v55 = vrot.slane %v692_v51, 4  ;;  %v828_v51 = vrot.slane %v826_v11, 4 }
 0x1c6   : > { %v657_v56 = vsel %vm470_vm0, %v655_v52, %v656_v50 }
 0x1c7   : > { %v695_v57 = vsel %vm470_vm0, %v693_v53, %v694_v55  ;;  %v659_v61 = vsel %vm586_vm3, %v652_v24, %v657_v56 }
 0x1c8   : > { %v697_v62 = vsel %vm548_vm2, %v690_v13, %v695_v57  ;;  %661 = vst [vmem:[#allocation2 + $0x50] sm:$0x33] %v659_v61 }
 0x1c9   : > { %699 = vst [vmem:[#allocation2 + $0x60] sm:$0x33] %v697_v62  ;;  %747 = vrot.lane.b32.xlu1 %v742_v5, %s2462_s17 }
 0x1cf   : > { %v2091_v12 = vld [vmem:[#allocation2 + $0x50] sm:$0xf] }
 0x1d0   : > { %v2099_v8 = vld [vmem:[#allocation2 + $0x60] sm:$0xf]  ;;  %v2092_v26 = vor.u32 %v2361_v14, %v2091_v12  ;;  %v2379_v14 = vld [vmem:[#allocation2 + $0xe4] sm:$0xf0] }
 0x1d1   : > { %v710_v7 = vpop.permute.xlu1 %709  ;;  %v708_v58 = vpop.permute.xlu0 %707  ;;  %v2100_v43 = vor.u32 %v2363_v10, %v2099_v8 }
 0x1d2   : > { %v712_v59 = vrot.slane %v710_v7, 4  ;;  %v711_v63 = vrot.slane %v708_v58, 4 }
 0x1d4   : > { %v713_v0 = vsel %vm470_vm0, %v711_v63, %v712_v59 }
 0x1d5   : > { %v715_v1 = vsel %vm714_vm8, %v708_v58, %v713_v0 }
 0x1d6   : > { %717 = vst [vmem:[#allocation2 + $0x70] sm:$0x33] %v715_v1 }
 0x1dd   : > { %v2107_v3 = vld [vmem:[#allocation2 + $0x70] sm:$0xf] }
 0x1de   : > { %v2108_v4 = vor.u32 %v2365_v2, %v2107_v3  ;;  %v2381_v2 = vld [vmem:[#allocation2 + $0xf4] sm:$0xf0]  ;;  %v2173_v3 = vld [vmem:[#allocation2 + $0xf8] sm:$0xf0] }
 0x1e0   : > { %1214 = vmatpush.bf16.msra.mxu0 %v2108_v4 }
 0x1e4   : > { %1215 = vmatpush.bf16.msra.mxu0 %v2100_v43  ;;  %v2788_v28 = vpop.permute.xlu2 %968  ;;  %v856_v31 = vpop.permute.xlu1 %855 }
 0x1e5   : > { %v858_v13 = vrot.slane %v856_v31, 4  ;;  %v2376_v31 = vld [vmem:[#allocation2 + $0xd4] sm:$0xf]  ;;  %v971_v20 = vrot.slane %v2788_v28, 4 }
 0x1e8   : > { %1216 = vmatpush.bf16.msra.mxu0 %v2092_v26  ;;  %v2165_v26 = vld [vmem:[#allocation2 + $0xe8] sm:$0xf0] }
 0x1ec   : > { %1217 = vmatpush.bf16.msra.mxu0 %v2084_v27  ;;  %v892_v19 = vpop.permute.xlu0 %891  ;;  %v2155_v27 = vld [vmem:[#allocation2 + $0xd0] sm:$0xf] }
 0x1ed   : > { %v894_v38 = vrot.slane %v892_v19, 4 }
 0x1f0   : > { %1218 = vmatpush.bf16.msra.mxu0 %v2076_v32  ;;  %v2157_v32 = vld [vmem:[#allocation2 + $0xd8] sm:$0xf0] }
 0x1f3   : > { %v890_v37 = vpop.permute.xlu2 %889 }
 0x1f4   : > { %v922_v42 = vpop.permute.xlu1 %921  ;;  %v893_v44 = vrot.slane %v890_v37, 4  ;;  %1219 = vmatpush.bf16.msra.mxu0 %v2068_v36  ;;  %v2156_v36 = vor.u32 %v2377_v30, %v2155_v27  ;;  %v2362_v30 = vld [vmem:[#allocation2 + $0x64] sm:$0xf] }
 0x1f5   : > { %v924_v62 = vrot.slane %v922_v42, 4 }
 0x1f6   : > { %v895_v54 = vsel %vm470_vm0, %v893_v44, %v894_v38 }
 0x1f7   : > { %v896_v48 = vsel %vm586_vm3, %v890_v37, %v895_v54  ;;  %v2160_v37 = vor.u32 %v2376_v31, %v2157_v32  ;;  %v2149_v54 = vld [vmem:[#allocation2 + $0xc8] sm:$0xf0]  ;;  %v2371_v32 = vld [vmem:[#allocation2 + $0xa4] sm:$0xf0] }
 0x1f8   : > { %898 = vst [vmem:[#allocation2 + $0xe0] sm:$0x33] %v896_v48  ;;  %1220 = vmatpush.bf16.msra.mxu0 %v2060_v47  ;;  %v2375_v47 = vld [vmem:[#allocation2 + $0xc4] sm:$0xf0]  ;;  %v2101_v31 = vld [vmem:[#allocation2 + $0x68] sm:$0xf0] }
 0x1fb   : > { %v854_v23 = vpop.permute.xlu0 %853 }
 0x1fc   : > { %v824_v24 = vpop.permute.xlu1 %823  ;;  %v857_v50 = vrot.slane %v854_v23, 4 }
 0x1fd   : > { %v827_v52 = vrot.slane %v824_v24, 4 }
 0x1fe   : > { %v859_v53 = vsel %vm470_vm0, %v857_v50, %v858_v13 }
 0x1ff   : > { %v829_v55 = vsel %vm470_vm0, %v827_v52, %v828_v51  ;;  %v860_v56 = vsel %vm614_vm4, %v854_v23, %v859_v53  ;;  %v2163_v17 = vld [vmem:[#allocation2 + $0xe0] sm:$0xf]  ;;  %v2378_v18 = vld [vmem:[#allocation2 + $0xe4] sm:$0xf]  ;;  %v2373_v53 = vld [vmem:[#allocation2 + $0xb4] sm:$0xf0] }
 0x200   : > { %v830_v57 = vsel %vm576_vm5, %v824_v24, %v829_v55  ;;  %862 = vst [vmem:[#allocation2 + $0xc0] sm:$0x33] %v860_v56  ;;  %v2164_v34 = vor.u32 %v2379_v14, %v2163_v17  ;;  %v2168_v19 = vor.u32 %v2378_v18, %v2165_v26  ;;  %v2141_v55 = vld [vmem:[#allocation2 + $0xb8] sm:$0xf0] }
 0x201   : > { %832 = vst [vmem:[#allocation2 + $0xb0] sm:$0x33] %v830_v57  ;;  %v937_v59 = vpop.permute.xlu2 %936  ;;  %v2109_v14 = vld [vmem:[#allocation2 + $0x78] sm:$0xf0] }
 0x202   : > { %v940_v63 = vrot.slane %v937_v59, 4  ;;  %v2813_v17 = vld [vmem:[%s2964_s3] sm:$0xff] }
 0x207   : > { %v2147_v48 = vld [vmem:[#allocation2 + $0xc0] sm:$0xf]  ;;  %v2374_v23 = vld [vmem:[#allocation2 + $0xc4] sm:$0xf] }
 0x208   : > { %v2148_v51 = vor.u32 %v2375_v47, %v2147_v48  ;;  %v2152_v52 = vor.u32 %v2374_v23, %v2149_v54 }
 0x209   : > { %v794_v42 = vpop.permute.xlu2 %793 }
 0x20a   : > { %v797_v13 = vrot.slane %v794_v42, 4 }
 0x213   : > { %v920_v61 = vpop.permute.xlu0 %919 }
 0x214   : > { %v923_v5 = vrot.slane %v920_v61, 4 }
 0x216   : > { %v925_v7 = vsel %vm470_vm0, %v923_v5, %v924_v62  ;;  %v2372_v62 = vld [vmem:[#allocation2 + $0xb4] sm:$0xf] }
 0x217   : > { %v926_v58 = vsel %vm548_vm2, %v920_v61, %v925_v7  ;;  %v2139_v61 = vld [vmem:[#allocation2 + $0xb0] sm:$0xf]  ;;  %v2385_v7 = vld [vmem:[#allocation2 + $0x114] sm:$0xf0] }
 0x218   : > { %928 = vst [vmem:[#allocation2 + $0xf0] sm:$0x33] %v926_v58 }
 0x21b   : > { %v939_v0 = vpop.permute.xlu0 %938 }
 0x21c   : > { %v941_v1 = vrot.slane %v939_v0, 4 }
 0x21e   : > { %v942_v4 = vsel %vm470_vm0, %v940_v63, %v941_v1  ;;  %v977_v63 = vld [vmem:[%s2964_s3 + $0x8] sm:$0xf]  ;;  %v2140_v1 = vor.u32 %v2373_v53, %v2139_v61  ;;  %v2360_v53 = vld [vmem:[#allocation2 + $0x54] sm:$0xf] }
 0x21f   : > { %v943_v8 = vsel %vm714_vm8, %v937_v59, %v942_v4  ;;  %v2171_v10 = vld [vmem:[#allocation2 + $0xf0] sm:$0xf]  ;;  %v2380_v43 = vld [vmem:[#allocation2 + $0xf4] sm:$0xf] }
 0x220   : > { %945 = vst [vmem:[#allocation2 + $0x100] sm:$0x33] %v943_v8  ;;  %v2172_v11 = vor.u32 %v2381_v2, %v2171_v10  ;;  %v2176_v12 = vor.u32 %v2380_v43, %v2173_v3  ;;  %v2144_v3 = vor.u32 %v2372_v62, %v2141_v55  ;;  %v779_v8 = vpop.permute.xlu2 %778  ;;  %v2383_v43 = vld [vmem:[#allocation2 + $0x104] sm:$0xf0]  ;;  %v2400_v61 = vld [vmem:[#allocation2 + $0x74] sm:$0xf] }
 0x221   : > { %v781_v26 = vrot.slane %v779_v8, 4  ;;  %v2257_v62 = vld [vmem:[#allocation2 + $0x78] sm:$0xf0]  ;;  %v2249_v8 = vld [vmem:[#allocation2 + $0x68] sm:$0xf0] }
 0x222   : > { %1227 = vmatpush.bf16.msra.mxu1 %v2172_v11  ;;  %1266 = vmatpush.bf16.msra.mxu2 %v2176_v12  ;;  %v1024_v11 = vunpack.c.l.b16 %v977_v63  ;;  %v2364_v12 = vld [vmem:[#allocation2 + $0x74] sm:$0xf] }
 0x223   : > { %v497_v29 = vpop.permute.xlu0 %496  ;;  %v967_v33 = vpop.permute.xlu1 %966 }
 0x224   : > { %v970_v21 = vrot.slane %v967_v33, 4  ;;  %v500_v56 = vrot.slane %v497_v29, 4 }
 0x226   : > { %1228 = vmatpush.bf16.msra.mxu1 %v2164_v34  ;;  %1267 = vmatpush.bf16.msra.mxu2 %v2168_v19  ;;  %v972_v38 = vsel %vm470_vm0, %v970_v21, %v971_v20  ;;  %v2112_v34 = vor.u32 %v2364_v12, %v2109_v14  ;;  %v2351_v19 = vld [vmem:[#allocation2 + $0x4] sm:$0xf0]  ;;  %v2189_v20 = vld [vmem:[#allocation2 + $0x118] sm:$0xf0]  ;;  %v2815_v21 = vpack.c.b16 %v1024_v11, %v1024_v11  ;;  %v2398_v14 = vld [vmem:[#allocation2 + $0x64] sm:$0xf] }
 0x227   : > { %v973_v44 = vsel %vm475_vm1, %v967_v33, %v972_v38  ;;  %v2179_v10 = vld [vmem:[#allocation2 + $0x100] sm:$0xf]  ;;  %v2133_v33 = vld [vmem:[#allocation2 + $0xa8] sm:$0xf0]  ;;  %v2382_v55 = vld [vmem:[#allocation2 + $0x104] sm:$0xf] }
 0x228   : > { %975 = vst [vmem:[#allocation2 + $0x110] sm:$0x33] %v973_v44 }
 0x22a   : > { %1229 = vmatpush.bf16.msra.mxu1 %v2156_v36  ;;  %1268 = vmatpush.bf16.msra.mxu2 %v2160_v37  ;;  %v1022_v36 = vunpack.c.l.b16 %v2813_v17 }
 0x22b   : > { %v796_v24 = vpop.permute.xlu0 %795  ;;  %v499_v28 = vpop.permute.xlu1 %498 }
 0x22c   : > { %v798_v50 = vrot.slane %v796_v24, 4  ;;  %v501_v57 = vrot.slane %v499_v28, 4  ;;  %v2104_v28 = vor.u32 %v2362_v30, %v2101_v31  ;;  %v2077_v30 = vld [vmem:[#allocation2 + $0x38] sm:$0xf0]  ;;  %v2396_v31 = vld [vmem:[#allocation2 + $0x54] sm:$0xf] }
 0x22e   : > { %v799_v5 = vsel %vm470_vm0, %v797_v13, %v798_v50  ;;  %1230 = vmatpush.bf16.msra.mxu1 %v2148_v51  ;;  %1269 = vmatpush.bf16.msra.mxu2 %v2152_v52  ;;  %v503_v58 = vsel %vm470_vm0, %v500_v56, %v501_v57  ;;  %v2093_v51 = vld [vmem:[#allocation2 + $0x58] sm:$0xf0]  ;;  %v2822_v52 = vpack.c.b16 %v1022_v36, %v1022_v36  ;;  %v2181_v56 = vld [vmem:[#allocation2 + $0x108] sm:$0xf0]  ;;  %v2394_v36 = vld [vmem:[#allocation2 + $0x44] sm:$0xf] }
 0x22f   : > { %v800_v59 = vsel %vm2973_vm7, %v794_v42, %v799_v5  ;;  %v505_v0 = vsel %vm504_vm6, %v497_v29, %v503_v58  ;;  %v2187_v2 = vld [vmem:[#allocation2 + $0x110] sm:$0xf]  ;;  %v2180_v29 = vor.u32 %v2383_v43, %v2179_v10  ;;  %v2384_v38 = vld [vmem:[#allocation2 + $0x114] sm:$0xf]  ;;  %v2358_v58 = vld [vmem:[#allocation2 + $0x44] sm:$0xf]  ;;  %v2096_v63 = vor.u32 %v2360_v53, %v2093_v51 }
 0x230   : > { %802 = vst [vmem:[#allocation2 + $0xa0] sm:$0x33] %v800_v59  ;;  %v2188_v4 = vor.u32 %v2385_v7, %v2187_v2  ;;  %v2192_v50 = vor.u32 %v2384_v38, %v2189_v20  ;;  %v2085_v59 = vld [vmem:[#allocation2 + $0x48] sm:$0xf0]  ;;  %v2125_v2 = vld [vmem:[#allocation2 + $0x98] sm:$0xf0]  ;;  %v1023_v38 = vunpack.c.h.b16 %v2813_v17 }
 0x231   : > { %507 = vst [vmem:[#allocation2] sm:$0x33] %v505_v0  ;;  %v2184_v0 = vor.u32 %v2382_v55, %v2181_v56  ;;  %v2088_v12 = vor.u32 %v2358_v58, %v2085_v59  ;;  %v2117_v20 = vld [vmem:[#allocation2 + $0x88] sm:$0xf0]  ;;  %v2399_v17 = vld [vmem:[#allocation2 + $0x64] sm:$0xf0] }
 0x232   : > { %1231 = vmatpush.bf16.msra.mxu1 %v2140_v1  ;;  %1270 = vmatpush.bf16.msra.mxu2 %v2144_v3  ;;  %v2369_v1 = vld [vmem:[#allocation2 + $0x94] sm:$0xf0]  ;;  %v1026_v55 = vpack.c.b16 %v1023_v38, %v1023_v38  ;;  %v2352_v56 = vld [vmem:[#allocation2 + $0x14] sm:$0xf] }
 0x233   : > { %1246 = vmatpush.bf16.msra.mxu3 %v2188_v4  ;;  %v777_v18 = vpop.permute.xlu1 %776  ;;  %v746_v24 = vpop.permute.xlu0 %745  ;;  %v2260_v4 = vor.u32 %v2400_v61, %v2257_v62  ;;  %v2247_v61 = vld [vmem:[#allocation2 + $0x60] sm:$0xf]  ;;  %v2392_v62 = vld [vmem:[#allocation2 + $0x34] sm:$0xf]  ;;  %v2397_v59 = vld [vmem:[#allocation2 + $0x54] sm:$0xf0] }
 0x234   : > { %v780_v27 = vrot.slane %v777_v18, 4  ;;  %v749_v5 = vrot.slane %v746_v24, 4  ;;  %v2248_v58 = vor.u32 %v2399_v17, %v2247_v61 }
 0x236   : > { %v782_v37 = vsel %vm470_vm0, %v780_v27, %v781_v26  ;;  %v2252_v27 = vor.u32 %v2398_v14, %v2249_v8  ;;  %v2231_v8 = vld [vmem:[#allocation2 + $0x40] sm:$0xf] }
 0x237   : > { %1247 = vmatpush.bf16.msra.mxu3 %v2180_v29  ;;  %v2131_v42 = vld [vmem:[#allocation2 + $0xa0] sm:$0xf]  ;;  %v2370_v44 = vld [vmem:[#allocation2 + $0xa4] sm:$0xf]  ;;  %v783_v47 = vsel %vm504_vm6, %v777_v18, %v782_v37  ;;  %v2356_v29 = vld [vmem:[#allocation2 + $0x34] sm:$0xf] }
 0x238   : > { %v2051_v54 = vld [vmem:[#allocation2] sm:$0xf]  ;;  %v2132_v48 = vor.u32 %v2371_v32, %v2131_v42  ;;  %v2136_v23 = vor.u32 %v2370_v44, %v2133_v33  ;;  %785 = vst [vmem:[#allocation2 + $0x90] sm:$0x33] %v783_v47  ;;  %v2241_v32 = vld [vmem:[#allocation2 + $0x58] sm:$0xf0] }
 0x239   : > { %v2052_v13 = vor.u32 %v2351_v19, %v2051_v54  ;;  %v2367_v33 = vld [vmem:[#allocation2 + $0x84] sm:$0xf0]  ;;  %v2080_v19 = vor.u32 %v2356_v29, %v2077_v30  ;;  %v2233_v37 = vld [vmem:[#allocation2 + $0x48] sm:$0xf0]  ;;  %v2244_v42 = vor.u32 %v2396_v31, %v2241_v32  ;;  %v2354_v44 = vld [vmem:[#allocation2 + $0x24] sm:$0xf] }
 0x23a   : > { %1232 = vmatpush.bf16.msra.mxu1 %v2132_v48  ;;  %2193 = vmatmul.msk.bf16.vlgmr.msra.gmra.mxu3 %vm2972_vm9, %v2815_v21  ;;  %v2255_v47 = vld [vmem:[#allocation2 + $0x70] sm:$0xf]  ;;  %v2401_v54 = vld [vmem:[#allocation2 + $0x74] sm:$0xf0]  ;;  %v2386_v30 = vld [vmem:[#allocation2 + $0x4] sm:$0xf] }
 0x23b   : > { %1253 = vmatpush.bf16.msrb.mxu3 %v2112_v34  ;;  %1221 = vmatpush.bf16.msra.mxu0 %v2052_v13  ;;  %v748_v57 = vpop.permute.xlu1 %747  ;;  %v2069_v34 = vld [vmem:[#allocation2 + $0x28] sm:$0xf0]  ;;  %v1014_v13 = vld [vmem:[%s2965_s4] sm:$0xff]  ;;  %v2256_v53 = vor.u32 %v2401_v54, %v2255_v47 }
 0x23c   : > { %1271 = vmatpush.bf16.msra.mxu2 %v2136_v23  ;;  %v750_v7 = vrot.slane %v748_v57, 4  ;;  %1017 = vperm.xlu2 %2439, %v1014_v13   ;;  %v2072_v51 = vor.u32 %v2354_v44, %v2069_v34  ;;  %v2061_v57 = vld [vmem:[#allocation2 + $0x18] sm:$0xf0]  ;;  %v2393_v29 = vld [vmem:[#allocation2 + $0x34] sm:$0xf0] }
 0x23d   : > { %v2201_v31 = vld [vmem:[#allocation2 + $0x8] sm:$0xf0]  ;;  %v2215_v34 = vld [vmem:[#allocation2 + $0x20] sm:$0xf] }
 0x23e   : > { %1222 = vmatmul.bf16.vlgmr.msra.gmra.mxu0 %v2822_v52  ;;  %v751_v3 = vsel %vm470_vm0, %v749_v5, %v750_v7  ;;  %v2225_v5 = vld [vmem:[#allocation2 + $0x38] sm:$0xf0]  ;;  %v2064_v7 = vor.u32 %v2352_v56, %v2061_v57 }
 0x23f   : > { %1254 = vmatpush.bf16.msrb.mxu3 %v2104_v28  ;;  %1285 = vmatpush.bf16.msrb.mxu0 %v2192_v50  ;;  %v753_v10 = vsel %vm475_vm1, %v746_v24, %v751_v3  ;;  %v2123_v43 = vld [vmem:[#allocation2 + $0x90] sm:$0xf]  ;;  %v2368_v11 = vld [vmem:[#allocation2 + $0x94] sm:$0xf]  ;;  %v2236_v50 = vor.u32 %v2394_v36, %v2233_v37  ;;  %v2390_v3 = vld [vmem:[#allocation2 + $0x24] sm:$0xf] }
 0x240   : > { %755 = vst [vmem:[#allocation2 + $0x80] sm:$0x33] %v753_v10  ;;  %v2124_v18 = vor.u32 %v2369_v1, %v2123_v43  ;;  %v2128_v26 = vor.u32 %v2368_v11, %v2125_v2  ;;  %v2053_v1 = vld [vmem:[#allocation2 + $0x8] sm:$0xf0]  ;;  %v2239_v2 = vld [vmem:[#allocation2 + $0x50] sm:$0xf] }
 0x241   : > { %v2395_v10 = vld [vmem:[#allocation2 + $0x44] sm:$0xf0]  ;;  %v2240_v11 = vor.u32 %v2397_v59, %v2239_v2  ;;  %v2207_v36 = vld [vmem:[#allocation2 + $0x10] sm:$0xf]  ;;  %v2389_v37 = vld [vmem:[#allocation2 + $0x14] sm:$0xf0] }
 0x242   : > { %1233 = vmatpush.bf16.msra.mxu1 %v2124_v18  ;;  %1272 = vmatpush.bf16.msra.mxu2 %v2128_v26  ;;  %v2232_v14 = vor.u32 %v2395_v10, %v2231_v8  ;;  %v2388_v18 = vld [vmem:[#allocation2 + $0x14] sm:$0xf]  ;;  %v2209_v26 = vld [vmem:[#allocation2 + $0x18] sm:$0xf0]  ;;  %v2208_v38 = vor.u32 %v2389_v37, %v2207_v36 }
 0x243   : > { %1255 = vmatpush.bf16.msrb.mxu3 %v2096_v63  ;;  %1286 = vmatpush.bf16.msrb.mxu0 %v2184_v0  ;;  %v2228_v63 = vor.u32 %v2392_v62, %v2225_v5  ;;  %v2350_v0 = vld [vmem:[#allocation2 + $0x4] sm:$0xf] }
 0x244   : > { %v2056_v43 = vor.u32 %v2350_v0, %v2053_v1  ;;  %v1335_v36 = vld.sshfl [vmem:[#allocation1 + $0x8] sm:$0xff pattern:$0x75316420] }
 0x247   : > { %1842 = vmatpush.bf16.msra.mxu0 %v2260_v4  ;;  %1256 = vmatpush.bf16.msrb.mxu3 %v2088_v12  ;;  %v2115_v48 = vld [vmem:[#allocation2 + $0x80] sm:$0xf]  ;;  %v2366_v23 = vld [vmem:[#allocation2 + $0x84] sm:$0xf]  ;;  %v2217_v4 = vld [vmem:[#allocation2 + $0x28] sm:$0xf0] }
 0x248   : > { %v2116_v24 = vor.u32 %v2367_v33, %v2115_v48  ;;  %v2120_v28 = vor.u32 %v2366_v23, %v2117_v20  ;;  %v2220_v12 = vor.u32 %v2390_v3, %v2217_v4  ;;  %v2204_v33 = vor.u32 %v2386_v30, %v2201_v31 }
 0x24a   : > { %1234 = vmatpush.bf16.msra.mxu1 %v2116_v24  ;;  %1273 = vmatpush.bf16.msra.mxu2 %v2120_v28 }
 0x24b   : > { %1843 = vmatpush.bf16.msra.mxu0 %v2252_v27  ;;  %1257 = vmatpush.bf16.msrb.mxu3 %v2080_v19  ;;  %v2212_v27 = vor.u32 %v2388_v18, %v2209_v26  ;;  %v2391_v19 = vld [vmem:[#allocation2 + $0x24] sm:$0xf0] }
 0x24c   : > { %v2216_v20 = vor.u32 %v2391_v19, %v2215_v34 }
 0x24d   : > { %1235 = vmatmul.bf16.vlgmr.msra.gmra.mxu1 %v1026_v55  ;;  %1274 = vmatmul.bf16.vlgmr.msra.gmra.mxu2 %v1026_v55 }
 0x24e   : > { %1803 = vmatpush.bf16.msrb.mxu1 %v2256_v53  ;;  %2194 = vmatmul.msk.bf16.vlgmr.msrb.gmra.mxu0 %vm2972_vm9, %v2815_v21  ;;  %v2223_v21 = vld [vmem:[#allocation2 + $0x30] sm:$0xf] }
 0x24f   : > { %1844 = vmatpush.bf16.msra.mxu0 %v2244_v42  ;;  %1258 = vmatpush.bf16.msrb.mxu3 %v2072_v51  ;;  %v2224_v32 = vor.u32 %v2393_v29, %v2223_v21  ;;  %v2199_v42 = vld [vmem:[#allocation2] sm:$0xf] }
 0x252   : > { %1804 = vmatpush.bf16.msrb.mxu1 %v2248_v58 }
 0x253   : > { %1845 = vmatpush.bf16.msra.mxu0 %v2236_v50  ;;  %1259 = vmatpush.bf16.msrb.mxu3 %v2064_v7 }
 0x256   : > { %1805 = vmatpush.bf16.msrb.mxu1 %v2240_v11 }
 0x257   : > { %1846 = vmatpush.bf16.msra.mxu0 %v2228_v63  ;;  %1260 = vmatpush.bf16.msrb.mxu3 %v2056_v43 }
 0x25a   : > { %1261 = vmatmul.bf16.vlgmr.msrb.gmra.mxu3 %v2822_v52  ;;  %1806 = vmatpush.bf16.msrb.mxu1 %v2232_v14  ;;  %v2387_v52 = vld [vmem:[#allocation2 + $0x4] sm:$0xf0] }
 0x25b   : > { %1847 = vmatpush.bf16.msra.mxu0 %v2220_v12  ;;  %v2200_v44 = vor.u32 %v2387_v52, %v2199_v42 }
 0x25e   : > { %1807 = vmatpush.bf16.msrb.mxu1 %v2224_v32 }
 0x25f   : > { %1848 = vmatpush.bf16.msra.mxu0 %v2212_v27 }
 0x262   : > { %1808 = vmatpush.bf16.msrb.mxu1 %v2216_v20 }
 0x263   : > { %1849 = vmatpush.bf16.msra.mxu0 %v2204_v33  ;;  %v1334_v33 = vld.sshfl [vmem:[#allocation1] sm:$0xff pattern:$0x75316420] }
 0x266   : > { %1809 = vmatpush.bf16.msrb.mxu1 %v2208_v38 }
 0x26a   : > { %1810 = vmatpush.bf16.msrb.mxu1 %v2200_v44 }
 0x296   : > { %v1018_v23 = vpop.permute.xlu2 %1017 }
 0x2bb   : > { %v1223_v47 = vpop.f32.mrf.mxu0 }
 0x2bc   : > { %v1224_v24 = vadd.f32 %v1223_v47, %v1018_v23 }
 0x2bd   : > { %v1249_v54 = vpop.f32.mrf.mxu3 }
 0x2c3   : > { %v1225_v48 = vpop.f32.mrf.mxu0 }
 0x2c5   : > { %v1251_v13 = vpop.f32.mrf.mxu3 }
 0x2ca   : > { %v1236_v28 = vpop.f32.mrf.mxu1 }
 0x2cb   : > { %v1237_v50 = vadd.f32 %v1236_v28, %v1224_v24  ;;  %v1288_v51 = vpop.f32.mrf.mxu0 }
 0x2cd   : > { %v1250_v53 = vadd.f32 %v1249_v54, %v1237_v50 }
 0x2cf   : > { %v2195_v55 = vmul.f32 -1.442695, %v1250_v53 }
 0x2d0   : > { %v1275_v17 = vpop.f32.mrf.mxu2 }
 0x2d1   : > { %2442 = vpow2.f32 %v2195_v55 }
 0x2d2   : > { %v1238_v56 = vpop.f32.mrf.mxu1 }
 0x2d3   : > { %v1290_v57 = vpop.f32.mrf.mxu0 }
 0x2d7   : > { %v2443_v61 = vpop.eup %2442 }
 0x2d8   : > { %v1277_v62 = vpop.f32.mrf.mxu2  ;;  %v1298_v7 = vadd.f32 1.0, %v2443_v61 }
 0x2da   : > { %2444 = vrcp.f32 %v1298_v7  ;;  %v1311_v18 = vand.u32 2147483648, %v1298_v7  ;;  %vm1305_vm11 = vweird.f32 %v1298_v7  ;;  %v1309_v26 = vand.u32 2147483647, %v1298_v7 }
 0x2dc   : > { %v1312_v32 = vor.u32 1.1754944e-38, %v1311_v18  ;;  %vm1310_vm14 = vcmp.eq.f32.partialorder %v1309_v26, 8.507059e+37 }
 0x2dd   : > { %v1262_v5 = vpop.f32.mrf.mxu3 }
 0x2de   : > { %v1263_v58 = vadd.f32 %v1262_v5, %v1018_v23 }
 0x2e0   : > { %v1276_v59 = vadd.f32 %v1275_v17, %v1263_v58  ;;  %v2445_v2 = vpop.eup %2444 }
 0x2e1   : > { %v1301_v3 = vmul.f32 %v2445_v2, %v1298_v7  ;;  %vm1306_vm10 = vweird.f32 %v2445_v2 }
 0x2e2   : > { %v1289_v63 = vadd.f32 %v1288_v51, %v1276_v59  ;;  %vm1307_vm12 = vmor %vm1305_vm11, %vm1306_vm10  ;;  %vm1344_vm10 = vcmask 1041408  }
 0x2e3   : > { %v1302_v10 = vsub.f32 1.0, %v1301_v3 }
 0x2e4   : > { %v2196_v0 = vmul.f32 -1.442695, %v1289_v63 }
 0x2e5   : > { %v1264_v1 = vpop.f32.mrf.mxu3  ;;  %v1303_v43 = vmul.f32 %v2445_v2, %v1302_v10 }
 0x2e6   : > { %2446 = vpow2.f32 %v2196_v0 }
 0x2e7   : > { %v1304_v12 = vadd.f32 %v2445_v2, %v1303_v43 }
 0x2e9   : > { %v1308_v29 = vsel %vm1307_vm12, %v2445_v2, %v1304_v12 }
 0x2ea   : > { %v2834_v19 = vsel %vm1310_vm14, %v1312_v32, %v1308_v29 }
 0x2eb   : > { %v1338_v42 = vmul.f32 %v1334_v33, %v2834_v19 }
 0x2ec   : > { %v2447_v4 = vpop.eup %2446 }
 0x2ed   : > { %v1299_v8 = vadd.f32 1.0, %v2447_v4 }
 0x2ef   : > { %2448 = vrcp.f32 %v1299_v8  ;;  %v1326_v21 = vand.u32 2147483648, %v1299_v8  ;;  %v1324_v31 = vand.u32 2147483647, %v1299_v8  ;;  %vm1320_vm15 = vweird.f32 %v1299_v8 }
 0x2f1   : > { %v1327_v20 = vor.u32 1.1754944e-38, %v1326_v21  ;;  %vm1325_vm7 = vcmp.eq.f32.partialorder %v1324_v31, 8.507059e+37 }
 0x2f5   : > { %v2449_v11 = vpop.eup %2448 }
 0x2f6   : > { %v1316_v14 = vmul.f32 %v2449_v11, %v1299_v8  ;;  %vm1321_vm13 = vweird.f32 %v2449_v11 }
 0x2f7   : > { %vm1322_vm9 = vmor %vm1320_vm15, %vm1321_vm13 }
 0x2f8   : > { %v1317_v27 = vsub.f32 1.0, %v1316_v14 }
 0x2fa   : > { %v1318_v30 = vmul.f32 %v2449_v11, %v1317_v27 }
 0x2fc   : > { %v1319_v34 = vadd.f32 %v2449_v11, %v1318_v30 }
 0x2fe   : > { %v1323_v37 = vsel %vm1322_vm9, %v2449_v11, %v1319_v34 }
 0x2ff   : > { %v2836_v38 = vsel %vm1325_vm7, %v1327_v20, %v1323_v37 }
 0x300   : > { %v1339_v52 = vmul.f32 %v1335_v36, %v2836_v38 }
 0x302   : > { %v1340_v44 = vpack.c.bf16 %v1339_v52, %v1338_v42 }
 0x304   : > { %v1343_v47 = vrot.slane %v1340_v44, 2 }
 0x306   : > { %v1347_v54 = vsel %vm1344_vm10, %v1340_v44, %v1343_v47 }
 0x307   : > { %1349 = vst [vmem:[#allocation3 + $0x2] sm:$0xf] %v1347_v54 }
 0x30e   : > { %v1351_v48 = vld [vmem:[#allocation3] sm:$0x3f] }
 0x30f   : > { %v1352_v23 = vunpack.c.l.bf16 %v1351_v48  ;;  %v1353_v13 = vunpack.c.h.bf16 %v1351_v48  ;;  %v1398_v50 = vld [vmem:[#allocation3] sm:$0x3f] }
 0x310   : > { %v1400_v51 = vunpack.c.h.bf16 %v1398_v50  ;;  %v1381_v53 = vld [vmem:[#allocation3] sm:$0x3f]  ;;  %v1399_v62 = vunpack.c.l.bf16 %v1398_v50 }
 0x311   : > { %v1354_v24 = vmul.f32 %v1352_v23, %v2557_v16  ;;  %v1355_v28 = vmul.f32 %v1353_v13, %v2553_v15  ;;  %v1428_v55 = vld [vmem:[#allocation3] sm:$0x3f]  ;;  %v1571_v13 = vld [vmem:[%s2966_s5] sm:$0x3f] }
 0x312   : > { %v1402_v57 = vmul.f32 %v1400_v51, %v2578_v40  ;;  %v1430_v16 = vunpack.c.h.bf16 %v1428_v55  ;;  %v1401_v15 = vmul.f32 %v1399_v62, %v2582_v41  ;;  %v1464_v5 = vld [vmem:[#allocation3 + $0x2] sm:$0x3f]  ;;  %v1429_v40 = vunpack.c.l.bf16 %v1428_v55 }
 0x313   : > { %1358 = vst [vmem:[#allocation1] ss:$2 sm:$0xff] %v1354_v24  ;;  %v1466_v0 = vunpack.c.h.bf16 %v1464_v5  ;;  %v1494_v2 = vld [vmem:[#allocation3 + $0x2] sm:$0x3f]  ;;  %v1465_v26 = vunpack.c.l.bf16 %v1464_v5 }
 0x314   : > { %1360 = vst [vmem:[#allocation1 + $0x10] ss:$2 sm:$0xff] %v1355_v28  ;;  %v1432_v59 = vmul.f32 %v1430_v16, %v2587_v46  ;;  %v1431_v1 = vmul.f32 %v1429_v40, %v2591_v49  ;;  %v1496_v46 = vunpack.c.h.bf16 %v1494_v2  ;;  %v1458_v43 = vld [vmem:[#allocation3 + $0x2] sm:$0xf]  ;;  %v1495_v33 = vunpack.c.l.bf16 %v1494_v2  ;;  %v1903_v16 = vld [vmem:[%s392_s30] sm:$0xff] }
 0x315   : > { %v1468_v3 = vmul.f32 %v1466_v0, %v2598_v60  ;;  %v1541_v11 = vld [vmem:[#allocation3 + $0x2] sm:$0x3f]  ;;  %v1467_v21 = vmul.f32 %v1465_v26, %v2608_v9 }
 0x316   : > { %v1498_v12 = vmul.f32 %v1496_v46, %v2603_v6  ;;  %v1543_v27 = vunpack.c.h.bf16 %v1541_v11  ;;  %v1497_v34 = vmul.f32 %v1495_v33, %v2624_v22  ;;  %v1542_v54 = vunpack.c.l.bf16 %v1541_v11 }
 0x318   : > { %v1545_v29 = vmul.f32 %v1543_v27, %v2626_v25  ;;  %v1524_v25 = vld [vmem:[#allocation3 + $0x2] sm:$0x3f]  ;;  %v1544_v22 = vmul.f32 %v1542_v54, %v2642_v45 }
 0x31a   : > { %v2842_v17 = vld.sshfl [vmem:[#allocation1] sm:$0xff pattern:$0x75316420]  ;;  %v2844_v56 = vld.sshfl [vmem:[#allocation1 + $0x8] sm:$0xff pattern:$0x75316420] }
 0x31b   : > { %1383 = vst [vmem:[#allocation1] ss:$2 sm:$0xff] %v1381_v53  ;;  %v2847_v61 = vld.sshfl [vmem:[#allocation1 + $0x10] sm:$0xff pattern:$0x75316420]  ;;  %v1367_v55 = vpack.c.bf16 %v2844_v56, %v2842_v17 }
 0x31c   : > { %1407 = vst [vmem:[#allocation1 + $0x10] ss:$2 sm:$0xff] %v1402_v57  ;;  %v1368_v62 = vpack.c.bf16 %v2847_v61, %v2847_v61 }
 0x322   : > { %v2850_v7 = vld.sshfl [vmem:[#allocation1] sm:$0xff pattern:$0x75643120]  ;;  %v2852_v58 = vld.sshfl [vmem:[#allocation1 + $0x8] sm:$0xff pattern:$0x75643120] }
 0x323   : > { %1405 = vst [vmem:[#allocation1] ss:$2 sm:$0xff] %v1401_v15  ;;  %v2855_v63 = vld.sshfl [vmem:[#allocation1 + $0x10] sm:$0xff pattern:$0x75316420] }
 0x324   : > { %1437 = vst [vmem:[#allocation1 + $0x10] ss:$2 sm:$0xff] %v1432_v59  ;;  %v1415_v51 = vpack.c.bf16 %v2855_v63, %v2855_v63 }
 0x32a   : > { %v2859_v4 = vld.sshfl [vmem:[#allocation1] sm:$0xff pattern:$0x75316420]  ;;  %v2861_v41 = vld.sshfl [vmem:[#allocation1 + $0x8] sm:$0xff pattern:$0x75316420] }
 0x32b   : > { %v1440_v8 = vld.sshfl [vmem:[#allocation1 + $0x10] sm:$0xff pattern:$0x75316420]  ;;  %1435 = vst [vmem:[#allocation1] ss:$2 sm:$0xff] %v1431_v1  ;;  %v1414_v53 = vpack.c.bf16 %v2861_v41, %v2859_v4 }
 0x32c   : > { %v1445_v10 = vpack.c.bf16 %v1440_v8, %v1440_v8  ;;  %1473 = vst [vmem:[#allocation1 + $0x10] ss:$2 sm:$0xff] %v1468_v3 }
 0x32e   : > { %1450 = vrot.lane.b32.xlu1 %v1445_v10, %s2466_s27 }
 0x332   : > { %v1438_v14 = vld.sshfl [vmem:[#allocation1] sm:$0xff pattern:$0x75316420]  ;;  %v1439_v49 = vld.sshfl [vmem:[#allocation1 + $0x8] sm:$0xff pattern:$0x75316420] }
 0x333   : > { %v1476_v18 = vld.sshfl [vmem:[#allocation1 + $0x10] sm:$0xff pattern:$0x75316420]  ;;  %1460 = vst [vmem:[#allocation1] ss:$2 sm:$0xff] %v1458_v43  ;;  %v1444_v6 = vpack.c.bf16 %v1439_v49, %v1438_v14 }
 0x334   : > { %v1481_v60 = vpack.c.bf16 %v1476_v18, %v1476_v18  ;;  %1503 = vst [vmem:[#allocation1 + $0x10] ss:$2 sm:$0xff] %v1498_v12  ;;  %v2417_v18 = vld [vmem:[#allocation2 + $0xf4] sm:$0xf0] }
 0x336   : > { %1486 = vrot.lane.b32.xlu0 %v1481_v60, %s2464_s19 }
 0x33a   : > { %v1461_v30 = vld.sshfl [vmem:[#allocation1] sm:$0xff pattern:$0x75643120] }
 0x33b   : > { %v1506_v31 = vld.sshfl [vmem:[#allocation1 + $0x10] sm:$0xff pattern:$0x75316420]  ;;  %1471 = vst [vmem:[#allocation1] ss:$2 sm:$0xff] %v1467_v21 }
 0x33c   : > { %v1511_v32 = vpack.c.bf16 %v1506_v31, %v1506_v31  ;;  %1550 = vst [vmem:[#allocation1 + $0x10] ss:$2 sm:$0xff] %v1545_v29  ;;  %v2415_v31 = vld [vmem:[#allocation2 + $0xe4] sm:$0xf0] }
 0x33d   : > { %1463 = vst [vmem:[#allocation2 + $0xd0] sm:$0x33] %v1461_v30 }
 0x33e   : > { %1516 = vrot.lane.b32.xlu1 %v1511_v32, %s2467_s28  ;;  %1448 = vrot.lane.b32.xlu0 %v1444_v6, %s2466_s27 }
 0x342   : > { %v1474_v20 = vld.sshfl [vmem:[#allocation1] sm:$0xff pattern:$0x75316420]  ;;  %v1475_v36 = vld.sshfl [vmem:[#allocation1 + $0x8] sm:$0xff pattern:$0x75316420] }
 0x343   : > { %v1480_v37 = vpack.c.bf16 %v1475_v36, %v1474_v20  ;;  %1501 = vst [vmem:[#allocation1] ss:$2 sm:$0xff] %v1497_v34  ;;  %v1553_v9 = vld.sshfl [vmem:[#allocation1 + $0x10] sm:$0xff pattern:$0x75316420] }
 0x344   : > { %v1558_v44 = vpack.c.bf16 %v1553_v9, %v1553_v9  ;;  %v2303_v36 = vld [vmem:[#allocation2 + $0xd0] sm:$0xf] }
 0x345   : > { %1484 = vrot.lane.b32.xlu2 %v1480_v37, %s2464_s19  ;;  %v2413_v37 = vld [vmem:[#allocation2 + $0xd4] sm:$0xf0] }
 0x34a   : > { %v1504_v42 = vld.sshfl [vmem:[#allocation1] sm:$0xff pattern:$0x75316420]  ;;  %v1505_v52 = vld.sshfl [vmem:[#allocation1 + $0x8] sm:$0xff pattern:$0x75316420] }
 0x34b   : > { %v1510_v47 = vpack.c.bf16 %v1505_v52, %v1504_v42  ;;  %1526 = vst [vmem:[#allocation1] ss:$2 sm:$0xff] %v1524_v25  ;;  %v2304_v42 = vor.u32 %v2413_v37, %v2303_v36  ;;  %v2405_v37 = vld [vmem:[#allocation2 + $0x94] sm:$0xf0] }
 0x34d   : > { %1563 = vrot.lane.b32.xlu2 %v1558_v44, %s2462_s17  ;;  %1514 = vrot.lane.b32.xlu0 %v1510_v47, %s2467_s28  ;;  %v2411_v44 = vld [vmem:[#allocation2 + $0xc4] sm:$0xf0] }
 0x352   : > { %v1527_v48 = vld.sshfl [vmem:[#allocation1] sm:$0xff pattern:$0x75643120]  ;;  %v1529_v23 = vld.sshfl [vmem:[#allocation1 + $0x8] sm:$0xff pattern:$0x75643120] }
 0x353   : > { %1548 = vst [vmem:[#allocation1] ss:$2 sm:$0xff] %v1544_v22 }
 0x355   : > { %1531 = vrot.lane.b32.xlu2 %v1527_v48, %s2469_s15  ;;  %1533 = vrot.lane.b32.xlu0 %v1529_v23, %s2469_s15 }
 0x35a   : > { %v1551_v24 = vld.sshfl [vmem:[#allocation1] sm:$0xff pattern:$0x75316420]  ;;  %v1552_v28 = vld.sshfl [vmem:[#allocation1 + $0x8] sm:$0xff pattern:$0x75316420] }
 0x35b   : > { %v1557_v50 = vpack.c.bf16 %v1552_v28, %v1551_v24  ;;  %1615 = vst [vmem:[#allocation1] ss:$4 sm:$0xff] %v1571_v13 }
 0x35d   : > { %1561 = vrot.lane.b32.xlu1 %v1557_v50, %s2462_s17  ;;  %1420 = vrot.lane.b32.xlu2 %v1415_v51, %s2463_s18  ;;  %v2421_v50 = vld [vmem:[#allocation2 + $0x114] sm:$0xf0]  ;;  %v2337_v51 = vld [vmem:[#allocation2 + $0x118] sm:$0xf0] }
 0x35e   : > { %1388 = vrot.lane.b32.xlu0 %v2850_v7, %s2468_s29 }
 0x362   : > { %v1616_v45 = vld.sshfl [vmem:[#allocation1] sm:$0xff pattern:$0x73625140]  ;;  %v2890_v57 = vld.sshfl [vmem:[#allocation1 + $0x8] sm:$0xff pattern:$0x73625140] }
 0x363   : > { %1811 = vmatmul.bf16.vlgmr.msrb.gmra.mxu1 %v1616_v45  ;;  %1850 = vmatmul.bf16.vlgmr.msra.gmra.mxu0 %v1616_v45  ;;  %1886 = vst [vmem:[#allocation1 + $0x1] ss:$2 sm:$0xff] %v1331_v39 }
 0x365   : > { %1418 = vrot.lane.b32.xlu1 %v1414_v53, %s2463_s18  ;;  %1371 = vrot.lane.b32.xlu2 %v1367_v55, %s2465_s26  ;;  %s2348_s18 = sshll.u32 %s2978_s14, 4 }
 0x366   : > { %1373 = vrot.lane.b32.xlu0 %v1368_v62, %s2465_s26  ;;  %s2940_s15 = scalar_lea.vmem %s2970_s9, %s2348_s18 }
 0x36a   : > { %v2903_v17 = vld.sshfl [vmem:[#allocation1] sm:$0xff pattern:$0x75316420]  ;;  %v2905_v56 = vld.sshfl [vmem:[#allocation1 + $0x8] sm:$0xff pattern:$0x75316420] }
 0x36b   : > { %1905 = vst [vmem:[#allocation1] ss:$2 sm:$0xff] %v1903_v16 }
 0x36d   : > { %1390 = vrot.lane.b32.xlu1 %v2852_v58, %s2468_s29 }
 0x375   : > { %1611 = vperm.xlu1 %2440, %v1608_v35  }
 0x39f   : > { %v1485_v39 = vpop.permute.xlu2 %1484 }
 0x3a0   : > { %v1488_v15 = vrot.slane %v1485_v39, 4  ;;  %v1451_v63 = vpop.permute.xlu1 %1450 }
 0x3a1   : > { %v1453_v0 = vrot.slane %v1451_v63, 4 }
 0x3a7   : > { %v1564_v3 = vpop.permute.xlu2 %1563 }
 0x3a8   : > { %v1487_v61 = vpop.permute.xlu0 %1486  ;;  %v1566_v6 = vrot.slane %v1564_v3, 4 }
 0x3a9   : > { %v1489_v5 = vrot.slane %v1487_v61, 4 }
 0x3ab   : > { %v1490_v7 = vsel %vm470_vm0, %v1488_v15, %v1489_v5  ;;  %v2419_v15 = vld [vmem:[#allocation2 + $0x104] sm:$0xf0]  ;;  %v2329_v5 = vld [vmem:[#allocation2 + $0x108] sm:$0xf0] }
 0x3ac   : > { %v1491_v59 = vsel %vm586_vm3, %v1485_v39, %v1490_v7 }
 0x3ad   : > { %1493 = vst [vmem:[#allocation2 + $0xe0] sm:$0x33] %v1491_v59 }
 0x3af   : > { %v1532_v46 = vpop.permute.xlu2 %1531 }
 0x3b0   : > { %v1449_v40 = vpop.permute.xlu0 %1448  ;;  %v1517_v4 = vpop.permute.xlu1 %1516  ;;  %v1535_v14 = vrot.slane %v1532_v46, 4 }
 0x3b1   : > { %v1452_v1 = vrot.slane %v1449_v40, 4  ;;  %v1519_v8 = vrot.slane %v1517_v4, 4 }
 0x3b3   : > { %v1454_v58 = vsel %vm470_vm0, %v1452_v1, %v1453_v0 }
 0x3b4   : > { %v1455_v2 = vsel %vm614_vm4, %v1449_v40, %v1454_v58  ;;  %v2311_v30 = vld [vmem:[#allocation2 + $0xe0] sm:$0xf]  ;;  %v2321_v40 = vld [vmem:[#allocation2 + $0xf8] sm:$0xf0] }
 0x3b5   : > { %1457 = vst [vmem:[#allocation2 + $0xc0] sm:$0x33] %v1455_v2  ;;  %v2312_v20 = vor.u32 %v2415_v31, %v2311_v30  ;;  %v2407_v31 = vld [vmem:[#allocation2 + $0xa4] sm:$0xf0] }
 0x3b7   : > { %v1421_v21 = vpop.permute.xlu2 %1420 }
 0x3b8   : > { %v1423_v22 = vrot.slane %v1421_v21, 4 }
 0x3bc   : > { %v2295_v52 = vld [vmem:[#allocation2 + $0xc0] sm:$0xf] }
 0x3bd   : > { %v2296_v13 = vor.u32 %v2411_v44, %v2295_v52  ;;  %v2263_v44 = vld [vmem:[#allocation2 + $0x80] sm:$0xf] }
 0x3bf   : > { %v1515_v41 = vpop.permute.xlu0 %1514  ;;  %v1372_v47 = vpop.permute.xlu2 %1371 }
 0x3c0   : > { %v1518_v10 = vrot.slane %v1515_v41, 4  ;;  %v1375_v24 = vrot.slane %v1372_v47, 4 }
 0x3c2   : > { %v1520_v43 = vsel %vm470_vm0, %v1518_v10, %v1519_v8  ;;  %v2409_v10 = vld [vmem:[#allocation2 + $0xb4] sm:$0xf0] }
 0x3c3   : > { %v1521_v11 = vsel %vm548_vm2, %v1515_v41, %v1520_v43  ;;  %v2414_v43 = vld [vmem:[#allocation2 + $0xe4] sm:$0xf]  ;;  %vm2975_vm2 = vcmask 261120  }
 0x3c4   : > { %1523 = vst [vmem:[#allocation2 + $0xf0] sm:$0x33] %v1521_v11  ;;  %v2313_v11 = vld [vmem:[#allocation2 + $0xe8] sm:$0xf0]  ;;  %vm2976_vm3 = vmmov %vm2975_vm2 }
 0x3c7   : > { %v1534_v12 = vpop.permute.xlu0 %1533 }
 0x3c8   : > { %v1536_v49 = vrot.slane %v1534_v12, 4 }
 0x3ca   : > { %v1537_v60 = vsel %vm470_vm0, %v1535_v14, %v1536_v49  ;;  %v1618_v49 = vld.sshfl [vmem:[#allocation1 + $0x10] sm:$0xff pattern:$0x73625140] }
 0x3cb   : > { %v1538_v26 = vsel %vm714_vm8, %v1532_v46, %v1537_v60  ;;  %v2319_v27 = vld [vmem:[#allocation2 + $0xf0] sm:$0xf]  ;;  %v2416_v63 = vld [vmem:[#allocation2 + $0xf4] sm:$0xf]  ;;  %v2316_v60 = vor.u32 %v2414_v43, %v2313_v11  ;;  %v1884_v43 = vsub.f32 1.0, %v2836_v38 }
 0x3cc   : > { %1540 = vst [vmem:[#allocation2 + $0x100] sm:$0x33] %v1538_v26  ;;  %v2320_v29 = vor.u32 %v2417_v18, %v2319_v27  ;;  %v2324_v8 = vor.u32 %v2416_v63, %v2321_v40  ;;  %v2412_v26 = vld [vmem:[#allocation2 + $0xd4] sm:$0xf]  ;;  %v2305_v27 = vld [vmem:[#allocation2 + $0xd8] sm:$0xf0] }
 0x3cd   : > { %v2308_v30 = vor.u32 %v2412_v26, %v2305_v27 }
 0x3ce   : > { %1816 = vmatpush.bf16.msra.mxu3 %v2320_v29 }
 0x3cf   : > { %v1562_v32 = vpop.permute.xlu1 %1561 }
 0x3d0   : > { %v1565_v33 = vrot.slane %v1562_v32, 4  ;;  %v1389_v34 = vpop.permute.xlu0 %1388 }
 0x3d1   : > { %v1392_v1 = vrot.slane %v1389_v34, 4 }
 0x3d2   : > { %v1567_v9 = vsel %vm470_vm0, %v1565_v33, %v1566_v6  ;;  %1817 = vmatpush.bf16.msra.mxu3 %v2312_v20  ;;  %v2297_v6 = vld [vmem:[#allocation2 + $0xc8] sm:$0xf0] }
 0x3d3   : > { %v1568_v25 = vsel %vm475_vm1, %v1562_v32, %v1567_v9  ;;  %v2327_v7 = vld [vmem:[#allocation2 + $0x100] sm:$0xf]  ;;  %v2418_v59 = vld [vmem:[#allocation2 + $0x104] sm:$0xf]  ;;  %vm2974_vm1 = vcmask 130048  }
 0x3d4   : > { %1570 = vst [vmem:[#allocation2 + $0x110] sm:$0x33] %v1568_v25  ;;  %v2328_v4 = vor.u32 %v2419_v15, %v2327_v7  ;;  %v2332_v41 = vor.u32 %v2418_v59, %v2329_v5  ;;  %v2410_v32 = vld [vmem:[#allocation2 + $0xc4] sm:$0xf]  ;;  %v2289_v25 = vld [vmem:[#allocation2 + $0xb8] sm:$0xf0] }
 0x3d5   : > { %v2300_v20 = vor.u32 %v2410_v32, %v2297_v6 }
 0x3d6   : > { %1818 = vmatpush.bf16.msra.mxu3 %v2304_v42 }
 0x3d7   : > { %v1419_v54 = vpop.permute.xlu1 %1418 }
 0x3d8   : > { %v1374_v48 = vpop.permute.xlu0 %1373  ;;  %v1422_v23 = vrot.slane %v1419_v54, 4 }
 0x3d9   : > { %v1376_v28 = vrot.slane %v1374_v48, 4 }
 0x3da   : > { %v1424_v45 = vsel %vm470_vm0, %v1422_v23, %v1423_v22  ;;  %1819 = vmatpush.bf16.msra.mxu3 %v2296_v13  ;;  %v2281_v22 = vld [vmem:[#allocation2 + $0xa8] sm:$0xf0] }
 0x3db   : > { %v1377_v53 = vsel %vm470_vm0, %v1375_v24, %v1376_v28  ;;  %v1425_v55 = vsel %vm576_vm5, %v1419_v54, %v1424_v45  ;;  %v2335_v62 = vld [vmem:[#allocation2 + $0x110] sm:$0xf]  ;;  %v2420_v16 = vld [vmem:[#allocation2 + $0x114] sm:$0xf]  ;;  %v2273_v24 = vld [vmem:[#allocation2 + $0x98] sm:$0xf0] }
 0x3dc   : > { %v1378_v35 = vsel %vm504_vm6, %v1372_v47, %v1377_v53  ;;  %1427 = vst [vmem:[#allocation2 + $0xb0] sm:$0x33] %v1425_v55  ;;  %v2336_v39 = vor.u32 %v2421_v50, %v2335_v62  ;;  %v2340_v61 = vor.u32 %v2420_v16, %v2337_v51  ;;  %v2403_v47 = vld [vmem:[#allocation2 + $0x84] sm:$0xf0]  ;;  %v2402_v50 = vld [vmem:[#allocation2 + $0x84] sm:$0xf] }
 0x3dd   : > { %1380 = vst [vmem:[#allocation2 + $0x90] sm:$0x33] %v1378_v35  ;;  %v2264_v48 = vor.u32 %v2403_v47, %v2263_v44  ;;  %v2265_v51 = vld [vmem:[#allocation2 + $0x88] sm:$0xf0] }
 0x3de   : > { %1835 = vmatpush.bf16.msrb.mxu2 %v2336_v39  ;;  %1874 = vmatpush.bf16.msra.mxu1 %v2340_v61  ;;  %v2268_v45 = vor.u32 %v2402_v50, %v2265_v51  ;;  %v1906_v16 = vld.sshfl [vmem:[#allocation1] sm:$0xff pattern:$0x75316420]  ;;  %v1907_v35 = vld.sshfl [vmem:[#allocation1 + $0x8] sm:$0xff pattern:$0x75316420] }
 0x3df   : > { %v1391_v0 = vpop.permute.xlu1 %1390  ;;  %1910 = vst [vmem:[%s2940_s15] sm:$0xf] %v1906_v16 }
 0x3e0   : > { %v1393_v58 = vrot.slane %v1391_v0, 4  ;;  %v2926_v2 = vpop.f32.mrf.mxu1  ;;  %v2928_v3 = vpop.f32.mrf.mxu0  ;;  %1911 = vst [vmem:[%s2940_s15 + $0x8] sm:$0xf] %v1907_v35 }
 0x3e2   : > { %v1394_v46 = vsel %vm470_vm0, %v1392_v1, %v1393_v58  ;;  %1836 = vmatpush.bf16.msrb.mxu2 %v2328_v4  ;;  %1875 = vmatpush.bf16.msra.mxu1 %v2332_v41  ;;  %v1883_v58 = vsub.f32 1.0, %v2834_v19 }
 0x3e3   : > { %v1395_v12 = vsel %vm2974_vm1, %v1389_v34, %v1394_v46  ;;  %v2287_v14 = vld [vmem:[#allocation2 + $0xb0] sm:$0xf]  ;;  %v2408_v9 = vld [vmem:[#allocation2 + $0xb4] sm:$0xf] }
 0x3e4   : > { %1397 = vst [vmem:[#allocation2 + $0xa0] sm:$0x33] %v1395_v12  ;;  %v2288_v18 = vor.u32 %v2409_v10, %v2287_v14  ;;  %v2271_v36 = vld [vmem:[#allocation2 + $0x90] sm:$0xf]  ;;  %v2292_v52 = vor.u32 %v2408_v9, %v2289_v25  ;;  %v2404_v13 = vld [vmem:[#allocation2 + $0x94] sm:$0xf]  ;;  %v1892_v12 = vmul.f32 %v2905_v56, %v1884_v43 }
 0x3e5   : > { %2341 = vmatmul.msk.bf16.vlgmr.msrb.gmra.mxu2 %vm2975_vm2, %v1618_v49  ;;  %2342 = vmatmul.msk.bf16.vlgmr.msra.gmra.mxu1 %vm2976_vm3, %v1618_v49  ;;  %v2272_v42 = vor.u32 %v2405_v37, %v2271_v36  ;;  %v2276_v28 = vor.u32 %v2404_v13, %v2273_v24 }
 0x3e6   : > { %1855 = vmatpush.bf16.msra.mxu2 %v2324_v8  ;;  %1820 = vmatpush.bf16.msra.mxu3 %v2288_v18  ;;  %v1891_v8 = vmul.f32 %v2903_v17, %v1883_v58 }
 0x3e7   : > { %v1612_v61 = vpop.permute.xlu1 %1611 }
 0x3e8   : > { %v1814_v21 = vpop.f32.mrf.mxu1  ;;  %v1853_v29 = vpop.f32.mrf.mxu0  ;;  %v1813_v15 = vadd.f32 %v2926_v2, %v1612_v61  ;;  %v1852_v59 = vadd.f32 %v2928_v3, %v1612_v61 }
 0x3ea   : > { %1856 = vmatpush.bf16.msra.mxu2 %v2316_v60 }
 0x3eb   : > { %v2279_v33 = vld [vmem:[#allocation2 + $0xa0] sm:$0xf]  ;;  %v2406_v54 = vld [vmem:[#allocation2 + $0xa4] sm:$0xf] }
 0x3ec   : > { %v2280_v34 = vor.u32 %v2407_v31, %v2279_v33  ;;  %v2284_v23 = vor.u32 %v2406_v54, %v2281_v22 }
 0x3ee   : > { %1857 = vmatpush.bf16.msra.mxu2 %v2308_v30  ;;  %1821 = vmatpush.bf16.msra.mxu3 %v2280_v34 }
 0x3f2   : > { %1858 = vmatpush.bf16.msra.mxu2 %v2300_v20  ;;  %1822 = vmatpush.bf16.msra.mxu3 %v2272_v42 }
 0x3f6   : > { %1859 = vmatpush.bf16.msra.mxu2 %v2292_v52  ;;  %1823 = vmatpush.bf16.msra.mxu3 %v2264_v48 }
 0x3f9   : > { %1824 = vmatmul.bf16.vlgmr.msra.gmra.mxu3 %v2890_v57 }
 0x3fa   : > { %1860 = vmatpush.bf16.msra.mxu2 %v2284_v23 }
 0x3fe   : > { %1861 = vmatpush.bf16.msra.mxu2 %v2276_v28 }
 0x402   : > { %1862 = vmatpush.bf16.msra.mxu2 %v2268_v45 }
 0x405   : > { %1863 = vmatmul.bf16.vlgmr.msra.gmra.mxu2 %v2890_v57 }
 0x462   : > { %v1877_v53 = vpop.f32.mrf.mxu1 }
 0x468   : > { %v1838_v55 = vpop.f32.mrf.mxu2 }
 0x46a   : > { %v1879_v62 = vpop.f32.mrf.mxu1 }
 0x470   : > { %v1840_v39 = vpop.f32.mrf.mxu2 }
 0x47c   : > { %v1825_v57 = vpop.f32.mrf.mxu3 }
 0x47d   : > { %v1826_v5 = vadd.f32 %v1825_v57, %v1813_v15 }
 0x47f   : > { %v1839_v7 = vadd.f32 %v1838_v55, %v1826_v5 }
 0x481   : > { %2450 = vtanh.f32 %v1839_v7 }
 0x484   : > { %v1827_v63 = vpop.f32.mrf.mxu3 }
 0x487   : > { %v2451_v1 = vpop.eup %2450 }
 0x488   : > { %v1864_v40 = vpop.f32.mrf.mxu2  ;;  %v1895_v4 = vrot.slane %v2451_v1, 4 }
 0x489   : > { %v1865_v0 = vadd.f32 %v1864_v40, %v1852_v59 }
 0x48a   : > { %v1899_v2 = vmul.f32 %v1895_v4, %v2834_v19 }
 0x48b   : > { %v1878_v41 = vadd.f32 %v1877_v53, %v1865_v0 }
 0x48c   : > { %v1901_v10 = vadd.f32 %v1899_v2, %v1891_v8 }
 0x48d   : > { %2452 = vtanh.f32 %v1878_v41 }
 0x48e   : > { %1912 = vst [vmem:[%s2940_s15] sm:$0xf0] %v1901_v10 }
 0x48f   : > { %1916 = vst.sshfl [vmem:[#allocation1] sm:$0xff pattern:$0x75316420] %v1901_v10 }
 0x490   : > { %v1866_v46 = vpop.f32.mrf.mxu2 }
 0x493   : > { %v2453_v3 = vpop.eup %2452 }
 0x494   : > { %v1896_v11 = vrot.slane %v2453_v3, 4 }
 0x496   : > { %v1900_v14 = vmul.f32 %v1896_v11, %v2836_v38 }
 0x498   : > { %v1902_v49 = vadd.f32 %v1900_v14, %v1892_v12 }
 0x49a   : > { %1913 = vst [vmem:[%s2940_s15 + $0x8] sm:$0xf0] %v1902_v49 }
 0x49b   : > { %1917 = vst.sshfl [vmem:[#allocation1 + $0x8] sm:$0xff pattern:$0x75316420] %v1902_v49 }
 0x4a2   : > { %v1919_v19 = vld [vmem:[#allocation1 + $0x1] ss:$2 sm:$0xff] }
 0x4a3   : > { %1921 = vst [vmem:[%s412_s21] sm:$0xff] %v1919_v19 }
 0x4a4 PF: > { %s21_s13 = sadd.s32 1, %s2460_s13  }
 0x4a5   : > { %p18_p4 = scmp.ge.s32.totalorder %s21_s13, 4  }
 0x4a7   :  { %20 = sbr.rel (!%p18_p4) target bundleno = 1 (0x1), region = 124 }

// kernel: upsampling_block_forward.4
= control target key start
LH: loop header
LB: loop body
LE: loop exit
PB: predicated region body
PF: predicated region fallthrough
CT: control target
= control target key end

     0   :  { %s2270_s13 = smov 0   ;;  %s2766_s0 = inlined_call_operand.vmem [shape: bf16[2,8,512], index: 0, kind: input, shape index: {}]   ;;  %s2767_s1 = inlined_call_operand.vmem [shape: bf16[2,8,512], index: 1, kind: input, shape index: {}]   ;;  %s2768_s2 = inlined_call_operand.vmem [shape: bf16[2,4,512], index: 2, kind: input, shape index: {}]   ;;  %s2769_s3 = inlined_call_operand.vmem [shape: bf16[8,432], index: 3, kind: input, shape index: {}]   ;;  %s2770_s4 = inlined_call_operand.vmem [shape: f32[8,1], index: 4, kind: input, shape index: {}]   ;;  %s2771_s5 = inlined_call_operand.vmem [shape: f32[8,1], index: 5, kind: input, shape index: {}]   ;;  %s2772_s6 = inlined_call_operand.vmem [shape: f32[8,8], index: 6, kind: input, shape index: {}]   ;;  %s2773_s7 = inlined_call_operand.vmem [shape: bf16[1,256], index: 7, kind: input, shape index: {}]   ;;  %s2774_s8 = inlined_call_operand.vmem [shape: bf16[1,256], index: 8, kind: input, shape index: {}]   ;;  %s2775_s9 = inlined_call_operand.vmem [shape: f32[2,4,256], index: 9, kind: output, shape index: {0}]   ;;  %s2776_s10 = inlined_call_operand.vmem [shape: bf16[2,4,512], index: 10, kind: output, shape index: {1}]  }
   0x1 LB: > { %s1851_s14 = sadd.s32 4294967295, %s2204_s13   ;;  %p1855_p0 = scmp.ge.s32.totalorder %s2204_s13, 1  ;;  %s2204_s13 = sphi %s2270_s13, %s21_s13  }
   0x2   : > { %p335_p1 = scmp.lt.s32.totalorder %s2204_s13, 3 }
   0x4   : > { %p336_p2 = pnand %p1855_p0, %p335_p1 }
   0x5   : > { %p388_p3 = scmp.lt.s32.totalorder (!%p336_p2), %s1851_s14, 1  ;;  %s2206_s23 = smov (!%p336_p2), 15  }
   0x6   : > { %339 = sbr.rel (%p336_p2) target bundleno = 1618 (0x652), region = 56  ;;  %s2207_s24 = smov (!%p336_p2), 127  }
   0x7   : > { %s2208_s25 = smov (!%p336_p2), 1   ;;  %s2209_s26 = smov (!%p336_p2), 17  }
   0x8   : > { %s2210_s27 = smov (!%p336_p2), 111   ;;  %s2211_s28 = smov (!%p336_p2), 112  }
   0x9   : > { %s2212_s29 = smov (!%p336_p2), 113   ;;  %s2214_s21 = smov (!%p336_p2), 16  }
   0xb   : > { %v468_v0 = vld [vmem:[%s2773_s7] sm:$0x3]  ;;  %s2778_s14 = smov (!%p388_p3, %s1851_s14), 1  ;;  %vm511_vm0 = vcmask 1043456   ;;  %v2213_v35 = vmov 0   ;;  %vm493_vm1 = vcmask 908288  }
   0xc   : > { %473 = vst [vmem:[#allocation1] ss:$9 sm:$0xff] %v468_v0  ;;  %v2286_v1 = vld [vmem:[%s2774_s8] sm:$0x3]  ;;  %s2088_s19 = sshll.u32 %s2778_s14, 4  ;;  %s2327_s15 = sshll.u32 %s2778_s14, 3  ;;  %2194 = vset.pattern.permute.xlu1 %v2213_v35  ;;  %2195 = vset.pattern.permute.xlu0 %v2213_v35 }
   0xd   : > { %s2294_s22 = scalar_lea.vmem %s2766_s0, %s2088_s19  ;;  %s2322_s12 = scalar_lea.vmem %s2767_s1, %s2088_s19  ;;  %415 = vst [vmem:[#allocation2 + $0x8] sm:$0xff] %v2213_v35  ;;  %vm574_vm2 = vcmask 121856   ;;  %vm687_vm3 = vcmask 916480   ;;  %vm587_vm4 = vcmask 1039360   ;;  %vm555_vm5 = vcmask 924672  }
   0xe   : > { %v2298_v5 = vld [vmem:[%s2294_s22 + $0x4] sm:$0xff]  ;;  %v677_v28 = vld [vmem:[%s2294_s22 + $0xc] sm:$0xf]  ;;  %s2333_s18 = scalar_lea.vmem %s2776_s10, %s2327_s15  ;;  %417 = vst [vmem:[#allocation2 + $0x18] sm:$0xff] %v2213_v35  ;;  %s2450_s20 = scalar_lea.vmem %s2768_s2, %s2327_s15  ;;  %vm606_vm6 = vcmask 7168   ;;  %vm528_vm7 = vcmask 130048  }
   0xf   : > { %611 = vst [vmem:[#allocation2 + $0x40] sm:$0xff] %v2298_v5  ;;  %v645_v29 = vld [vmem:[%s2294_s22 + $0x8] sm:$0xff]   ;;  %v2379_v48 = vld [vmem:[%s2322_s12] sm:$0xff]  ;;  %v646_v63 = vunpack.c.l.bf16 %v2298_v5  ;;  %vm513_vm8 = vcmask 138240   ;;  %vm1511_vm9 = vcmask 392192   ;;  %vm1626_vm10 = vcmask 64512   ;;  %s407_s17 = scalar_lea.vmem %s2775_s9, %s2327_s15 }
  0x10   : > { %v828_v30 = vld [vmem:[%s2322_s12 + $0x8] sm:$0xff]   ;;  %v648_v31 = vunpack.c.h.bf16 %v645_v29  ;;  %1731 = vst [vmem:[%s2333_s18] sm:$0x3] %v2213_v35  ;;  %v582_v38 = vunpack.c.l.bf16 %v645_v29  ;;  %v2382_v49 = vld [vmem:[%s2294_s22] sm:$0xff]  ;;  %v2390_v51 = vunpack.c.l.bf16 %v2379_v48  ;;  %v2393_v52 = vunpack.c.h.bf16 %v2379_v48 }
  0x11   : > { %v831_v32 = vunpack.c.h.bf16 %v828_v30  ;;  %1738 = vst [vmem:[%s2333_s18 + $0x6] sm:$0x3] %v2213_v35  ;;  %v785_v39 = vunpack.c.l.bf16 %v828_v30  ;;  %v2396_v53 = vunpack.c.l.bf16 %v2382_v49  ;;  %v2400_v54 = vunpack.c.h.bf16 %v2382_v49  ;;  %v2414_v58 = vld [vmem:[%s2322_s12 + $0x4] sm:$0xff] }
  0x12   : > { %419 = vst [vmem:[#allocation2 + $0x28] sm:$0xff] %v2213_v35  ;;  %v2427_v62 = vunpack.c.l.bf16 %v2414_v58 }
  0x13   : > { %v475_v2 = vld [vmem:[#allocation1 + $0x9] sm:$0xff]  ;;  %v474_v3 = vld [vmem:[#allocation1] sm:$0xff]  ;;  %421 = vst [vmem:[#allocation2 + $0x38] sm:$0xff] %v2213_v35 }
  0x14   : > { %v479_v4 = vpack.i.b16 %v475_v2, %v475_v2  ;;  %535 = vst [vmem:[#allocation1] ss:$9 sm:$0xff] %v2286_v1  ;;  %v476_v8 = vpack.i.b16 %v474_v3, %v474_v3  ;;  %v2434_v2 = vunpack.c.h.bf16 %v2414_v58  ;;  %v647_v3 = vunpack.c.h.bf16 %v2298_v5 }
  0x15   : > { %423 = vst [vmem:[#allocation2 + $0x48] sm:$0xff] %v2213_v35 }
  0x16   : > { %v481_v6 = vperm.slane %v479_v4, 0  ;;  %v478_v13 = vperm.slane %v476_v8, 0  ;;  %425 = vst [vmem:[#allocation2 + $0x58] sm:$0xff] %v2213_v35 }
  0x17   : > { %427 = vst [vmem:[#allocation2 + $0x68] sm:$0xff] %v2213_v35 }
  0x18   : > { %v486_v7 = vunpack.c.l.bf16 %v481_v6  ;;  %v485_v15 = vunpack.c.l.bf16 %v478_v13  ;;  %429 = vst [vmem:[#allocation2 + $0x78] sm:$0xff] %v2213_v35 }
  0x19   : > { %431 = vst [vmem:[#allocation2 + $0x88] sm:$0xff] %v2213_v35 }
  0x1a   : > { %651 = vrot.lane.b32.xlu2 %v486_v7, %s2206_s23  ;;  %v2164_v20 = vpack.i.bf16 %v486_v7, %v485_v15  ;;  %433 = vst [vmem:[#allocation2 + $0x98] sm:$0xff] %v2213_v35 }
  0x1b   : > { %v537_v9 = vld [vmem:[#allocation1 + $0x9] sm:$0xff]  ;;  %v2302_v10 = vld [vmem:[#allocation1] sm:$0xff]  ;;  %435 = vst [vmem:[#allocation2 + $0xa8] sm:$0xff] %v2213_v35 }
  0x1c   : > { %v541_v11 = vpack.i.b16 %v537_v9, %v537_v9  ;;  %886 = vst [vmem:[#allocation1] ss:$9 sm:$0xff] %v468_v0 }
  0x1d   : > { %437 = vst [vmem:[#allocation2 + $0xb8] sm:$0xff] %v2213_v35 }
  0x1e   : > { %v543_v12 = vperm.slane %v541_v11, 0  ;;  %439 = vst [vmem:[#allocation2 + $0xc8] sm:$0xff] %v2213_v35 }
  0x1f   : > { %441 = vst [vmem:[#allocation2 + $0xd8] sm:$0xff] %v2213_v35 }
  0x20   : > { %v548_v14 = vunpack.c.l.bf16 %v543_v12  ;;  %443 = vst [vmem:[#allocation2 + $0xe8] sm:$0xff] %v2213_v35 }
  0x21   : > { %445 = vst [vmem:[#allocation2 + $0xf8] sm:$0xff] %v2213_v35 }
  0x22   : > { %585 = vrot.lane.b32.xlu2 %v486_v7, %s2207_s24  ;;  %619 = vrot.lane.b32.xlu1 %v548_v14, %s2208_s25  ;;  %447 = vst [vmem:[#allocation2 + $0x108] sm:$0xff] %v2213_v35 }
  0x23   : > { %v887_v16 = vld [vmem:[#allocation1] sm:$0xff]  ;;  %v888_v17 = vld [vmem:[#allocation1 + $0x9] sm:$0xff]  ;;  %449 = vst [vmem:[#allocation2 + $0x118] sm:$0xff] %v2213_v35 }
  0x24   : > { %v889_v18 = vpack.i.b16 %v887_v16, %v887_v16  ;;  %v892_v19 = vpack.i.b16 %v888_v17, %v888_v17  ;;  %450 = vst [vmem:[#allocation2 + $0x120] sm:$0xff] %v2213_v35 }
  0x25   : > { %451 = vst [vmem:[#allocation2 + $0x128] sm:$0xff] %v2213_v35 }
  0x26   : > { %v891_v21 = vperm.slane %v889_v18, 0  ;;  %v894_v22 = vperm.slane %v892_v19, 0  ;;  %452 = vst [vmem:[#allocation2 + $0x130] sm:$0xff] %v2213_v35 }
  0x27   : > { %453 = vst [vmem:[#allocation2 + $0x138] sm:$0xff] %v2213_v35 }
  0x28   : > { %v897_v23 = vunpack.c.l.bf16 %v891_v21  ;;  %v898_v24 = vunpack.c.l.bf16 %v894_v22  ;;  %454 = vst [vmem:[#allocation2 + $0x140] sm:$0xff] %v2213_v35 }
  0x29   : > { %455 = vst [vmem:[#allocation2 + $0x148] sm:$0xff] %v2213_v35 }
  0x2a   : > { %698 = vrot.lane.b32.xlu1 %v548_v14, %s2209_s26  ;;  %2165 = vrot.lane.b32.xlu2 %v2164_v20, %s2210_s27  ;;  %v901_v25 = vrot.slane %v898_v24, 4  ;;  %456 = vst [vmem:[#allocation2 + $0x150] sm:$0xff] %v2213_v35 }
  0x2b   : > { %457 = vst [vmem:[#allocation2 + $0x158] sm:$0xff] %v2213_v35 }
  0x2c   : > { %v903_v26 = vsel %vm511_vm0, %v897_v23, %v901_v25  ;;  %458 = vst [vmem:[#allocation2 + $0x160] sm:$0xff] %v2213_v35  ;;  %v937_v23 = vld [vmem:[%s2450_s20] sm:$0x3f] }
  0x2d   : > { %904 = vrot.lane.b32.xlu0 %v903_v26, %s2210_s27  ;;  %v2169_v27 = vpack.i.bf16 %v485_v15, %v903_v26  ;;  %459 = vst [vmem:[#allocation2 + $0x168] sm:$0xff] %v2213_v35 }
  0x2e   : > { %460 = vst [vmem:[#allocation2 + $0x170] sm:$0xff] %v2213_v35 }
  0x2f   : > { %461 = vst [vmem:[#allocation2 + $0x178] sm:$0xff] %v2213_v35 }
  0x30   : > { %462 = vst [vmem:[#allocation2 + $0x180] sm:$0xff] %v2213_v35 }
  0x31   : > { %463 = vst [vmem:[#allocation2 + $0x188] sm:$0xff] %v2213_v35 }
  0x32   : > { %2170 = vrot.lane.b32.xlu1 %v2169_v27, %s2207_s24  ;;  %680 = vrot.lane.b32.xlu2 %v2298_v5, %s2211_s28  ;;  %464 = vst [vmem:[#allocation2 + $0x190] sm:$0xff] %v2213_v35 }
  0x33   : > { %465 = vst [vmem:[#allocation2 + $0x198] sm:$0xff] %v2213_v35 }
  0x34   : > { %466 = vst [vmem:[#allocation2 + $0x1a0] sm:$0xff] %v2213_v35 }
  0x35   : > { %553 = vrot.lane.b32.xlu0 %v548_v14, %s2212_s29  ;;  %467 = vst [vmem:[#allocation2 + $0x1a8] sm:$0xff] %v2213_v35  ;;  %v885_v14 = vld [vmem:[%s2450_s20] sm:$0x3f]  ;;  %v538_v35 = vpack.i.b16 %v2302_v10, %v2302_v10 }
  0x36   : > { %804 = vst [vmem:[#allocation2 + $0xd0] sm:$0xff] %v2414_v58  ;;  %v896_v15 = vunpack.c.h.bf16 %v885_v14  ;;  %v895_v17 = vunpack.c.l.bf16 %v885_v14 }
  0x3a   : > { %2175 = vrot.lane.b32.xlu2 %v2169_v27, %s2206_s23 }
  0x3d   : > { %682 = vrot.lane.b32.xlu0 %v677_v28, %s2211_s28 }
  0x74   : > { %v2335_v33 = vpop.permute.xlu2 %651 }
  0x75   : > { %v660_v34 = vmul.f32 %v2335_v33, %v648_v31  ;;  %v834_v36 = vmul.f32 %v831_v32, %v2335_v33 }
  0x77   : > { %v662_v37 = vpack.c.bf16 %v660_v34, %v660_v34  ;;  %v836_v40 = vpack.c.bf16 %v834_v36, %v834_v36  ;;  %v2108_v36 = vld [vmem:[#allocation2 + $0x74] sm:$0xf0] }
  0x79   : > { %667 = vrot.lane.b32.xlu1 %v662_v37, %s2212_s29  ;;  %841 = vrot.lane.b32.xlu2 %v836_v40, %s2212_s29 }
  0x7c   : > { %v2350_v41 = vpop.permute.xlu2 %585 }
  0x7d   : > { %v2354_v42 = vmul.f32 %v2350_v41, %v582_v38  ;;  %v2357_v43 = vmul.f32 %v785_v39, %v2350_v41 }
  0x84   : > { %v2166_v44 = vpop.permute.xlu2 %2165 }
  0x85   : > { %v2368_v45 = vunpack.i.h.bf16 %v2166_v44  ;;  %v2167_v46 = vunpack.i.l.bf16 %v2166_v44 }
  0x87   : > { %v494_v47 = vsel %vm493_vm1, %v2167_v46, %v2368_v45  ;;  %v2404_v55 = vmul.f32 %v2167_v46, %v2390_v51  ;;  %v2410_v57 = vmul.f32 %v2167_v46, %v2396_v53 }
  0x88   : > { %v2407_v56 = vmul.f32 %v2393_v52, %v494_v47  ;;  %v2417_v59 = vmul.f32 %v2400_v54, %v494_v47 }
  0x8a   : > { %v731_v60 = vpack.c.bf16 %v2407_v56, %v2404_v55  ;;  %v501_v61 = vpack.c.bf16 %v2417_v59, %v2410_v57 }
  0x8c   : > { %v2385_v50 = vpop.permute.xlu2 %680 }
  0x8d   : > { %v684_v26 = vrot.slane %v2385_v50, 4 }
  0x94   : > { %v2430_v0 = vpop.permute.xlu2 %2175  ;;  %v2477_v32 = vpop.permute.xlu1 %619 }
  0x95   : > { %v2178_v4 = vunpack.i.h.bf16 %v2430_v0 }
  0x97   : > { %v654_v6 = vsel %vm574_vm2, %v2178_v4, %v2335_v33  ;;  %v832_v7 = vmul.f32 %v2178_v4, %v2427_v62  ;;  %v658_v8 = vmul.f32 %v2178_v4, %v646_v63 }
  0x98   : > { %v833_v9 = vmul.f32 %v2434_v2, %v654_v6  ;;  %v659_v11 = vmul.f32 %v654_v6, %v647_v3 }
  0x9a   : > { %v835_v12 = vpack.c.bf16 %v833_v9, %v832_v7  ;;  %v661_v13 = vpack.c.bf16 %v659_v11, %v658_v8  ;;  %v613_v7 = vld [vmem:[%s2294_s22 + $0x8] sm:$0xff]  }
  0x9c   : > { %839 = vrot.lane.b32.xlu1 %v835_v12, %s2212_s29  ;;  %665 = vrot.lane.b32.xlu0 %v661_v13, %s2212_s29  ;;  %v2484_v46 = vpop.permute.xlu1 %698  ;;  %v616_v12 = vunpack.c.h.bf16 %v613_v7 }
  0x9e   : > { %v628_v14 = vmul.f32 %v2477_v32, %v616_v12 }
  0x9f   : > { %v905_v16 = vpop.permute.xlu0 %904 }
  0xa0   : > { %v906_v18 = vrot.slane %v905_v16, 4 }
  0xa2   : > { %v907_v19 = vsel %vm493_vm1, %v906_v18, %v905_v16  ;;  %v911_v20 = vmul.f32 %v906_v18, %v896_v15 }
  0xa3   : > { %v910_v21 = vmul.f32 %v907_v19, %v895_v17  ;;  %v630_v17 = vpack.c.bf16 %v628_v14, %v628_v14  ;;  %v2106_v14 = vld [vmem:[#allocation2 + $0x64] sm:$0xf0] }
  0xa4   : > { %916 = vst [vmem:[#allocation1 + $0x10] ss:$2 sm:$0xff] %v911_v20  ;;  %v2491_v15 = vpop.permute.xlu1 %2170 }
  0xa5   : > { %914 = vst [vmem:[#allocation1] ss:$2 sm:$0xff] %v910_v21  ;;  %v2173_v16 = vunpack.i.h.bf16 %v2491_v15 }
  0xa7   : > { %v2464_v22 = vpop.permute.xlu0 %553  ;;  %v588_v18 = vsel %vm587_vm4, %v2173_v16, %v2350_v41  ;;  %v786_v19 = vmul.f32 %v2173_v16, %v2390_v51  ;;  %v806_v41 = vld [vmem:[%s2322_s12 + $0x8] sm:$0xff]  }
  0xa8   : > { %v787_v20 = vmul.f32 %v2393_v52, %v588_v18 }
  0xaa   : > { %v789_v21 = vpack.c.bf16 %v787_v20, %v786_v19  ;;  %v954_v20 = vld [vmem:[%s2450_s20] sm:$0x3f] }
  0xab   : > { %v2473_v30 = vld.sshfl [vmem:[#allocation1 + $0x10] sm:$0xff pattern:$0x75316420] }
  0xac   : > { %v2467_v24 = vld.sshfl [vmem:[#allocation1] sm:$0xff pattern:$0x75316420]  ;;  %v2469_v25 = vld.sshfl [vmem:[#allocation1 + $0x8] sm:$0xff pattern:$0x75316420] }
  0xad   : > { %939 = vst [vmem:[#allocation1] ss:$2 sm:$0xff] %v937_v23  ;;  %v592_v23 = vmul.f32 %v2173_v16, %v2396_v53 }
  0xaf   : > { %v683_v27 = vpop.permute.xlu0 %682 }
  0xb0   : > { %v685_v28 = vrot.slane %v683_v27, 4 }
  0xb2   : > { %v686_v29 = vsel %vm511_vm0, %v684_v26, %v685_v28  ;;  %v593_v26 = vmul.f32 %v588_v18, %v2400_v54  ;;  %v809_v28 = vunpack.c.h.bf16 %v806_v41 }
  0xb3   : > { %v688_v31 = vsel %vm687_vm3, %v2385_v50, %v686_v29  ;;  %v540_v50 = vperm.slane %v538_v35, 0  ;;  %v763_v35 = vunpack.c.l.bf16 %v806_v41 }
  0xb4   : > { %v2479_v33 = vld.sshfl [vmem:[#allocation1] sm:$0xff pattern:$0x75643120]  ;;  %v942_v34 = vld.sshfl [vmem:[#allocation1 + $0x8] sm:$0xff pattern:$0x75643120]  ;;  %v595_v27 = vpack.c.bf16 %v593_v26, %v592_v23  ;;  %v812_v29 = vmul.f32 %v809_v28, %v2477_v32  ;;  %v964_v28 = vunpack.c.l.bf16 %v954_v20 }
  0xb5   : > { %955 = vst [vmem:[#allocation1] ss:$9 sm:$0xff] %v2286_v1  ;;  %v547_v9 = vunpack.c.l.bf16 %v540_v50 }
  0xb6   : > { %690 = vst [vmem:[#allocation2 + $0x70] sm:$0xff] %v688_v31  ;;  %v814_v31 = vpack.c.bf16 %v812_v29, %v812_v29  ;;  %v2172_v29 = vunpack.i.l.bf16 %v2491_v15 }
  0xbc   : > { %v957_v37 = vld [vmem:[#allocation1 + $0x9] sm:$0xff]  ;;  %v956_v38 = vld [vmem:[#allocation1] sm:$0xff] }
  0xbd   : > { %v1924_v39 = vld [vmem:[#allocation2 + $0x70] sm:$0xf]  ;;  %v958_v40 = vpack.i.b16 %v956_v38, %v956_v38  ;;  %v961_v44 = vpack.i.b16 %v957_v37, %v957_v37  ;;  %v546_v37 = vunpack.c.l.bf16 %v613_v7 }
  0xbe   : > { %v1925_v47 = vor.u32 %v2108_v36, %v1924_v39  ;;  %v766_v36 = vmul.f32 %v763_v35, %v2464_v22 }
  0xbf   : > { %v960_v4 = vperm.slane %v958_v40, 0  ;;  %v963_v6 = vperm.slane %v961_v44, 0 }
  0xc0   : > { %1515 = vmatpush.bf16.msra.mxu0 %v1925_v47  ;;  %v768_v38 = vpack.c.bf16 %v766_v36, %v766_v36 }
  0xc1   : > { %v966_v8 = vunpack.c.l.bf16 %v960_v4  ;;  %v967_v1 = vunpack.c.l.bf16 %v963_v6 }
  0xc3   : > { %v970_v11 = vrot.slane %v967_v1, 4 }
  0xc5   : > { %v971_v10 = vsel %vm511_vm0, %v966_v8, %v970_v11 }
  0xc6   : > { %v2488_v13 = vpack.i.bf16 %v547_v9, %v971_v10  ;;  %v2124_v10 = vld [vmem:[#allocation2 + $0xf4] sm:$0xf0] }
  0xc8   : > { %2185 = vrot.lane.b32.xlu1 %v2488_v13, %s2208_s25  ;;  %2180 = vrot.lane.b32.xlu0 %v2488_v13, %s2212_s29 }
  0xd0   : > { %635 = vrot.lane.b32.xlu1 %v630_v17, %s2207_s24  ;;  %819 = vrot.lane.b32.xlu0 %v814_v31, %s2207_s24 }
  0xd3   : > { %v842_v44 = vpop.permute.xlu2 %841 }
  0xd4   : > { %v844_v6 = vrot.slane %v842_v44, 4  ;;  %v1005_v44 = vld [vmem:[%s2450_s20] sm:$0x3f] }
  0xd8   : > { %793 = vrot.lane.b32.xlu1 %v789_v21, %s2208_s25 }
  0xe0   : > { %946 = vrot.lane.b32.xlu1 %v942_v34, %s2214_s21  ;;  %v562_v34 = vmul.f32 %v2464_v22, %v546_v37 }
  0xe2   : > { %v564_v40 = vpack.c.bf16 %v562_v34, %v562_v34 }
  0xe8   : > { %599 = vrot.lane.b32.xlu1 %v595_v27, %s2208_s25  ;;  %v965_v27 = vunpack.c.h.bf16 %v954_v20 }
  0xeb   : > { %v668_v39 = vpop.permute.xlu1 %667 }
  0xec   : > { %v670_v47 = vrot.slane %v668_v39, 4 }
  0xf0   : > { %773 = vrot.lane.b32.xlu1 %v768_v38, %s2206_s23 }
  0xf8   : > { %569 = vrot.lane.b32.xlu1 %v564_v40, %s2206_s23 }
 0x10e   : > { %v840_v50 = vpop.permute.xlu1 %839  ;;  %v666_v4 = vpop.permute.xlu0 %665 }
 0x10f   : > { %v843_v8 = vrot.slane %v840_v50, 4  ;;  %v669_v1 = vrot.slane %v666_v4, 4 }
 0x111   : > { %v845_v7 = vsel %vm511_vm0, %v843_v8, %v844_v6  ;;  %v671_v9 = vsel %vm511_vm0, %v669_v1, %v670_v47  ;;  %v1047_v1 = vld [vmem:[%s2450_s20 + $0x2] sm:$0x3f] }
 0x112   : > { %v846_v11 = vsel %vm555_vm5, %v840_v50, %v845_v7  ;;  %v673_v12 = vsel %vm555_vm5, %v666_v4, %v671_v9  ;;  %v1007_v4 = vunpack.c.h.bf16 %v1005_v44  ;;  %v790_v7 = vpack.c.bf16 %v2357_v43, %v2357_v43 }
 0x113   : > { %848 = vst [vmem:[#allocation2 + $0xf0] sm:$0xff] %v846_v11 }
 0x114   : > { %675 = vst [vmem:[#allocation2 + $0x60] sm:$0xff] %v673_v12 }
 0x11a   : > { %v1988_v16 = vld [vmem:[#allocation2 + $0xf0] sm:$0xf] }
 0x11b   : > { %v1916_v17 = vld [vmem:[#allocation2 + $0x60] sm:$0xf]  ;;  %v1989_v18 = vor.u32 %v2124_v10, %v1988_v16  ;;  %v1049_v16 = vunpack.c.h.bf16 %v1047_v1 }
 0x11c   : > { %v1917_v19 = vor.u32 %v2106_v14, %v1916_v17 }
 0x11d   : > { %1528 = vmatpush.bf16.msra.mxu1 %v1989_v18 }
 0x11e   : > { %1516 = vmatpush.bf16.msra.mxu0 %v1917_v19 }
 0x13a   : > { %v2520_v21 = vpop.permute.xlu1 %2185  ;;  %v2181_v23 = vpop.permute.xlu0 %2180 }
 0x13b   : > { %v2188_v26 = vunpack.i.h.bf16 %v2520_v21  ;;  %v2182_v41 = vunpack.i.l.bf16 %v2181_v23  ;;  %v2183_v6 = vunpack.i.h.bf16 %v2181_v23  ;;  %v2187_v8 = vunpack.i.l.bf16 %v2520_v21 }
 0x13c   : > { %v596_v21 = vpack.c.bf16 %v2354_v42, %v2354_v42 }
 0x13d   : > { %v622_v31 = vsel %vm606_vm6, %v2188_v26, %v2477_v32  ;;  %v974_v35 = vrot.slane %v2182_v41, 4  ;;  %v810_v36 = vmul.f32 %v2188_v26, %v2427_v62  ;;  %v626_v38 = vmul.f32 %v2188_v26, %v646_v63  ;;  %v1041_v26 = vld [vmem:[%s2450_s20 + $0x2] sm:$0xf] }
 0x13e   : > { %v811_v37 = vmul.f32 %v2434_v2, %v622_v31  ;;  %v627_v34 = vmul.f32 %v647_v3, %v622_v31  ;;  %v1010_v32 = vrot.slane %v2172_v29, 4  ;;  %v1006_v63 = vunpack.c.l.bf16 %v1005_v44 }
 0x13f   : > { %v975_v39 = vsel %vm555_vm5, %v974_v35, %v2182_v41  ;;  %v979_v40 = vmul.f32 %v974_v35, %v965_v27  ;;  %v556_v12 = vsel %vm555_vm5, %v2183_v6, %v2464_v22  ;;  %v1052_v17 = vrot.slane %v2187_v8, 4  ;;  %v1083_v22 = vld [vmem:[%s2450_s20 + $0x2] sm:$0x3f] }
 0x140   : > { %v978_v15 = vmul.f32 %v975_v39, %v964_v28  ;;  %v813_v47 = vpack.c.bf16 %v811_v37, %v810_v36  ;;  %v629_v50 = vpack.c.bf16 %v627_v34, %v626_v38  ;;  %v1011_v5 = vsel %vm587_vm4, %v1010_v32, %v2172_v29  ;;  %v864_v34 = vld [vmem:[%s2322_s12 + $0x8] sm:$0xff]  }
 0x141   : > { %984 = vst [vmem:[#allocation1 + $0x10] ss:$2 sm:$0xff] %v979_v40  ;;  %v1015_v3 = vmul.f32 %v1010_v32, %v1007_v4  ;;  %v1014_v11 = vmul.f32 %v1011_v5, %v1006_v63  ;;  %v764_v43 = vmul.f32 %v2183_v6, %v2390_v51  ;;  %v765_v18 = vmul.f32 %v2393_v52, %v556_v12  ;;  %v1119_v4 = vld [vmem:[%s2450_s20 + $0x2] sm:$0x3f]  ;;  %v746_v63 = vld [vmem:[%s2322_s12 + $0x8] sm:$0xf] }
 0x142   : > { %982 = vst [vmem:[#allocation1] ss:$2 sm:$0xff] %v978_v15  ;;  %817 = vrot.lane.b32.xlu2 %v813_v47, %s2207_s24  ;;  %633 = vrot.lane.b32.xlu0 %v629_v50, %s2207_s24  ;;  %v1057_v19 = vmul.f32 %v1052_v17, %v1049_v16  ;;  %v2177_v27 = vunpack.i.l.bf16 %v2430_v0  ;;  %v1085_v51 = vunpack.c.h.bf16 %v1083_v22  ;;  %v1048_v29 = vunpack.c.l.bf16 %v1047_v1 }
 0x143   : > { %v767_v20 = vpack.c.bf16 %v765_v18, %v764_v43  ;;  %v1053_v42 = vsel %vm606_vm6, %v1052_v17, %v2187_v8  ;;  %v924_v0 = vpack.c.bf16 %v2473_v30, %v2473_v30  ;;  %v923_v31 = vpack.c.bf16 %v2469_v25, %v2467_v24 }
 0x144   : > { %v1088_v52 = vrot.slane %v2177_v27, 4  ;;  %v1056_v36 = vmul.f32 %v1053_v42, %v1048_v29  ;;  %v1084_v38 = vunpack.c.l.bf16 %v1083_v22  ;;  %v867_v30 = vunpack.c.h.bf16 %v864_v34 }
 0x145   : > { %v560_v40 = vmul.f32 %v2183_v6, %v2396_v53  ;;  %v561_v44 = vmul.f32 %v2400_v54, %v556_v12  ;;  %v727_v53 = vunpack.c.l.bf16 %v864_v34  ;;  %v518_v6 = vld [vmem:[%s2294_s22 + $0x8] sm:$0xf]  ;;  %v820_v12 = vpop.permute.xlu0 %819 }
 0x146   : > { %v1093_v28 = vmul.f32 %v1088_v52, %v1085_v51  ;;  %v1089_v39 = vsel %vm574_vm2, %v1088_v52, %v2177_v27  ;;  %v870_v25 = vmul.f32 %v867_v30, %v2484_v46  ;;  %v822_v16 = vrot.slane %v820_v12, 4  ;;  %v2120_v27 = vld [vmem:[#allocation2 + $0xd4] sm:$0xf0] }
 0x147   : > { %v1092_v24 = vmul.f32 %v1089_v39, %v1084_v38  ;;  %v563_v32 = vpack.c.bf16 %v561_v44, %v560_v40  ;;  %v730_v54 = vmul.f32 %v2368_v45, %v727_v53 }
 0x148   : > { %v2541_v9 = vld.sshfl [vmem:[#allocation1 + $0x10] sm:$0xff pattern:$0x75316420]  ;;  %v872_v50 = vpack.c.bf16 %v870_v25, %v870_v25 }
 0x149   : > { %1020 = vst [vmem:[#allocation1 + $0x10] ss:$2 sm:$0xff] %v1015_v3  ;;  %v2545_v10 = vld.sshfl [vmem:[#allocation1] sm:$0xff pattern:$0x75316420]  ;;  %v732_v5 = vpack.c.bf16 %v730_v54, %v730_v54  ;;  %v992_v3 = vpack.c.bf16 %v2541_v9, %v2541_v9 }
 0x14a   : > { %795 = vrot.lane.b32.xlu2 %v790_v7, %s2208_s25  ;;  %944 = vrot.lane.b32.xlu0 %v2479_v33, %s2214_s21  ;;  %v2550_v14 = vld.sshfl [vmem:[#allocation1 + $0x8] sm:$0xff pattern:$0x75316420]  ;;  %v636_v7 = vpop.permute.xlu1 %635 }
 0x14b   : > { %1018 = vst [vmem:[#allocation1] ss:$2 sm:$0xff] %v1014_v11  ;;  %v991_v8 = vpack.c.bf16 %v2550_v14, %v2545_v10  ;;  %v638_v30 = vrot.slane %v636_v7, 4 }
 0x150   : > { %v1023_v23 = vld.sshfl [vmem:[#allocation1 + $0x10] sm:$0xff pattern:$0x75316420] }
 0x151   : > { %1062 = vst [vmem:[#allocation1 + $0x10] ss:$2 sm:$0xff] %v1057_v19 }
 0x152   : > { %771 = vrot.lane.b32.xlu0 %v767_v20, %s2206_s23  ;;  %601 = vrot.lane.b32.xlu2 %v596_v21, %s2208_s25  ;;  %v2561_v33 = vld.sshfl [vmem:[#allocation1] sm:$0xff pattern:$0x75316420]  ;;  %v2563_v41 = vld.sshfl [vmem:[#allocation1 + $0x8] sm:$0xff pattern:$0x75316420]  ;;  %v794_v11 = vpop.permute.xlu1 %793 }
 0x153   : > { %1043 = vst [vmem:[#allocation1] ss:$2 sm:$0xff] %v1041_v26  ;;  %v797_v19 = vrot.slane %v794_v11, 4  ;;  %v2122_v20 = vld [vmem:[#allocation2 + $0xe4] sm:$0xf0]  ;;  %v1027_v56 = vpack.c.bf16 %v2563_v41, %v2561_v33 }
 0x154   : > { %v1972_v26 = vld [vmem:[#allocation2 + $0xd0] sm:$0xf] }
 0x158   : > { %v2570_v35 = vld.sshfl [vmem:[#allocation1 + $0x10] sm:$0xff pattern:$0x75316420] }
 0x159   : > { %1098 = vst [vmem:[#allocation1 + $0x10] ss:$2 sm:$0xff] %v1093_v28  ;;  %v1973_v28 = vor.u32 %v2120_v27, %v1972_v26  ;;  %v1136_v26 = vld [vmem:[%s2450_s20 + $0x2] sm:$0x3f] }
 0x15a   : > { %929 = vrot.lane.b32.xlu0 %v924_v0, %s2209_s26  ;;  %927 = vrot.lane.b32.xlu2 %v923_v31, %s2209_s26  ;;  %v1044_v37 = vld.sshfl [vmem:[#allocation1] sm:$0xff pattern:$0x75643120]  ;;  %v947_v14 = vpop.permute.xlu1 %946  ;;  %v2118_v31 = vld [vmem:[#allocation2 + $0xc4] sm:$0xf0] }
 0x15b   : > { %1046 = vst [vmem:[#allocation2 + $0x160] sm:$0x33] %v1044_v37  ;;  %v949_v44 = vrot.slane %v947_v14, 4 }
 0x15c   : > { %1060 = vst [vmem:[#allocation1] ss:$2 sm:$0xff] %v1056_v36 }
 0x162   : > { %2190 = vrot.lane.b32.xlu0 %v2488_v13, %s2209_s26  ;;  %749 = vrot.lane.b32.xlu2 %v2379_v48, %s2214_s21  ;;  %v600_v52 = vpop.permute.xlu1 %599 }
 0x163   : > { %v1063_v15 = vld.sshfl [vmem:[#allocation1] sm:$0xff pattern:$0x75316420]  ;;  %v1064_v47 = vld.sshfl [vmem:[#allocation1 + $0x8] sm:$0xff pattern:$0x75316420] }
 0x164   : > { %1096 = vst [vmem:[#allocation1] ss:$2 sm:$0xff] %v1092_v24  ;;  %v1069_v1 = vpack.c.bf16 %v1064_v47, %v1063_v15  ;;  %v603_v42 = vrot.slane %v600_v52, 4 }
 0x16a   : > { %877 = vrot.lane.b32.xlu2 %v872_v50, %s2210_s27  ;;  %567 = vrot.lane.b32.xlu0 %v563_v32, %s2206_s23  ;;  %v2104_v50 = vld [vmem:[#allocation2 + $0x54] sm:$0xf0] }
 0x16b   : > { %v2586_v48 = vld.sshfl [vmem:[#allocation1] sm:$0xff pattern:$0x75316420]  ;;  %v2588_v13 = vld.sshfl [vmem:[#allocation1 + $0x8] sm:$0xff pattern:$0x75316420] }
 0x16c   : > { %1121 = vst [vmem:[#allocation1] ss:$2 sm:$0xff] %v1119_v4 }
 0x172   : > { %751 = vrot.lane.b32.xlu0 %v746_v63, %s2214_s21  ;;  %521 = vrot.lane.b32.xlu2 %v2382_v49, %s2214_s21  ;;  %v1028_v49 = vpack.c.bf16 %v1023_v23, %v1023_v23 }
 0x173   : > { %v1124_v4 = vld.sshfl [vmem:[#allocation1 + $0x8] sm:$0xff pattern:$0x75643120] }
 0x17a   : > { %523 = vrot.lane.b32.xlu0 %v518_v6, %s2214_s21  ;;  %737 = vrot.lane.b32.xlu2 %v732_v5, %s2209_s26  ;;  %v1900_v6 = vld [vmem:[#allocation2 + $0x40] sm:$0xf]  ;;  %v2102_v5 = vld [vmem:[#allocation2 + $0x44] sm:$0xf0] }
 0x182   : > { %997 = vrot.lane.b32.xlu0 %v992_v3, %s2206_s23  ;;  %995 = vrot.lane.b32.xlu2 %v991_v8, %s2206_s23  ;;  %v1901_v8 = vor.u32 %v2102_v5, %v1900_v6 }
 0x18a   : > { %1073 = vrot.lane.b32.xlu0 %v1069_v1, %s2207_s24  ;;  %1033 = vrot.lane.b32.xlu2 %v1028_v49, %s2208_s25  ;;  %v774_v1 = vpop.permute.xlu1 %773 }
 0x18b   : > { %v776_v7 = vrot.slane %v774_v1, 4 }
 0x192   : > { %853 = vrot.lane.b32.xlu0 %v2414_v58, %s2211_s28  ;;  %1128 = vrot.lane.b32.xlu2 %v1124_v4, %s2211_s28 }
 0x19c   : > { %v818_v9 = vpop.permute.xlu2 %817 }
 0x19d   : > { %v821_v17 = vrot.slane %v818_v9, 4 }
 0x19f   : > { %v823_v10 = vsel %vm511_vm0, %v821_v17, %v822_v16 }
 0x1a0   : > { %v824_v43 = vsel %vm587_vm4, %v818_v9, %v823_v10  ;;  %v2100_v9 = vld [vmem:[#allocation2 + $0x34] sm:$0xf0] }
 0x1a1   : > { %826 = vst [vmem:[#allocation2 + $0xe0] sm:$0xff] %v824_v43 }
 0x1a4   : > { %v796_v18 = vpop.permute.xlu2 %795 }
 0x1a5   : > { %v798_v22 = vrot.slane %v796_v18, 4 }
 0x1a7   : > { %v799_v21 = vsel %vm511_vm0, %v797_v19, %v798_v22  ;;  %v2116_v22 = vld [vmem:[#allocation2 + $0xb4] sm:$0xf0] }
 0x1a8   : > { %v800_v23 = vsel %vm606_vm6, %v794_v11, %v799_v21  ;;  %v1980_v58 = vld [vmem:[#allocation2 + $0xe0] sm:$0xf] }
 0x1a9   : > { %802 = vst [vmem:[#allocation2 + $0xc0] sm:$0xff] %v800_v23  ;;  %v1981_v51 = vor.u32 %v2122_v20, %v1980_v58 }
 0x1ab   : > { %1529 = vmatpush.bf16.msra.mxu1 %v1981_v51 }
 0x1ac   : > { %v602_v29 = vpop.permute.xlu2 %601 }
 0x1ad   : > { %v604_v0 = vrot.slane %v602_v29, 4 }
 0x1af   : > { %v605_v36 = vsel %vm511_vm0, %v603_v42, %v604_v0  ;;  %1530 = vmatpush.bf16.msra.mxu1 %v1973_v28  ;;  %v1137_v42 = vunpack.c.l.bf16 %v1136_v26 }
 0x1b0   : > { %v607_v37 = vsel %vm606_vm6, %v600_v52, %v605_v36  ;;  %v1964_v38 = vld [vmem:[#allocation2 + $0xc0] sm:$0xf]  ;;  %v1138_v52 = vunpack.c.h.bf16 %v1136_v26 }
 0x1b1   : > { %609 = vst [vmem:[#allocation2 + $0x30] sm:$0xff] %v607_v37  ;;  %v1965_v34 = vor.u32 %v2118_v31, %v1964_v38  ;;  %v2637_v38 = vld.sshfl [vmem:[#allocation1] sm:$0xff pattern:$0x75643120] }
 0x1b3   : > { %1531 = vmatpush.bf16.msra.mxu1 %v1965_v34 }
 0x1b4   : > { %v634_v39 = vpop.permute.xlu0 %633  ;;  %v928_v63 = vpop.permute.xlu2 %927 }
 0x1b5   : > { %v637_v24 = vrot.slane %v634_v39, 4  ;;  %v931_v18 = vrot.slane %v928_v63, 4 }
 0x1b7   : > { %v639_v25 = vsel %vm511_vm0, %v637_v24, %v638_v30  ;;  %v2640_v30 = vld.sshfl [vmem:[#allocation1 + $0x10] sm:$0xff pattern:$0x75316420]  ;;  %v570_v24 = vpop.permute.xlu1 %569 }
 0x1b8   : > { %v641_v40 = vsel %vm587_vm4, %v634_v39, %v639_v25  ;;  %v1892_v12 = vld [vmem:[#allocation2 + $0x30] sm:$0xf] }
 0x1b9   : > { %643 = vst [vmem:[#allocation2 + $0x50] sm:$0xff] %v641_v40  ;;  %v1893_v10 = vor.u32 %v2100_v9, %v1892_v12  ;;  %v471_v12 = vld [vmem:[%s2294_s22 + $0x8] sm:$0xf]  ;;  %v692_v9 = vld [vmem:[%s2294_s22 + $0xc] sm:$0xf] }
 0x1bc   : > { %v945_v15 = vpop.permute.xlu0 %944  ;;  %v750_v14 = vpop.permute.xlu2 %749 }
 0x1bd   : > { %v948_v47 = vrot.slane %v945_v15, 4 }
 0x1bf   : > { %v950_v32 = vsel %vm511_vm0, %v948_v47, %v949_v44 }
 0x1c0   : > { %v951_v53 = vsel %vm528_vm7, %v945_v15, %v950_v32  ;;  %v1908_v54 = vld [vmem:[#allocation2 + $0x50] sm:$0xf]  ;;  %v572_v15 = vrot.slane %v570_v24, 4  ;;  %v753_v32 = vrot.slane %v750_v14, 4 }
 0x1c1   : > { %953 = vst [vmem:[#allocation2 + $0x130] sm:$0x33] %v951_v53  ;;  %v1909_v3 = vor.u32 %v2104_v50, %v1908_v54 }
 0x1c3   : > { %1517 = vmatpush.bf16.msra.mxu0 %v1909_v3 }
 0x1c4   : > { %v772_v49 = vpop.permute.xlu0 %771  ;;  %v2624_v27 = vpop.permute.xlu2 %877 }
 0x1c5   : > { %v775_v11 = vrot.slane %v772_v49, 4 }
 0x1c7   : > { %v777_v16 = vsel %vm511_vm0, %v775_v11, %v776_v7  ;;  %1518 = vmatpush.bf16.msra.mxu0 %v1901_v8  ;;  %v2098_v8 = vld [vmem:[#allocation2 + $0x24] sm:$0xf0] }
 0x1c8   : > { %v778_v17 = vsel %vm574_vm2, %v772_v49, %v777_v16  ;;  %v1105_v16 = vpack.c.bf16 %v2588_v13, %v2586_v48 }
 0x1c9   : > { %780 = vst [vmem:[#allocation2 + $0xb0] sm:$0xff] %v778_v17  ;;  %v484_v17 = vunpack.c.l.bf16 %v471_v12 }
 0x1cb   : > { %1519 = vmatpush.bf16.msra.mxu0 %v1893_v10  ;;  %v695_v10 = vunpack.c.l.bf16 %v692_v9  ;;  %v500_v41 = vmul.f32 %v2368_v45, %v484_v17 }
 0x1cc   : > { %v930_v43 = vpop.permute.xlu0 %929  ;;  %v522_v47 = vpop.permute.xlu2 %521 }
 0x1cd   : > { %v932_v19 = vrot.slane %v930_v43, 4 }
 0x1cf   : > { %v933_v20 = vsel %vm511_vm0, %v931_v18, %v932_v19  ;;  %v1070_v19 = vpack.c.bf16 %v2570_v35, %v2570_v35  ;;  %v1106_v35 = vpack.c.bf16 %v2640_v30, %v2640_v30 }
 0x1d0   : > { %v934_v21 = vsel %vm513_vm8, %v928_v63, %v933_v20  ;;  %v1956_v23 = vld [vmem:[#allocation2 + $0xb0] sm:$0xf] }
 0x1d1   : > { %936 = vst [vmem:[#allocation2 + $0x120] sm:$0x33] %v934_v21  ;;  %v1957_v58 = vor.u32 %v2116_v22, %v1956_v23  ;;  %v502_v22 = vpack.c.bf16 %v500_v41, %v500_v41  ;;  %v691_v21 = vld [vmem:[%s2294_s22 + $0x4] sm:$0xff]  ;;  %v850_v23 = vld [vmem:[%s2322_s12 + $0xc] sm:$0xf] }
 0x1d2   : > { %v694_v26 = vunpack.c.h.bf16 %v691_v21 }
 0x1d3   : > { %1532 = vmatpush.bf16.msra.mxu1 %v1957_v58  ;;  %v693_v58 = vunpack.c.l.bf16 %v691_v21 }
 0x1d4   : > { %v2191_v51 = vpop.permute.xlu0 %2190  ;;  %v2652_v49 = vpop.permute.xlu2 %737 }
 0x1d5   : > { %v2626_v28 = vunpack.i.h.bf16 %v2191_v51  ;;  %v2192_v29 = vunpack.i.l.bf16 %v2191_v51 }
 0x1d7   : > { %v2631_v0 = vsel %vm513_vm8, %v2626_v28, %v2484_v46  ;;  %v1141_v31 = vrot.slane %v2192_v29, 4  ;;  %v868_v36 = vmul.f32 %v2626_v28, %v2427_v62  ;;  %v705_v51 = vmul.f32 %v2626_v28, %v693_v58  ;;  %v2044_v58 = vld [vmem:[#allocation2 + $0x160] sm:$0xf] }
 0x1d8   : > { %v869_v37 = vmul.f32 %v2434_v2, %v2631_v0 }
 0x1d9   : > { %v1142_v34 = vsel %vm513_vm8, %v1141_v31, %v2192_v29  ;;  %v1146_v39 = vmul.f32 %v1141_v31, %v1138_v52  ;;  %v706_v52 = vmul.f32 %v2631_v0, %v694_v26  ;;  %v2114_v31 = vld [vmem:[#allocation2 + $0xa4] sm:$0xf0]  ;;  %v880_v0 = vrot.slane %v2624_v27, 4 }
 0x1da   : > { %v1145_v25 = vmul.f32 %v1142_v34, %v1137_v42  ;;  %v871_v40 = vpack.c.bf16 %v869_v37, %v868_v36  ;;  %v2096_v34 = vld [vmem:[#allocation2 + $0x14] sm:$0xf0]  ;;  %v2138_v26 = vld [vmem:[#allocation2 + $0x164] sm:$0xf0] }
 0x1db   : > { %1151 = vst [vmem:[#allocation1 + $0x10] ss:$2 sm:$0xff] %v1146_v39  ;;  %v708_v29 = vpack.c.bf16 %v706_v52, %v705_v51 }
 0x1dc   : > { %875 = vrot.lane.b32.xlu1 %v871_v40, %s2210_s27  ;;  %v568_v44 = vpop.permute.xlu0 %567  ;;  %1149 = vst [vmem:[#allocation1] ss:$2 sm:$0xff] %v1145_v25  ;;  %v996_v13 = vpop.permute.xlu2 %995 }
 0x1dd   : > { %v571_v62 = vrot.slane %v568_v44, 4 }
 0x1df   : > { %v573_v2 = vsel %vm511_vm0, %v571_v62, %v572_v15 }
 0x1e0   : > { %v575_v50 = vsel %vm574_vm2, %v568_v44, %v573_v2  ;;  %v740_v2 = vrot.slane %v2652_v49, 4 }
 0x1e1   : > { %577 = vst [vmem:[#allocation2 + $0x20] sm:$0xff] %v575_v50 }
 0x1e2   : > { %v1154_v4 = vld.sshfl [vmem:[#allocation1 + $0x10] sm:$0xff pattern:$0x75316420] }
 0x1e3   : > { %v1159_v63 = vpack.c.bf16 %v1154_v4, %v1154_v4  ;;  %v1152_v53 = vld.sshfl [vmem:[#allocation1] sm:$0xff pattern:$0x75316420]  ;;  %v1153_v54 = vld.sshfl [vmem:[#allocation1 + $0x8] sm:$0xff pattern:$0x75316420] }
 0x1e4   : > { %735 = vrot.lane.b32.xlu1 %v731_v60, %s2209_s26  ;;  %v752_v6 = vpop.permute.xlu0 %751  ;;  %v1158_v5 = vpack.c.bf16 %v1153_v54, %v1152_v53  ;;  %v525_v60 = vrot.slane %v522_v47, 4  ;;  %v1034_v39 = vpop.permute.xlu2 %1033 }
 0x1e5   : > { %v754_v3 = vrot.slane %v752_v6, 4  ;;  %1164 = vrot.lane.b32.xlu0 %v1159_v63, %s2210_s27 }
 0x1e6   : > { %1162 = vrot.lane.b32.xlu2 %v1158_v5, %s2210_s27 }
 0x1e7   : > { %v755_v1 = vsel %vm511_vm0, %v753_v32, %v754_v3  ;;  %v1036_v3 = vrot.slane %v1034_v39, 4 }
 0x1e8   : > { %v756_v7 = vsel %vm528_vm7, %v750_v14, %v755_v1  ;;  %v1884_v11 = vld [vmem:[#allocation2 + $0x20] sm:$0xf]  ;;  %v707_v14 = vmul.f32 %v2484_v46, %v695_v10 }
 0x1e9   : > { %758 = vst [vmem:[#allocation2 + $0xa0] sm:$0xff] %v756_v7  ;;  %v1885_v55 = vor.u32 %v2098_v8, %v1884_v11  ;;  %v2112_v7 = vld [vmem:[#allocation2 + $0x94] sm:$0xf0]  ;;  %v2146_v11 = vld [vmem:[#allocation2 + $0x1a4] sm:$0xf0] }
 0x1ea   : > { %v709_v59 = vpack.c.bf16 %v707_v14, %v707_v14 }
 0x1eb   : > { %1520 = vmatpush.bf16.msra.mxu0 %v1885_v55 }
 0x1ec   : > { %1031 = vrot.lane.b32.xlu1 %v1027_v56, %s2208_s25  ;;  %v524_v43 = vpop.permute.xlu0 %523  ;;  %v2689_v24 = vpop.permute.xlu2 %1128 }
 0x1ed   : > { %v526_v18 = vrot.slane %v524_v43, 4  ;;  %1109 = vrot.lane.b32.xlu0 %v1105_v16, %s2212_s29 }
 0x1ee   : > { %505 = vrot.lane.b32.xlu2 %v501_v61, %s2209_s26  ;;  %v999_v61 = vrot.slane %v996_v13, 4 }
 0x1ef   : > { %v527_v33 = vsel %vm511_vm0, %v525_v60, %v526_v18 }
 0x1f0   : > { %v529_v48 = vsel %vm528_vm7, %v522_v47, %v527_v33  ;;  %v1948_v42 = vld [vmem:[#allocation2 + $0xa0] sm:$0xf] }
 0x1f1   : > { %531 = vst [vmem:[#allocation2 + $0x10] sm:$0xff] %v529_v48  ;;  %v1949_v36 = vor.u32 %v2114_v31, %v1948_v42  ;;  %v2045_v31 = vor.u32 %v2138_v26, %v2044_v58 }
 0x1f3   : > { %1533 = vmatpush.bf16.msra.mxu1 %v1949_v36 }
 0x1f4   : > { %1075 = vrot.lane.b32.xlu1 %v1070_v19, %s2207_s24  ;;  %v998_v57 = vpop.permute.xlu0 %997 }
 0x1f5   : > { %v1000_v20 = vrot.slane %v998_v57, 4  ;;  %507 = vrot.lane.b32.xlu0 %v502_v22, %s2209_s26 }
 0x1f6   : > { %714 = vrot.lane.b32.xlu2 %v709_v59, %s2210_s27 }
 0x1f7   : > { %v1001_v45 = vsel %vm511_vm0, %v999_v61, %v1000_v20  ;;  %v2140_v61 = vld [vmem:[#allocation2 + $0x174] sm:$0xf0] }
 0x1f8   : > { %v1002_v46 = vsel %vm574_vm2, %v996_v13, %v1001_v45  ;;  %v1876_v37 = vld [vmem:[#allocation2 + $0x10] sm:$0xf]  ;;  %v2094_v45 = vld [vmem:[#allocation2 + $0x4] sm:$0xf0] }
 0x1f9   : > { %1004 = vst [vmem:[#allocation2 + $0x140] sm:$0x33] %v1002_v46  ;;  %v2123_v46 = vld [vmem:[#allocation2 + $0xf4] sm:$0xf] }
 0x1fc   : > { %1111 = vrot.lane.b32.xlu1 %v1106_v35, %s2212_s29  ;;  %v1074_v30 = vpop.permute.xlu0 %1073  ;;  %v1990_v35 = vld [vmem:[#allocation2 + $0xf8] sm:$0xf0] }
 0x1fd   : > { %v1077_v10 = vrot.slane %v1074_v30, 4  ;;  %v1993_v42 = vor.u32 %v2123_v46, %v1990_v35 }
 0x204   : > { %1126 = vrot.lane.b32.xlu1 %v2637_v38, %s2211_s28  ;;  %v1877_v38 = vor.u32 %v2096_v34, %v1876_v37  ;;  %v2691_v25 = vpop.permute.xlu0 %853  ;;  %v2121_v37 = vld [vmem:[#allocation2 + $0xe4] sm:$0xf]  ;;  %v1982_v34 = vld [vmem:[#allocation2 + $0xe8] sm:$0xf0] }
 0x206   : > { %1521 = vmatpush.bf16.msra.mxu0 %v1877_v38  ;;  %v1131_v38 = vrot.slane %v2689_v24, 4  ;;  %v2715_v24 = vld [vmem:[%s2769_s3] sm:$0xff] }
 0x20c   : > { %855 = vrot.lane.b32.xlu1 %v850_v23, %s2211_s28 }
 0x214   : > { %712 = vrot.lane.b32.xlu1 %v708_v29, %s2210_s27 }
 0x240   : > { %v1163_v62 = vpop.permute.xlu2 %1162 }
 0x241   : > { %v1166_v4 = vrot.slane %v1163_v62, 4 }
 0x248   : > { %v506_v16 = vpop.permute.xlu2 %505 }
 0x249   : > { %v509_v33 = vrot.slane %v506_v16, 4 }
 0x24e   : > { %v876_v28 = vpop.permute.xlu1 %875 }
 0x24f   : > { %v879_v40 = vrot.slane %v876_v28, 4 }
 0x251   : > { %v881_v44 = vsel %vm511_vm0, %v879_v40, %v880_v0  ;;  %v2119_v0 = vld [vmem:[#allocation2 + $0xd4] sm:$0xf]  ;;  %v1974_v40 = vld [vmem:[#allocation2 + $0xd8] sm:$0xf0] }
 0x252   : > { %v882_v15 = vsel %vm493_vm1, %v876_v28, %v881_v44 }
 0x253   : > { %884 = vst [vmem:[#allocation2 + $0x110] sm:$0xff] %v882_v15  ;;  %v1985_v15 = vor.u32 %v2121_v37, %v1982_v34 }
 0x256   : > { %v736_v47 = vpop.permute.xlu1 %735 }
 0x257   : > { %v739_v50 = vrot.slane %v736_v47, 4  ;;  %v1165_v32 = vpop.permute.xlu0 %1164 }
 0x258   : > { %v1167_v63 = vrot.slane %v1165_v32, 4  ;;  %v2134_v32 = vld [vmem:[#allocation2 + $0x144] sm:$0xf0] }
 0x259   : > { %v741_v53 = vsel %vm511_vm0, %v739_v50, %v740_v2  ;;  %v1977_v2 = vor.u32 %v2119_v0, %v1974_v40  ;;  %v2028_v50 = vld [vmem:[#allocation2 + $0x140] sm:$0xf]  ;;  %v2103_v0 = vld [vmem:[#allocation2 + $0x54] sm:$0xf] }
 0x25a   : > { %v742_v54 = vsel %vm513_vm8, %v736_v47, %v741_v53  ;;  %v1168_v27 = vsel %vm511_vm0, %v1166_v4, %v1167_v63  ;;  %v1230_v4 = vunpack.c.l.b16 %v2715_v24  ;;  %v2117_v53 = vld [vmem:[#allocation2 + $0xc4] sm:$0xf]  ;;  %v2004_v35 = vld [vmem:[#allocation2 + $0x110] sm:$0xf] }
 0x25b   : > { %744 = vst [vmem:[#allocation2 + $0x90] sm:$0xff] %v742_v54  ;;  %v1169_v6 = vsel %vm493_vm1, %v1163_v62, %v1168_v27  ;;  %v1966_v54 = vld [vmem:[#allocation2 + $0xc8] sm:$0xf0] }
 0x25c   : > { %1171 = vst [vmem:[#allocation2 + $0x1a0] sm:$0x33] %v1169_v6  ;;  %v2718_v27 = vpack.c.b16 %v1230_v4, %v1230_v4  ;;  %v857_v6 = vrot.slane %v2691_v25, 4  ;;  %v1934_v4 = vld [vmem:[#allocation2 + $0x88] sm:$0xf0] }
 0x25e   : > { %v1032_v5 = vpop.permute.xlu1 %1031 }
 0x25f   : > { %v1035_v8 = vrot.slane %v1032_v5, 4  ;;  %v1110_v1 = vpop.permute.xlu0 %1109 }
 0x260   : > { %v1113_v57 = vrot.slane %v1110_v1, 4 }
 0x261   : > { %v1037_v49 = vsel %vm511_vm0, %v1035_v8, %v1036_v3  ;;  %v2029_v3 = vor.u32 %v2134_v32, %v2028_v50  ;;  %v2020_v8 = vld [vmem:[#allocation2 + $0x130] sm:$0xf]  ;;  %v2110_v32 = vld [vmem:[#allocation2 + $0x84] sm:$0xf0] }
 0x262   : > { %v1038_v12 = vsel %vm606_vm6, %v1032_v5, %v1037_v49  ;;  %v1940_v9 = vld [vmem:[#allocation2 + $0x90] sm:$0xf] }
 0x263   : > { %1040 = vst [vmem:[#allocation2 + $0x150] sm:$0x33] %v1038_v12  ;;  %v1941_v55 = vor.u32 %v2112_v7, %v1940_v9  ;;  %v2076_v56 = vld [vmem:[#allocation2 + $0x1a0] sm:$0xf]  ;;  %v2144_v7 = vld [vmem:[#allocation2 + $0x194] sm:$0xf0] }
 0x264   : > { %v2077_v60 = vor.u32 %v2146_v11, %v2076_v56  ;;  %v1969_v11 = vor.u32 %v2117_v53, %v1966_v54  ;;  %v2726_v12 = vld [vmem:[%s2769_s3 + $0x8] sm:$0xff]  ;;  %v2115_v56 = vld [vmem:[#allocation2 + $0xb4] sm:$0xf]  ;;  %v1231_v53 = vunpack.c.h.b16 %v2715_v24 }
 0x265   : > { %1534 = vmatpush.bf16.msra.mxu1 %v1941_v55  ;;  %v2145_v40 = vld [vmem:[#allocation2 + $0x1a4] sm:$0xf] }
 0x266   : > { %v1076_v17 = vpop.permute.xlu1 %1075  ;;  %1559 = vmatpush.bf16.msra.mxu3 %v2077_v60  ;;  %v1958_v60 = vld [vmem:[#allocation2 + $0xb8] sm:$0xf0] }
 0x267   : > { %v1078_v43 = vrot.slane %v1076_v17, 4  ;;  %v508_v18 = vpop.permute.xlu0 %507 }
 0x268   : > { %v510_v41 = vrot.slane %v508_v18, 4  ;;  %v2012_v18 = vld [vmem:[#allocation2 + $0x120] sm:$0xf] }
 0x269   : > { %v1079_v14 = vsel %vm511_vm0, %v1077_v10, %v1078_v43  ;;  %v2130_v10 = vld [vmem:[#allocation2 + $0x124] sm:$0xf0]  ;;  %v715_v43 = vpop.permute.xlu2 %714 }
 0x26a   : > { %v1080_v48 = vsel %vm587_vm4, %v1074_v30, %v1079_v14  ;;  %v512_v13 = vsel %vm511_vm0, %v509_v33, %v510_v41  ;;  %v2136_v30 = vld [vmem:[#allocation2 + $0x154] sm:$0xf0]  ;;  %v2036_v28 = vld [vmem:[#allocation2 + $0x150] sm:$0xf]  ;;  %v2142_v41 = vld [vmem:[#allocation2 + $0x184] sm:$0xf0]  ;;  %v1233_v14 = vunpack.c.h.b16 %v2726_v12 }
 0x26b   : > { %1082 = vst [vmem:[#allocation2 + $0x170] sm:$0x33] %v1080_v48  ;;  %v514_v19 = vsel %vm513_vm8, %v506_v16, %v512_v13  ;;  %v2037_v47 = vor.u32 %v2136_v30, %v2036_v28  ;;  %v1961_v48 = vor.u32 %v2115_v56, %v1958_v60  ;;  %v2107_v13 = vld [vmem:[#allocation2 + $0x74] sm:$0xf]  ;;  %v1232_v30 = vunpack.c.l.b16 %v2726_v12  ;;  %v2137_v12 = vld [vmem:[#allocation2 + $0x164] sm:$0xf] }
 0x26c   : > { %516 = vst [vmem:[#allocation2] sm:$0xff] %v514_v19  ;;  %v1926_v19 = vld [vmem:[#allocation2 + $0x78] sm:$0xf0]  ;;  %v1235_v56 = vpack.c.b16 %v1231_v53, %v1231_v53  ;;  %v2099_v60 = vld [vmem:[#allocation2 + $0x34] sm:$0xf] }
 0x26d   : > { %v1929_v46 = vor.u32 %v2107_v13, %v1926_v19  ;;  %v2038_v13 = vld [vmem:[#allocation2 + $0x158] sm:$0xf0] }
 0x26e   : > { %v1112_v22 = vpop.permute.xlu1 %1111 }
 0x26f   : > { %v1114_v59 = vrot.slane %v1112_v22, 4  ;;  %v2113_v22 = vld [vmem:[#allocation2 + $0xa4] sm:$0xf] }
 0x271   : > { %v1115_v20 = vsel %vm511_vm0, %v1113_v57, %v1114_v59  ;;  %v1950_v57 = vld [vmem:[#allocation2 + $0xa8] sm:$0xf0]  ;;  %v717_v59 = vrot.slane %v715_v43, 4 }
 0x272   : > { %v1116_v21 = vsel %vm555_vm5, %v1110_v1, %v1115_v20  ;;  %v2052_v23 = vld [vmem:[#allocation2 + $0x170] sm:$0xf]  ;;  %v2132_v1 = vld [vmem:[#allocation2 + $0x134] sm:$0xf0]  ;;  %v2013_v20 = vor.u32 %v2130_v10, %v2012_v18  ;;  %v1953_v26 = vor.u32 %v2113_v22, %v1950_v57  ;;  %v2139_v54 = vld [vmem:[#allocation2 + $0x174] sm:$0xf] }
 0x273   : > { %1118 = vst [vmem:[#allocation2 + $0x180] sm:$0x33] %v1116_v21  ;;  %v2053_v51 = vor.u32 %v2140_v61, %v2052_v23  ;;  %v1868_v52 = vld [vmem:[#allocation2] sm:$0xf]  ;;  %v2021_v16 = vor.u32 %v2132_v1, %v2020_v8  ;;  %v2128_v21 = vld [vmem:[#allocation2 + $0x114] sm:$0xf0]  ;;  %v2731_v23 = vpack.c.b16 %v1233_v14, %v1233_v14 }
 0x274   : > { %v1869_v29 = vor.u32 %v2094_v45, %v1868_v52  ;;  %v1918_v52 = vld [vmem:[#allocation2 + $0x68] sm:$0xf0]  ;;  %v2097_v14 = vld [vmem:[#allocation2 + $0x24] sm:$0xf]  ;;  %v2095_v57 = vld [vmem:[#allocation2 + $0x14] sm:$0xf] }
 0x275   : > { %1541 = vmatpush.bf16.msra.mxu2 %v2053_v51  ;;  %v2105_v51 = vld [vmem:[#allocation2 + $0x64] sm:$0xf]  ;;  %v2062_v43 = vld [vmem:[#allocation2 + $0x188] sm:$0xf0] }
 0x276   : > { %v1127_v36 = vpop.permute.xlu1 %1126  ;;  %1522 = vmatpush.bf16.msra.mxu0 %v1869_v29  ;;  %v1921_v37 = vor.u32 %v2105_v51, %v1918_v52  ;;  %v2030_v22 = vld [vmem:[#allocation2 + $0x148] sm:$0xf0]  ;;  %v2129_v52 = vld [vmem:[#allocation2 + $0x124] sm:$0xf] }
 0x277   : > { %v1130_v39 = vrot.slane %v1127_v36, 4 }
 0x279   : > { %v1132_v44 = vsel %vm511_vm0, %v1130_v39, %v1131_v38  ;;  %1542 = vmatpush.bf16.msra.mxu2 %v2045_v31  ;;  %1523 = vmatmul.bf16.vlgmr.msra.gmra.mxu0 %v2718_v27  ;;  %v1942_v31 = vld [vmem:[#allocation2 + $0x98] sm:$0xf0]  ;;  %v2126_v38 = vld [vmem:[#allocation2 + $0x104] sm:$0xf0] }
 0x27a   : > { %1580 = vmatpush.bf16.msrb.mxu0 %v1993_v42  ;;  %v1133_v62 = vsel %vm687_vm3, %v1127_v36, %v1132_v44  ;;  %v2060_v33 = vld [vmem:[#allocation2 + $0x180] sm:$0xf]  ;;  %v2111_v42 = vld [vmem:[#allocation2 + $0x94] sm:$0xf]  ;;  %v2005_v36 = vor.u32 %v2128_v21, %v2004_v35  ;;  %v1910_v39 = vld [vmem:[#allocation2 + $0x58] sm:$0xf0] }
 0x27b   : > { %1135 = vst [vmem:[#allocation2 + $0x190] sm:$0x33] %v1133_v62  ;;  %v2061_v45 = vor.u32 %v2142_v41, %v2060_v33  ;;  %v1945_v28 = vor.u32 %v2111_v42, %v1942_v31  ;;  %v2078_v44 = vld [vmem:[#allocation2 + $0x1a8] sm:$0xf0]  ;;  %v2101_v62 = vld [vmem:[#allocation2 + $0x44] sm:$0xf] }
 0x27c   : > { %v2081_v50 = vor.u32 %v2145_v40, %v2078_v44  ;;  %v2141_v10 = vld [vmem:[#allocation2 + $0x184] sm:$0xf]  ;;  %v1886_v33 = vld [vmem:[#allocation2 + $0x28] sm:$0xf0]  ;;  %v2127_v31 = vld [vmem:[#allocation2 + $0x114] sm:$0xf] }
 0x27d   : > { %1543 = vmatpush.bf16.msra.mxu2 %v2037_v47  ;;  %v1902_v47 = vld [vmem:[#allocation2 + $0x48] sm:$0xf0]  ;;  %v2065_v41 = vor.u32 %v2141_v10, %v2062_v43  ;;  %v1889_v19 = vor.u32 %v2097_v14, %v1886_v33  ;;  %v2093_v35 = vld [vmem:[#allocation2 + $0x4] sm:$0xf] }
 0x27e   : > { %1581 = vmatpush.bf16.msrb.mxu0 %v1985_v15  ;;  %v856_v63 = vpop.permute.xlu1 %855  ;;  %v1905_v1 = vor.u32 %v2101_v62, %v1902_v47  ;;  %v1870_v21 = vld [vmem:[#allocation2 + $0x8] sm:$0xf0] }
 0x27f   : > { %v858_v5 = vrot.slane %v856_v63, 4  ;;  %v2738_v63 = vpack.c.b16 %v1232_v30, %v1232_v30 }
 0x281   : > { %v859_v49 = vsel %vm511_vm0, %v857_v6, %v858_v5  ;;  %1544 = vmatpush.bf16.msra.mxu2 %v2029_v3  ;;  %v2054_v6 = vld [vmem:[#allocation2 + $0x178] sm:$0xf0] }
 0x282   : > { %1582 = vmatpush.bf16.msrb.mxu0 %v1977_v2  ;;  %v860_v9 = vsel %vm687_vm3, %v2691_v25, %v859_v49  ;;  %v2068_v55 = vld [vmem:[#allocation2 + $0x190] sm:$0xf]  ;;  %v1913_v2 = vor.u32 %v2103_v0, %v1910_v39  ;;  %v2070_v5 = vld [vmem:[#allocation2 + $0x198] sm:$0xf0] }
 0x283   : > { %862 = vst [vmem:[#allocation2 + $0x100] sm:$0xff] %v860_v9  ;;  %v2069_v17 = vor.u32 %v2144_v7, %v2068_v55  ;;  %v2143_v7 = vld [vmem:[#allocation2 + $0x194] sm:$0xf]  ;;  %v2046_v9 = vld [vmem:[#allocation2 + $0x168] sm:$0xf0]  ;;  %v2057_v55 = vor.u32 %v2139_v54, %v2054_v6 }
 0x284   : > { %v2073_v24 = vor.u32 %v2143_v7, %v2070_v5 }
 0x285   : > { %1545 = vmatpush.bf16.msra.mxu2 %v2021_v16  ;;  %1560 = vmatpush.bf16.msra.mxu3 %v2069_v17  ;;  %v1894_v16 = vld [vmem:[#allocation2 + $0x38] sm:$0xf0]  ;;  %v2049_v17 = vor.u32 %v2137_v12, %v2046_v9 }
 0x286   : > { %1583 = vmatpush.bf16.msrb.mxu0 %v1969_v11  ;;  %v713_v25 = vpop.permute.xlu1 %712  ;;  %v1897_v18 = vor.u32 %v2099_v60, %v1894_v16  ;;  %v1619_v12 = vld [vmem:[%s2772_s6] sm:$0xff] }
 0x287   : > { %v716_v61 = vrot.slane %v713_v25, 4 }
 0x289   : > { %v718_v58 = vsel %vm511_vm0, %v716_v61, %v717_v59  ;;  %1546 = vmatpush.bf16.msra.mxu2 %v2013_v20  ;;  %1561 = vmatpush.bf16.msra.mxu3 %v2061_v45  ;;  %v1878_v59 = vld [vmem:[#allocation2 + $0x18] sm:$0xf0]  ;;  %v2133_v61 = vld [vmem:[#allocation2 + $0x144] sm:$0xf] }
 0x28a   : > { %1584 = vmatpush.bf16.msrb.mxu0 %v1961_v48  ;;  %v720_v29 = vsel %vm493_vm1, %v713_v25, %v718_v58  ;;  %v1996_v34 = vld [vmem:[#allocation2 + $0x100] sm:$0xf]  ;;  %v2135_v48 = vld [vmem:[#allocation2 + $0x154] sm:$0xf]  ;;  %v1881_v20 = vor.u32 %v2095_v57, %v1878_v59  ;;  %v2033_v45 = vor.u32 %v2133_v61, %v2030_v22  ;;  %v1621_v59 = vld [vmem:[%s2771_s5] sm:$0xff] }
 0x28b   : > { %722 = vst [vmem:[#allocation2 + $0x80] sm:$0xff] %v720_v29  ;;  %v1997_v15 = vor.u32 %v2126_v38, %v1996_v34  ;;  %v2041_v25 = vor.u32 %v2135_v48, %v2038_v13  ;;  %v2131_v58 = vld [vmem:[#allocation2 + $0x134] sm:$0xf]  ;;  %v2014_v29 = vld [vmem:[#allocation2 + $0x128] sm:$0xf0] }
 0x28c   : > { %2082 = vmatmul.msk.bf16.vlgmr.msra.gmra.mxu3 %vm1511_vm9, %v2731_v23  ;;  %v2017_v42 = vor.u32 %v2129_v52, %v2014_v29  ;;  %v2125_v34 = vld [vmem:[#allocation2 + $0x104] sm:$0xf]  ;;  %v1998_v38 = vld [vmem:[#allocation2 + $0x108] sm:$0xf0] }
 0x28d   : > { %1567 = vmatpush.bf16.msrb.mxu3 %v1929_v46  ;;  %1547 = vmatpush.bf16.msra.mxu2 %v2005_v36  ;;  %v2022_v46 = vld [vmem:[#allocation2 + $0x138] sm:$0xf0]  ;;  %v2001_v39 = vor.u32 %v2125_v34, %v1998_v38 }
 0x28e   : > { %1585 = vmatpush.bf16.msrb.mxu0 %v1953_v26  ;;  %v1873_v26 = vor.u32 %v2093_v35, %v1870_v21  ;;  %v2025_v51 = vor.u32 %v2131_v58, %v2022_v46  ;;  %v2006_v36 = vld [vmem:[#allocation2 + $0x118] sm:$0xf0] }
 0x291   : > { %1568 = vmatpush.bf16.msrb.mxu3 %v1921_v37  ;;  %1548 = vmatpush.bf16.msra.mxu2 %v1997_v15  ;;  %v2009_v37 = vor.u32 %v2127_v31, %v2006_v36 }
 0x292   : > { %1586 = vmatpush.bf16.msrb.mxu0 %v1945_v28  ;;  %v1932_v3 = vld [vmem:[#allocation2 + $0x80] sm:$0xf]  ;;  %v2109_v8 = vld [vmem:[#allocation2 + $0x84] sm:$0xf] }
 0x293   : > { %v1933_v49 = vor.u32 %v2110_v32, %v1932_v3  ;;  %v1937_v11 = vor.u32 %v2109_v8, %v1934_v4 }
 0x294   : > { %1549 = vmatmul.bf16.vlgmr.msra.gmra.mxu2 %v2738_v63 }
 0x295   : > { %1569 = vmatpush.bf16.msrb.mxu3 %v1913_v2  ;;  %1611 = vmatpush.bf16.msrb.mxu2 %v2081_v50 }
 0x296   : > { %1535 = vmatpush.bf16.msra.mxu1 %v1933_v49  ;;  %1587 = vmatpush.bf16.msrb.mxu0 %v1937_v11 }
 0x299   : > { %1570 = vmatpush.bf16.msrb.mxu3 %v1905_v1  ;;  %1612 = vmatpush.bf16.msrb.mxu2 %v2073_v24 }
 0x29a   : > { %1593 = vmatpush.bf16.msrb.mxu1 %v2057_v55  ;;  %1588 = vmatmul.bf16.vlgmr.msrb.gmra.mxu0 %v1235_v56  ;;  %v1620_v55 = vld [vmem:[%s2770_s4] sm:$0xff] }
 0x29b   : > { %1536 = vmatmul.bf16.vlgmr.msra.gmra.mxu1 %v1235_v56 }
 0x29d   : > { %1571 = vmatpush.bf16.msrb.mxu3 %v1897_v18  ;;  %1613 = vmatpush.bf16.msrb.mxu2 %v2065_v41 }
 0x29e   : > { %1594 = vmatpush.bf16.msrb.mxu1 %v2049_v17 }
 0x2a1   : > { %1572 = vmatpush.bf16.msrb.mxu3 %v1889_v19 }
 0x2a2   : > { %1595 = vmatpush.bf16.msrb.mxu1 %v2041_v25 }
 0x2a4   : > { %2083 = vmatmul.msk.bf16.vlgmr.msrb.gmra.mxu2 %vm1511_vm9, %v2731_v23 }
 0x2a5   : > { %1573 = vmatpush.bf16.msrb.mxu3 %v1881_v20 }
 0x2a6   : > { %1596 = vmatpush.bf16.msrb.mxu1 %v2033_v45 }
 0x2a9   : > { %1574 = vmatpush.bf16.msrb.mxu3 %v1873_v26 }
 0x2aa   : > { %1597 = vmatpush.bf16.msrb.mxu1 %v2025_v51 }
 0x2ac   : > { %1575 = vmatmul.bf16.vlgmr.msrb.gmra.mxu3 %v2718_v27 }
 0x2ae   : > { %1598 = vmatpush.bf16.msrb.mxu1 %v2017_v42 }
 0x2b2   : > { %1599 = vmatpush.bf16.msrb.mxu1 %v2009_v37 }
 0x2b6   : > { %1600 = vmatpush.bf16.msrb.mxu1 %v2001_v39 }
 0x2b9   : > { %1601 = vmatmul.bf16.vlgmr.msrb.gmra.mxu1 %v2738_v63 }
 0x2f6   : > { %v1524_v30 = vpop.f32.mrf.mxu0 }
 0x2fe   : > { %v1526_v23 = vpop.f32.mrf.mxu0 }
 0x30f   : > { %v1563_v28 = vpop.f32.mrf.mxu3 }
 0x317   : > { %v1589_v40 = vpop.f32.mrf.mxu0  ;;  %v1550_v44 = vpop.f32.mrf.mxu2 }
 0x318   : > { %v1537_v0 = vpop.f32.mrf.mxu1  ;;  %v1565_v15 = vpop.f32.mrf.mxu3 }
 0x319   : > { %v1538_v32 = vadd.f32 %v1537_v0, %v1524_v30 }
 0x31b   : > { %v1551_v54 = vadd.f32 %v1550_v44, %v1538_v32 }
 0x31d   : > { %v1564_v63 = vadd.f32 %v1563_v28, %v1551_v54 }
 0x31f   : > { %v1591_v27 = vpop.f32.mrf.mxu0  ;;  %v1552_v47 = vpop.f32.mrf.mxu2 }
 0x320   : > { %v1539_v62 = vpop.f32.mrf.mxu1 }
 0x327   : > { %v1615_v2 = vpop.f32.mrf.mxu2 }
 0x32f   : > { %v1576_v50 = vpop.f32.mrf.mxu3  ;;  %v1617_v53 = vpop.f32.mrf.mxu2 }
 0x330   : > { %v1590_v4 = vadd.f32 %v1589_v40, %v1576_v50 }
 0x336   : > { %v1602_v6 = vpop.f32.mrf.mxu1 }
 0x337   : > { %v1603_v5 = vadd.f32 %v1602_v6, %v1590_v4  ;;  %v1578_v3 = vpop.f32.mrf.mxu3 }
 0x339   : > { %v1616_v8 = vadd.f32 %v1615_v2, %v1603_v5 }
 0x33b   : > { %v1622_v1 = vadd.f32 %v1616_v8, %v1564_v63 }
 0x33d   : > { %1623 = vadd.xlane.f32.xlu0 %v1622_v1 }
 0x33e   : > { %v1604_v7 = vpop.f32.mrf.mxu1 }
 0x3b0   : > { %v1624_v49 = vpop.xlane.xlu0 %1623 }
 0x3b1   : > { %v1625_v11 = vmul.f32 0.00390625, %v1624_v49 }
 0x3b3   : > { %1645 = vmatpush.msra.mxu3 %v1625_v11 }
 0x3b4   : > { %2084 = vmatmul.msk.f32.vlgmr.msra.gmra.mxu3 %vm1626_vm10, %v1619_v12 }
 0x437   : > { %v1647_v9 = vpop.f32.mrf.mxu3 }
 0x438   : > { %1652 = vperm.xlu1 %2194, %v1647_v9  }
 0x440   : > { %1702 = vperm.xlu1 %2194, %v1620_v55  }
 0x4aa   : > { %v1653_v56 = vpop.permute.xlu1 %1652 }
 0x4ab   : > { %v1655_v24 = vsub.f32 %v1564_v63, %v1653_v56  ;;  %v1656_v60 = vsub.f32 %v1616_v8, %v1653_v56 }
 0x4ad   : > { %v1657_v16 = vmul.f32 %v1655_v24, %v1655_v24  ;;  %v1658_v17 = vmul.f32 %v1656_v60, %v1656_v60 }
 0x4af   : > { %v1659_v10 = vadd.f32 %v1658_v17, %v1657_v16 }
 0x4b1   : > { %1660 = vadd.xlane.f32.xlu2 %v1659_v10 }
 0x4b2   : > { %v1703_v61 = vpop.permute.xlu1 %1702 }
 0x524   : > { %v1661_v43 = vpop.xlane.xlu2 %1660 }
 0x525   : > { %v1662_v18 = vmul.f32 0.00390625, %v1661_v43 }
 0x527   : > { %1678 = vmatpush.msra.mxu2 %v1662_v18 }
 0x528   : > { %2085 = vmatmul.msk.f32.vlgmr.msra.gmra.mxu2 %vm1626_vm10, %v1619_v12 }
 0x5ab   : > { %v1680_v33 = vpop.f32.mrf.mxu2 }
 0x5ac   : > { %v1681_v41 = vadd.f32 1e-05, %v1680_v33 }
 0x5ae   : > { %2196 = vrsqrt.f32 %v1681_v41  ;;  %vm1689_vm12 = vweird.f32 %v1681_v41 }
 0x5b4   : > { %v2197_v14 = vpop.eup %2196 }
 0x5b5   : > { %v1684_v48 = vmul.f32 %v2197_v14, %v1681_v41  ;;  %vm1690_vm11 = vweird.f32 %v2197_v14 }
 0x5b6   : > { %vm1691_vm13 = vmor %vm1689_vm12, %vm1690_vm11 }
 0x5b7   : > { %v1685_v13 = vmul.f32 %v2197_v14, %v1684_v48 }
 0x5b9   : > { %v1686_v19 = vmul.f32 0.5, %v1685_v13 }
 0x5bb   : > { %v1687_v25 = vsub.f32 1.5, %v1686_v19 }
 0x5bd   : > { %v1688_v22 = vmul.f32 %v2197_v14, %v1687_v25 }
 0x5bf   : > { %v1692_v57 = vsel %vm1691_vm13, %v2197_v14, %v1688_v22 }
 0x5c0   : > { %1695 = vperm.xlu1 %2194, %v1692_v57  }
 0x5c8   : > { %1709 = vperm.xlu1 %2194, %v1621_v59  }
 0x632   : > { %v1696_v20 = vpop.permute.xlu1 %1695 }
 0x633   : > { %v1698_v45 = vmul.f32 %v1696_v20, %v1655_v24  ;;  %v1699_v46 = vmul.f32 %v1696_v20, %v1656_v60 }
 0x635   : > { %v1705_v35 = vmul.f32 %v1703_v61, %v1698_v45  ;;  %v1706_v21 = vmul.f32 %v1703_v61, %v1699_v46 }
 0x63a   : > { %v1710_v58 = vpop.permute.xlu1 %1709 }
 0x63b   : > { %v1712_v26 = vadd.f32 %v1710_v58, %v1705_v35  ;;  %v1713_v51 = vadd.f32 %v1710_v58, %v1706_v21 }
 0x63d   : > { %v1714_v52 = vadd.f32 3.0, %v1712_v26  ;;  %v1715_v29 = vadd.f32 3.0, %v1713_v51 }
 0x63f   : > { %v1716_v42 = vmax.f32 %v1714_v52, 0.0  ;;  %v1717_v31 = vmax.f32 %v1715_v29, 0.0 }
 0x641   : > { %v1718_v36 = vmin.f32 %v1716_v42, 6.0  ;;  %v1719_v37 = vmin.f32 %v1717_v31, 6.0 }
 0x643   : > { %v1720_v34 = vmul.f32 %v1718_v36, %v1712_v26  ;;  %v1721_v38 = vmul.f32 %v1719_v37, %v1713_v51 }
 0x645   : > { %v1722_v39 = vmul.f32 0.16666667, %v1720_v34  ;;  %v1723_v30 = vmul.f32 0.16666667, %v1721_v38 }
 0x647   : > { %v1726_v23 = vrot.slane %v1723_v30, 4  ;;  %v1730_v28 = vpack.c.bf16 %v1723_v30, %v1722_v39 }
 0x649   : > { %v1727_v0 = vsel %vm511_vm0, %v1722_v39, %v1726_v23  ;;  %1733 = vst.sshfl [vmem:[#allocation1] sm:$0xff pattern:$0x75643120] %v1730_v28 }
 0x64a   : > { %1729 = vst [vmem:[%s407_s17] sm:$0xff] %v1727_v0 }
 0x650   : > { %v1735_v40 = vld [vmem:[#allocation1 + $0x1] ss:$2 sm:$0xff] }
 0x651   : > { %1737 = vst [vmem:[%s2333_s18 + $0x2] sm:$0xf] %v1735_v40 }
 0x652 PF: > { %s21_s13 = sadd.s32 1, %s2204_s13  }
 0x653   : > { %p18_p4 = scmp.ge.s32.totalorder %s21_s13, 4  }
 0x655   :  { %20 = sbr.rel (!%p18_p4) target bundleno = 1 (0x1), region = 111 }

</bundles_post_ra>
